<compile_context>
chip_gen: v7x
topology: tpu7x:2x2x1
jax: 0.10.0
libtpu: 0.0.40
codegen_flags: <defaults>
</compile_context>

<pallas_src>
import functools

import jax
import jax.numpy as jnp
from jax import lax
from jax.experimental import pallas as pl
from jax.experimental.pallas import tpu as pltpu

EPS = 1e-5
_SQRT_2_OVER_PI = 0.7978845608028654


def _gelu_tanh(x):
    # tanh-approximate GELU: tanh runs on the EUP slot (separate from the saturated
    # VALU). ~1e-3-level deviation from torch's exact erf GELU (validated below).
    return 0.5 * x * (1.0 + jnp.tanh(_SQRT_2_OVER_PI * (x + 0.044715 * x * x * x)))


def _gelu_erf(x):
    # exact erf-based GELU (torch.nn.GELU() default) -- used in the pure-JAX reference.
    return 0.5 * x * (1.0 + lax.erf(x * jnp.float32(0.7071067811865476)))


def _lane_group_sum(v, C, WC):
    """Sum the W groups of C lanes of v (1, WC); result broadcast back to all groups.

    log2(W) roll+add steps (XLU slot) when W is a power of two; otherwise W-1 rolls.
    """
    W = WC // C
    if W & (W - 1) == 0:
        sh = C
        while sh < WC:
            v = v + pltpu.roll(v, sh, 1)
            sh *= 2
        return v
    acc = v
    for w in range(1, W):
        acc = acc + pltpu.roll(v, (w * C) % WC, 1)
    return acc


def _batch_stats(x, C, WC, count):
    """Per-channel training-mode (biased) mean/var over (N, H, W) in the folded layout.

    NOTE: E[x^2]-E[x]^2 with a clamp is fine in f32 at these magnitudes; switch to a
    two-pass (x-mean)^2 form if shapes/dtypes ever change (cancellation risk).
    """
    s = jnp.sum(x, axis=0, keepdims=True)          # (1, WC)
    q = jnp.sum(x * x, axis=0, keepdims=True)      # (1, WC)
    s = _lane_group_sum(s, C, WC)
    q = _lane_group_sum(q, C, WC)
    inv_n = jnp.float32(1.0) / count
    mean = s * inv_n
    var = jnp.maximum(q * inv_n - mean * mean, 0.0)
    return mean, var


def adapt_block_kernel(
    x_ref,     # (N*H, W*C)   lane-dense input (also the residual branch)
    par_ref,   # (k*k+8, W*C) packed params: rows [0,k*k) depthwise taps (W-tiled,
               #              W-boundary masked), then dwb, bn1g, bn1b, pwb, bn2g, bn2b,
               #              fwtg, fwtb
    pw_ref,    # (128, 128)   1x1-conv block-diagonal lane-group tile kron(I_{128/C}, W_pw)
    out_ref,   # (N*H, W*C)
    *,
    k, p, H, W, C, adapt,
):
    WC = W * C
    NH = out_ref.shape[0]
    L = pw_ref.shape[0]            # 128
    G = WC // L                    # lane groups
    count = jnp.float32(NH * W)    # N*H*W elements per channel

    def prow(i):                   # one packed parameter row as a (1, WC) row vector
        return par_ref[i][None, :]

    x = x_ref[...].astype(jnp.float32)                       # (NH, WC)

    # output-row h index, used to mask the H 'same' boundary of the depthwise conv
    # (also kills the cross-batch wrap rows introduced by rolling the flattened N*H axis).
    h_of_row = lax.broadcasted_iota(jnp.int32, (NH, WC), 0) % H

    # ---- conv1: depthwise kxk conv, padding='same'.
    #   W boundary: zeros folded into the W-tiled tap weights (lane rolls wrap harmlessly)
    #   H boundary: sublane roll of the flattened (N*H) axis + per-row validity mask
    acc = jnp.zeros_like(x)
    for dh in range(k):
        d = dh - p
        if d == 0:
            xh = x
        else:
            xh = pltpu.roll(x, (-d) % NH, 0)
            valid = (h_of_row + d >= 0) & (h_of_row + d < H)
            xh = jnp.where(valid, xh, 0.0)
        for dw in range(k):
            sh = (-(dw - p) * C) % WC
            xs = xh if sh == 0 else pltpu.roll(xh, sh, 1)
            acc = acc + xs * prow(dh * k + dw)
    acc = _gelu_tanh(acc + prow(k * k + 0))

    # ---- BN1 (training-mode batch stats) + residual add
    m1, v1 = _batch_stats(acc, C, WC, count)
    acc = (acc - m1) * (lax.rsqrt(v1 + EPS) * prow(k * k + 1)) + prow(k * k + 2)
    y = acc + x

    # ---- conv2: 1x1 conv as G lane-group MXU matmuls against one 128x128 block-diagonal
    # tile. Slices are 128-lane aligned, so no re-tiling; f32 operands kept for fidelity.
    w128 = pw_ref[...]
    zg = [jnp.dot(y[:, g * L:(g + 1) * L], w128, preferred_element_type=jnp.float32)
          for g in range(G)]
    z = zg[0] if G == 1 else jnp.concatenate(zg, axis=1)
    z = _gelu_tanh(z + prow(k * k + 3))

    # ---- BN2, with the FWT BatchNorm fused algebraically (exact in training mode):
    #   BN2:  a   = zhat * g2 + b2,   zhat = (z - m2) / sqrt(v2 + eps)
    #   FWT:  out = (a - mean_a) / sqrt(var_a + eps) * gf + bf
    # Per channel, mean_a == b2 and var_a == g2^2 * v2 / (v2 + eps), so the second full
    # reduction + normalization pass collapses to one per-channel scale.
    m2, v2 = _batch_stats(z, C, WC, count)
    inv2 = lax.rsqrt(v2 + EPS)
    zhat = (z - m2) * inv2
    g2 = prow(k * k + 4)
    if adapt:
        var_a = (g2 * g2) * (v2 * inv2 * inv2)
        scale = g2 * prow(k * k + 6) * lax.rsqrt(var_a + EPS)
        outv = zhat * scale + prow(k * k + 7)
    else:
        outv = zhat * g2 + prow(k * k + 5)

    out_ref[...] = outv.astype(out_ref.dtype)


def init_adapt_block_params(key, dim, kernel_size):
    """Deterministic synthetic parameters (shapes mirror the PyTorch module)."""
    ks = jax.random.split(key, 7)
    # depthwise conv: torch weight (dim, 1, k, k) stored as (k, k, dim)
    dww = jax.random.normal(ks[0], (kernel_size, kernel_size, dim), jnp.float32) * 0.1
    dwb = jax.random.normal(ks[1], (1, dim), jnp.float32) * 0.05
    # pointwise 1x1 conv: torch weight (Cout, Cin, 1, 1); stored as (Cin, Cout)
    pww = (jax.random.normal(ks[2], (dim, dim), jnp.float32) * (1.0 / jnp.sqrt(dim))).T
    pwb = jax.random.normal(ks[3], (1, dim), jnp.float32) * 0.05

    def affine(k):
        kg, kb = jax.random.split(k)
        g = 1.0 + 0.2 * jax.random.normal(kg, (1, dim), jnp.float32)
        b = 0.1 * jax.random.normal(kb, (1, dim), jnp.float32)
        return g, b

    bn1_gamma, bn1_beta = affine(ks[4])
    bn2_gamma, bn2_beta = affine(ks[5])
    fwt_gamma, fwt_beta = affine(ks[6])
    return dict(
        dww=dww, dwb=dwb,
        bn1_gamma=bn1_gamma, bn1_beta=bn1_beta,
        pww=pww, pwb=pwb,
        bn2_gamma=bn2_gamma, bn2_beta=bn2_beta,
        fwt_gamma=fwt_gamma, fwt_beta=fwt_beta,
        # TODO(synk): BatchNorm running_mean/running_var buffer *updates* (training-mode
        # side effect) are not materialized; they do not affect the forward output.
    )


def adapt_block_forward(x_nchw, params, *, kernel_size, adapt=True):
    """AdaptBlock forward; input NCHW, returns [out_nchw, total_loss]."""
    total_loss = 0
    k = kernel_size
    p = (k - 1) // 2
    N, C, H, W = x_nchw.shape
    WC = W * C
    L = 128
    # layout / alignment contracts — fail loudly instead of silently relaying out
    assert k % 2 == 1, "padding='same' supported for odd kernel sizes only"
    assert WC % L == 0, "W*C must be a multiple of 128 (lane-dense layout + lane-roll trick)"
    assert L % C == 0, "C must divide 128 (128x128 block-diagonal 1x1-conv tile)"
    assert (N * H) % 8 == 0, "N*H must be a multiple of 8 (sublane-aligned loads/stores)"

    # ---- layout plumbing: NCHW -> NHWC -> fold W into lanes, (N,H) into sublanes
    x2 = jnp.transpose(x_nchw, (0, 2, 3, 1)).reshape(N * H, WC)

    # ---- pack W-tiled depthwise taps (W-boundary masked) + all per-channel parameters
    # into ONE (k*k+8, WC) array -> a single DMA instead of 10+ tiny sublane-padded ones.
    w_idx = jnp.arange(W)
    rows = []
    for dh in range(k):
        for dw in range(k):
            d = dw - p
            valid = ((w_idx + d >= 0) & (w_idx + d < W)).astype(jnp.float32)     # (W,)
            rows.append(jnp.repeat(valid, C) * jnp.tile(params["dww"][dh, dw], W))

    def tile_c(v):   # (1, C) per-channel vector -> (W*C,) lane-tiled row
        return jnp.tile(v.reshape(C), W)

    rows += [tile_c(params["dwb"]),
             tile_c(params["bn1_gamma"]), tile_c(params["bn1_beta"]),
             tile_c(params["pwb"]),
             tile_c(params["bn2_gamma"]), tile_c(params["bn2_beta"]),
             tile_c(params["fwt_gamma"]), tile_c(params["fwt_beta"])]
    packed = jnp.stack(rows)                                   # (k*k + 8, WC)

    # ---- 1x1 conv weight: a single 128x128 block-diagonal lane-group tile
    # kron(I_{128//C}, W_pw). The same tile serves every 128-lane group, so weight DMA is
    # 64 KiB instead of the 1 MiB kron(I_W, W_pw) matrix (and no per-call kron build).
    w128 = jnp.kron(jnp.eye(L // C, dtype=params["pww"].dtype), params["pww"])

    kernel = functools.partial(adapt_block_kernel, k=k, p=p, H=H, W=W, C=C, adapt=adapt)
    vmem = pl.BlockSpec(memory_space=pltpu.MemorySpace.VMEM)
    out = pl.pallas_call(
        kernel,
        out_shape=jax.ShapeDtypeStruct((N * H, WC), x_nchw.dtype),
        in_specs=[vmem, vmem, vmem],
        out_specs=vmem,
        # TODO(synk): at production scale this should become a gridded two-pass
        # (stats, then apply) kernel with (N or H)-tiled BlockSpecs and
        # dimension_semantics=("parallel", ...) so v7x's 2 TensorCores / 64 MiB VMEM are
        # used; at these shapes everything is a tiny fraction of VMEM and one un-gridded
        # invocation is fastest.
    )(x2, packed, w128)
    out = jnp.transpose(out.reshape(N, H, W, C), (0, 3, 1, 2))
    return [out, total_loss]


# ----------------------------- pure-JAX reference ---------------------------------
def _bn_train(x, gamma, beta):
    mean = jnp.mean(x, axis=(0, 1, 2), keepdims=True)
    var = jnp.mean((x - mean) ** 2, axis=(0, 1, 2), keepdims=True)
    return (x - mean) * lax.rsqrt(var + EPS) * gamma + beta


def adapt_block_reference(x_nchw, params, *, kernel_size, adapt=True):
    """Pure-JAX reference: exact erf GELU, unfused BN2 + FWT (matches the torch module)."""
    x = jnp.transpose(x_nchw, (0, 2, 3, 1))
    N, H, W, C = x.shape
    p = (kernel_size - 1) // 2
    xpad = jnp.pad(x, ((0, 0), (p, p), (p, p), (0, 0)))
    acc = jnp.zeros_like(x)
    for dh in range(kernel_size):
        for dw in range(kernel_size):
            acc = acc + xpad[:, dh:dh + H, dw:dw + W, :] * params["dww"][dh, dw]
    acc = _gelu_erf(acc + params["dwb"])
    acc = _bn_train(acc, params["bn1_gamma"], params["bn1_beta"])
    y = acc + x
    z = _gelu_erf(y.reshape(-1, C) @ params["pww"] + params["pwb"]).reshape(N, H, W, C)
    z = _bn_train(z, params["bn2_gamma"], params["bn2_beta"])
    if adapt:
        z = _bn_train(z, params["fwt_gamma"], params["fwt_beta"])
    return jnp.transpose(z, (0, 3, 1, 2))


if __name__ == "__main__":
    # small shapes: batch=2, dim=32, spatial=16x16, kernel_size=3, adapt=True
    N, DIM, H, W = 2, 32, 16, 16
    KSIZE = 3

    key = jax.random.PRNGKey(0)
    kx, kp = jax.random.split(key)
    x = jax.random.normal(kx, (N, DIM, H, W), jnp.float32)   # NCHW, like PyTorch
    params = init_adapt_block_params(kp, DIM, KSIZE)

    out, total_loss = adapt_block_forward(x, params, kernel_size=KSIZE, adapt=True)
    out = jax.block_until_ready(out)

    ref = jax.block_until_ready(
        adapt_block_reference(x, params, kernel_size=KSIZE, adapt=True))
    assert out.shape == (N, DIM, H, W)
    err = float(jnp.max(jnp.abs(out - ref)))
    assert err < 5e-3, f"max abs error vs reference: {err}"

    print("KERNEL_OK")
</pallas_src>

<mosaic_0001>
module attributes {stable_mosaic.version = 11 : i64} {
  func.func @adapt_block_kernel(%arg0: memref<32x512xf32, #tpu.memory_space<vmem>>, %arg1: memref<17x512xf32, #tpu.memory_space<vmem>>, %arg2: memref<128x128xf32, #tpu.memory_space<vmem>>, %arg3: memref<32x512xf32, #tpu.memory_space<vmem>>) attributes {dimension_semantics = [], scalar_prefetch = 0 : i64, scratch_operands = 0 : i64, tpu.core_type = #tpu.core_type<tc>} {
    %c0 = arith.constant 0 : index
    %c0_0 = arith.constant 0 : index
    %0 = vector.load %arg0[%c0, %c0_0] : memref<32x512xf32, #tpu.memory_space<vmem>>, vector<32x512xf32>
    %1 = tpu.iota {dimensions = array<i32: 0>} : vector<32x512xi32>
    %c16_i32 = arith.constant 16 : i32
    %c0_i32 = arith.constant 0 : i32
    %2 = arith.cmpi eq, %c16_i32, %c0_i32 : i32
    %c1_i32 = arith.constant 1 : i32
    %3 = arith.select %2, %c1_i32, %c16_i32 : i32
    %4 = vector.broadcast %3 : i32 to vector<32x512xi32>
    %5 = arith.remsi %1, %4 : vector<32x512xi32>
    %c0_i32_1 = arith.constant 0 : i32
    %6 = vector.broadcast %c0_i32_1 : i32 to vector<32x512xi32>
    %7 = arith.cmpi ne, %5, %6 : vector<32x512xi32>
    %c0_i32_2 = arith.constant 0 : i32
    %8 = vector.broadcast %c0_i32_2 : i32 to vector<32x512xi32>
    %9 = arith.cmpi slt, %5, %8 : vector<32x512xi32>
    %c0_i32_3 = arith.constant 0 : i32
    %10 = arith.cmpi slt, %3, %c0_i32_3 : i32
    %11 = vector.broadcast %10 : i1 to vector<32x512xi1>
    %12 = vector.broadcast %11 : vector<32x512xi1> to vector<32x512xi1>
    %13 = arith.xori %9, %12 : vector<32x512xi1>
    %14 = arith.andi %13, %7 : vector<32x512xi1>
    %15 = vector.broadcast %3 : i32 to vector<32x512xi32>
    %16 = arith.addi %5, %15 : vector<32x512xi32>
    %17 = arith.select %14, %16, %5 : vector<32x512xi1>, vector<32x512xi32>
    %cst = arith.constant 0.000000e+00 : f32
    %18 = vector.broadcast %cst : f32 to vector<32x512xf32>
    %c1_i32_4 = arith.constant 1 : i32
    %19 = tpu.dynamic_rotate %0 by %c1_i32_4 dim 0 : vector<32x512xf32>, i32 -> vector<32x512xf32>
    %c-1_i32 = arith.constant -1 : i32
    %20 = vector.broadcast %c-1_i32 : i32 to vector<32x512xi32>
    %21 = arith.addi %17, %20 : vector<32x512xi32>
    %c0_i32_5 = arith.constant 0 : i32
    %22 = vector.broadcast %c0_i32_5 : i32 to vector<32x512xi32>
    %23 = arith.cmpi sge, %21, %22 : vector<32x512xi32>
    %c-1_i32_6 = arith.constant -1 : i32
    %24 = vector.broadcast %c-1_i32_6 : i32 to vector<32x512xi32>
    %25 = arith.addi %17, %24 : vector<32x512xi32>
    %c16_i32_7 = arith.constant 16 : i32
    %26 = vector.broadcast %c16_i32_7 : i32 to vector<32x512xi32>
    %27 = arith.cmpi slt, %25, %26 : vector<32x512xi32>
    %28 = arith.andi %23, %27 : vector<32x512xi1>
    %cst_8 = arith.constant 0.000000e+00 : f32
    %29 = vector.broadcast %cst_8 : f32 to vector<32x512xf32>
    %30 = arith.select %28, %19, %29 : vector<32x512xi1>, vector<32x512xf32>
    %c32_i32 = arith.constant 32 : i32
    %31 = tpu.dynamic_rotate %30 by %c32_i32 dim 1 : vector<32x512xf32>, i32 -> vector<32x512xf32>
    %c0_9 = arith.constant 0 : index
    %c0_10 = arith.constant 0 : index
    %32 = vector.load %arg1[%c0_9, %c0_10] : memref<17x512xf32, #tpu.memory_space<vmem>>, vector<1x512xf32>
    %33 = vector.shape_cast %32 : vector<1x512xf32> to vector<512xf32>
    %34 = vector.shape_cast %33 : vector<512xf32> to vector<1x512xf32>
    %35 = vector.broadcast %34 : vector<1x512xf32> to vector<32x512xf32>
    %36 = arith.mulf %31, %35 : vector<32x512xf32>
    %37 = arith.addf %18, %36 : vector<32x512xf32>
    %c1 = arith.constant 1 : index
    %c0_11 = arith.constant 0 : index
    %38 = vector.load %arg1[%c1, %c0_11] : memref<17x512xf32, #tpu.memory_space<vmem>>, vector<1x512xf32>
    %39 = vector.shape_cast %38 : vector<1x512xf32> to vector<512xf32>
    %40 = vector.shape_cast %39 : vector<512xf32> to vector<1x512xf32>
    %41 = vector.broadcast %40 : vector<1x512xf32> to vector<32x512xf32>
    %42 = arith.mulf %30, %41 : vector<32x512xf32>
    %43 = arith.addf %37, %42 : vector<32x512xf32>
    %c480_i32 = arith.constant 480 : i32
    %44 = tpu.dynamic_rotate %30 by %c480_i32 dim 1 : vector<32x512xf32>, i32 -> vector<32x512xf32>
    %c2 = arith.constant 2 : index
    %c0_12 = arith.constant 0 : index
    %45 = vector.load %arg1[%c2, %c0_12] : memref<17x512xf32, #tpu.memory_space<vmem>>, vector<1x512xf32>
    %46 = vector.shape_cast %45 : vector<1x512xf32> to vector<512xf32>
    %47 = vector.shape_cast %46 : vector<512xf32> to vector<1x512xf32>
    %48 = vector.broadcast %47 : vector<1x512xf32> to vector<32x512xf32>
    %49 = arith.mulf %44, %48 : vector<32x512xf32>
    %50 = arith.addf %43, %49 : vector<32x512xf32>
    %c32_i32_13 = arith.constant 32 : i32
    %51 = tpu.dynamic_rotate %0 by %c32_i32_13 dim 1 : vector<32x512xf32>, i32 -> vector<32x512xf32>
    %c3 = arith.constant 3 : index
    %c0_14 = arith.constant 0 : index
    %52 = vector.load %arg1[%c3, %c0_14] : memref<17x512xf32, #tpu.memory_space<vmem>>, vector<1x512xf32>
    %53 = vector.shape_cast %52 : vector<1x512xf32> to vector<512xf32>
    %54 = vector.shape_cast %53 : vector<512xf32> to vector<1x512xf32>
    %55 = vector.broadcast %54 : vector<1x512xf32> to vector<32x512xf32>
    %56 = arith.mulf %51, %55 : vector<32x512xf32>
    %57 = arith.addf %50, %56 : vector<32x512xf32>
    %c4 = arith.constant 4 : index
    %c0_15 = arith.constant 0 : index
    %58 = vector.load %arg1[%c4, %c0_15] : memref<17x512xf32, #tpu.memory_space<vmem>>, vector<1x512xf32>
    %59 = vector.shape_cast %58 : vector<1x512xf32> to vector<512xf32>
    %60 = vector.shape_cast %59 : vector<512xf32> to vector<1x512xf32>
    %61 = vector.broadcast %60 : vector<1x512xf32> to vector<32x512xf32>
    %62 = arith.mulf %0, %61 : vector<32x512xf32>
    %63 = arith.addf %57, %62 : vector<32x512xf32>
    %c480_i32_16 = arith.constant 480 : i32
    %64 = tpu.dynamic_rotate %0 by %c480_i32_16 dim 1 : vector<32x512xf32>, i32 -> vector<32x512xf32>
    %c5 = arith.constant 5 : index
    %c0_17 = arith.constant 0 : index
    %65 = vector.load %arg1[%c5, %c0_17] : memref<17x512xf32, #tpu.memory_space<vmem>>, vector<1x512xf32>
    %66 = vector.shape_cast %65 : vector<1x512xf32> to vector<512xf32>
    %67 = vector.shape_cast %66 : vector<512xf32> to vector<1x512xf32>
    %68 = vector.broadcast %67 : vector<1x512xf32> to vector<32x512xf32>
    %69 = arith.mulf %64, %68 : vector<32x512xf32>
    %70 = arith.addf %63, %69 : vector<32x512xf32>
    %c31_i32 = arith.constant 31 : i32
    %71 = tpu.dynamic_rotate %0 by %c31_i32 dim 0 : vector<32x512xf32>, i32 -> vector<32x512xf32>
    %c1_i32_18 = arith.constant 1 : i32
    %72 = vector.broadcast %c1_i32_18 : i32 to vector<32x512xi32>
    %73 = arith.addi %17, %72 : vector<32x512xi32>
    %c0_i32_19 = arith.constant 0 : i32
    %74 = vector.broadcast %c0_i32_19 : i32 to vector<32x512xi32>
    %75 = arith.cmpi sge, %73, %74 : vector<32x512xi32>
    %c1_i32_20 = arith.constant 1 : i32
    %76 = vector.broadcast %c1_i32_20 : i32 to vector<32x512xi32>
    %77 = arith.addi %17, %76 : vector<32x512xi32>
    %c16_i32_21 = arith.constant 16 : i32
    %78 = vector.broadcast %c16_i32_21 : i32 to vector<32x512xi32>
    %79 = arith.cmpi slt, %77, %78 : vector<32x512xi32>
    %80 = arith.andi %75, %79 : vector<32x512xi1>
    %cst_22 = arith.constant 0.000000e+00 : f32
    %81 = vector.broadcast %cst_22 : f32 to vector<32x512xf32>
    %82 = arith.select %80, %71, %81 : vector<32x512xi1>, vector<32x512xf32>
    %c32_i32_23 = arith.constant 32 : i32
    %83 = tpu.dynamic_rotate %82 by %c32_i32_23 dim 1 : vector<32x512xf32>, i32 -> vector<32x512xf32>
    %c6 = arith.constant 6 : index
    %c0_24 = arith.constant 0 : index
    %84 = vector.load %arg1[%c6, %c0_24] : memref<17x512xf32, #tpu.memory_space<vmem>>, vector<1x512xf32>
    %85 = vector.shape_cast %84 : vector<1x512xf32> to vector<512xf32>
    %86 = vector.shape_cast %85 : vector<512xf32> to vector<1x512xf32>
    %87 = vector.broadcast %86 : vector<1x512xf32> to vector<32x512xf32>
    %88 = arith.mulf %83, %87 : vector<32x512xf32>
    %89 = arith.addf %70, %88 : vector<32x512xf32>
    %c7 = arith.constant 7 : index
    %c0_25 = arith.constant 0 : index
    %90 = vector.load %arg1[%c7, %c0_25] : memref<17x512xf32, #tpu.memory_space<vmem>>, vector<1x512xf32>
    %91 = vector.shape_cast %90 : vector<1x512xf32> to vector<512xf32>
    %92 = vector.shape_cast %91 : vector<512xf32> to vector<1x512xf32>
    %93 = vector.broadcast %92 : vector<1x512xf32> to vector<32x512xf32>
    %94 = arith.mulf %82, %93 : vector<32x512xf32>
    %95 = arith.addf %89, %94 : vector<32x512xf32>
    %c480_i32_26 = arith.constant 480 : i32
    %96 = tpu.dynamic_rotate %82 by %c480_i32_26 dim 1 : vector<32x512xf32>, i32 -> vector<32x512xf32>
    %c8 = arith.constant 8 : index
    %c0_27 = arith.constant 0 : index
    %97 = vector.load %arg1[%c8, %c0_27] : memref<17x512xf32, #tpu.memory_space<vmem>>, vector<1x512xf32>
    %98 = vector.shape_cast %97 : vector<1x512xf32> to vector<512xf32>
    %99 = vector.shape_cast %98 : vector<512xf32> to vector<1x512xf32>
    %100 = vector.broadcast %99 : vector<1x512xf32> to vector<32x512xf32>
    %101 = arith.mulf %96, %100 : vector<32x512xf32>
    %102 = arith.addf %95, %101 : vector<32x512xf32>
    %c9 = arith.constant 9 : index
    %c0_28 = arith.constant 0 : index
    %103 = vector.load %arg1[%c9, %c0_28] : memref<17x512xf32, #tpu.memory_space<vmem>>, vector<1x512xf32>
    %104 = vector.shape_cast %103 : vector<1x512xf32> to vector<512xf32>
    %105 = vector.shape_cast %104 : vector<512xf32> to vector<1x512xf32>
    %106 = vector.broadcast %105 : vector<1x512xf32> to vector<32x512xf32>
    %107 = arith.addf %102, %106 : vector<32x512xf32>
    %cst_29 = arith.constant 5.000000e-01 : f32
    %108 = vector.broadcast %cst_29 : f32 to vector<32x512xf32>
    %109 = arith.mulf %108, %107 : vector<32x512xf32>
    %cst_30 = arith.constant 4.471500e-02 : f32
    %110 = vector.broadcast %cst_30 : f32 to vector<32x512xf32>
    %111 = arith.mulf %110, %107 : vector<32x512xf32>
    %112 = arith.mulf %111, %107 : vector<32x512xf32>
    %113 = arith.mulf %112, %107 : vector<32x512xf32>
    %114 = arith.addf %107, %113 : vector<32x512xf32>
    %cst_31 = arith.constant 0.797884583 : f32
    %115 = vector.broadcast %cst_31 : f32 to vector<32x512xf32>
    %116 = arith.mulf %115, %114 : vector<32x512xf32>
    %117 = math.tanh %116 : vector<32x512xf32>
    %cst_32 = arith.constant 1.000000e+00 : f32
    %118 = vector.broadcast %cst_32 : f32 to vector<32x512xf32>
    %119 = arith.addf %118, %117 : vector<32x512xf32>
    %120 = arith.mulf %109, %119 : vector<32x512xf32>
    %cst_33 = arith.constant dense<0.000000e+00> : vector<512xf32>
    %121 = vector.multi_reduction <add>, %120, %cst_33 [0] : vector<32x512xf32> to vector<512xf32>
    %122 = vector.shape_cast %121 : vector<512xf32> to vector<1x512xf32>
    %123 = arith.mulf %120, %120 : vector<32x512xf32>
    %cst_34 = arith.constant dense<0.000000e+00> : vector<512xf32>
    %124 = vector.multi_reduction <add>, %123, %cst_34 [0] : vector<32x512xf32> to vector<512xf32>
    %125 = vector.shape_cast %124 : vector<512xf32> to vector<1x512xf32>
    %c32_i32_35 = arith.constant 32 : i32
    %126 = tpu.dynamic_rotate %122 by %c32_i32_35 dim 1 : vector<1x512xf32>, i32 -> vector<1x512xf32>
    %127 = arith.addf %122, %126 : vector<1x512xf32>
    %c64_i32 = arith.constant 64 : i32
    %128 = tpu.dynamic_rotate %127 by %c64_i32 dim 1 : vector<1x512xf32>, i32 -> vector<1x512xf32>
    %129 = arith.addf %127, %128 : vector<1x512xf32>
    %c128_i32 = arith.constant 128 : i32
    %130 = tpu.dynamic_rotate %129 by %c128_i32 dim 1 : vector<1x512xf32>, i32 -> vector<1x512xf32>
    %131 = arith.addf %129, %130 : vector<1x512xf32>
    %c256_i32 = arith.constant 256 : i32
    %132 = tpu.dynamic_rotate %131 by %c256_i32 dim 1 : vector<1x512xf32>, i32 -> vector<1x512xf32>
    %133 = arith.addf %131, %132 : vector<1x512xf32>
    %c32_i32_36 = arith.constant 32 : i32
    %134 = tpu.dynamic_rotate %125 by %c32_i32_36 dim 1 : vector<1x512xf32>, i32 -> vector<1x512xf32>
    %135 = arith.addf %125, %134 : vector<1x512xf32>
    %c64_i32_37 = arith.constant 64 : i32
    %136 = tpu.dynamic_rotate %135 by %c64_i32_37 dim 1 : vector<1x512xf32>, i32 -> vector<1x512xf32>
    %137 = arith.addf %135, %136 : vector<1x512xf32>
    %c128_i32_38 = arith.constant 128 : i32
    %138 = tpu.dynamic_rotate %137 by %c128_i32_38 dim 1 : vector<1x512xf32>, i32 -> vector<1x512xf32>
    %139 = arith.addf %137, %138 : vector<1x512xf32>
    %c256_i32_39 = arith.constant 256 : i32
    %140 = tpu.dynamic_rotate %139 by %c256_i32_39 dim 1 : vector<1x512xf32>, i32 -> vector<1x512xf32>
    %141 = arith.addf %139, %140 : vector<1x512xf32>
    %cst_40 = arith.constant 1.000000e+00 : f32
    %cst_41 = arith.constant 5.120000e+02 : f32
    %142 = arith.divf %cst_40, %cst_41 : f32
    %143 = vector.broadcast %142 : f32 to vector<1x512xf32>
    %144 = arith.mulf %133, %143 : vector<1x512xf32>
    %145 = vector.broadcast %142 : f32 to vector<1x512xf32>
    %146 = arith.mulf %141, %145 : vector<1x512xf32>
    %147 = arith.mulf %144, %144 : vector<1x512xf32>
    %148 = arith.subf %146, %147 : vector<1x512xf32>
    %cst_42 = arith.constant 0.000000e+00 : f32
    %149 = vector.broadcast %cst_42 : f32 to vector<1x512xf32>
    %150 = arith.maximumf %148, %149 : vector<1x512xf32>
    %151 = vector.broadcast %144 : vector<1x512xf32> to vector<32x512xf32>
    %152 = arith.subf %120, %151 : vector<32x512xf32>
    %cst_43 = arith.constant 9.99999974E-6 : f32
    %153 = vector.broadcast %cst_43 : f32 to vector<1x512xf32>
    %154 = arith.addf %150, %153 : vector<1x512xf32>
    %155 = math.rsqrt %154 : vector<1x512xf32>
    %c10 = arith.constant 10 : index
    %c0_44 = arith.constant 0 : index
    %156 = vector.load %arg1[%c10, %c0_44] : memref<17x512xf32, #tpu.memory_space<vmem>>, vector<1x512xf32>
    %157 = vector.shape_cast %156 : vector<1x512xf32> to vector<512xf32>
    %158 = vector.shape_cast %157 : vector<512xf32> to vector<1x512xf32>
    %159 = arith.mulf %155, %158 : vector<1x512xf32>
    %160 = vector.broadcast %159 : vector<1x512xf32> to vector<32x512xf32>
    %161 = arith.mulf %152, %160 : vector<32x512xf32>
    %c11 = arith.constant 11 : index
    %c0_45 = arith.constant 0 : index
    %162 = vector.load %arg1[%c11, %c0_45] : memref<17x512xf32, #tpu.memory_space<vmem>>, vector<1x512xf32>
    %163 = vector.shape_cast %162 : vector<1x512xf32> to vector<512xf32>
    %164 = vector.shape_cast %163 : vector<512xf32> to vector<1x512xf32>
    %165 = vector.broadcast %164 : vector<1x512xf32> to vector<32x512xf32>
    %166 = arith.addf %161, %165 : vector<32x512xf32>
    %167 = arith.addf %166, %0 : vector<32x512xf32>
    %c0_46 = arith.constant 0 : index
    %c0_47 = arith.constant 0 : index
    %168 = vector.load %arg2[%c0_46, %c0_47] : memref<128x128xf32, #tpu.memory_space<vmem>>, vector<128x128xf32>
    %169 = vector.extract_strided_slice %167 {offsets = [0, 0], sizes = [32, 128], strides = [1, 1]} : vector<32x512xf32> to vector<32x128xf32>
    %cst_48 = arith.constant dense<0.000000e+00> : vector<32x128xf32>
    %170 = tpu.matmul %169, %168, %cst_48 {dimension_numbers = #tpu.dot_dimension_numbers<[1], [0], [0], [1], [0, 0, 1, 1], [], []>} : vector<32x128xf32>, vector<128x128xf32>, vector<32x128xf32> -> vector<32x128xf32>
    %171 = vector.extract_strided_slice %167 {offsets = [0, 128], sizes = [32, 128], strides = [1, 1]} : vector<32x512xf32> to vector<32x128xf32>
    %cst_49 = arith.constant dense<0.000000e+00> : vector<32x128xf32>
    %172 = tpu.matmul %171, %168, %cst_49 {dimension_numbers = #tpu.dot_dimension_numbers<[1], [0], [0], [1], [0, 0, 1, 1], [], []>} : vector<32x128xf32>, vector<128x128xf32>, vector<32x128xf32> -> vector<32x128xf32>
    %173 = vector.extract_strided_slice %167 {offsets = [0, 256], sizes = [32, 128], strides = [1, 1]} : vector<32x512xf32> to vector<32x128xf32>
    %cst_50 = arith.constant dense<0.000000e+00> : vector<32x128xf32>
    %174 = tpu.matmul %173, %168, %cst_50 {dimension_numbers = #tpu.dot_dimension_numbers<[1], [0], [0], [1], [0, 0, 1, 1], [], []>} : vector<32x128xf32>, vector<128x128xf32>, vector<32x128xf32> -> vector<32x128xf32>
    %175 = vector.extract_strided_slice %167 {offsets = [0, 384], sizes = [32, 128], strides = [1, 1]} : vector<32x512xf32> to vector<32x128xf32>
    %cst_51 = arith.constant dense<0.000000e+00> : vector<32x128xf32>
    %176 = tpu.matmul %175, %168, %cst_51 {dimension_numbers = #tpu.dot_dimension_numbers<[1], [0], [0], [1], [0, 0, 1, 1], [], []>} : vector<32x128xf32>, vector<128x128xf32>, vector<32x128xf32> -> vector<32x128xf32>
    %177 = tpu.concatenate %170, %172, %174, %176 in 1 : vector<32x128xf32>, vector<32x128xf32>, vector<32x128xf32>, vector<32x128xf32> -> vector<32x512xf32>
    %c12 = arith.constant 12 : index
    %c0_52 = arith.constant 0 : index
    %178 = vector.load %arg1[%c12, %c0_52] : memref<17x512xf32, #tpu.memory_space<vmem>>, vector<1x512xf32>
    %179 = vector.shape_cast %178 : vector<1x512xf32> to vector<512xf32>
    %180 = vector.shape_cast %179 : vector<512xf32> to vector<1x512xf32>
    %181 = vector.broadcast %180 : vector<1x512xf32> to vector<32x512xf32>
    %182 = arith.addf %177, %181 : vector<32x512xf32>
    %cst_53 = arith.constant 5.000000e-01 : f32
    %183 = vector.broadcast %cst_53 : f32 to vector<32x512xf32>
    %184 = arith.mulf %183, %182 : vector<32x512xf32>
    %cst_54 = arith.constant 4.471500e-02 : f32
    %185 = vector.broadcast %cst_54 : f32 to vector<32x512xf32>
    %186 = arith.mulf %185, %182 : vector<32x512xf32>
    %187 = arith.mulf %186, %182 : vector<32x512xf32>
    %188 = arith.mulf %187, %182 : vector<32x512xf32>
    %189 = arith.addf %182, %188 : vector<32x512xf32>
    %cst_55 = arith.constant 0.797884583 : f32
    %190 = vector.broadcast %cst_55 : f32 to vector<32x512xf32>
    %191 = arith.mulf %190, %189 : vector<32x512xf32>
    %192 = math.tanh %191 : vector<32x512xf32>
    %cst_56 = arith.constant 1.000000e+00 : f32
    %193 = vector.broadcast %cst_56 : f32 to vector<32x512xf32>
    %194 = arith.addf %193, %192 : vector<32x512xf32>
    %195 = arith.mulf %184, %194 : vector<32x512xf32>
    %cst_57 = arith.constant dense<0.000000e+00> : vector<512xf32>
    %196 = vector.multi_reduction <add>, %195, %cst_57 [0] : vector<32x512xf32> to vector<512xf32>
    %197 = vector.shape_cast %196 : vector<512xf32> to vector<1x512xf32>
    %198 = arith.mulf %195, %195 : vector<32x512xf32>
    %cst_58 = arith.constant dense<0.000000e+00> : vector<512xf32>
    %199 = vector.multi_reduction <add>, %198, %cst_58 [0] : vector<32x512xf32> to vector<512xf32>
    %200 = vector.shape_cast %199 : vector<512xf32> to vector<1x512xf32>
    %c32_i32_59 = arith.constant 32 : i32
    %201 = tpu.dynamic_rotate %197 by %c32_i32_59 dim 1 : vector<1x512xf32>, i32 -> vector<1x512xf32>
    %202 = arith.addf %197, %201 : vector<1x512xf32>
    %c64_i32_60 = arith.constant 64 : i32
    %203 = tpu.dynamic_rotate %202 by %c64_i32_60 dim 1 : vector<1x512xf32>, i32 -> vector<1x512xf32>
    %204 = arith.addf %202, %203 : vector<1x512xf32>
    %c128_i32_61 = arith.constant 128 : i32
    %205 = tpu.dynamic_rotate %204 by %c128_i32_61 dim 1 : vector<1x512xf32>, i32 -> vector<1x512xf32>
    %206 = arith.addf %204, %205 : vector<1x512xf32>
    %c256_i32_62 = arith.constant 256 : i32
    %207 = tpu.dynamic_rotate %206 by %c256_i32_62 dim 1 : vector<1x512xf32>, i32 -> vector<1x512xf32>
    %208 = arith.addf %206, %207 : vector<1x512xf32>
    %c32_i32_63 = arith.constant 32 : i32
    %209 = tpu.dynamic_rotate %200 by %c32_i32_63 dim 1 : vector<1x512xf32>, i32 -> vector<1x512xf32>
    %210 = arith.addf %200, %209 : vector<1x512xf32>
    %c64_i32_64 = arith.constant 64 : i32
    %211 = tpu.dynamic_rotate %210 by %c64_i32_64 dim 1 : vector<1x512xf32>, i32 -> vector<1x512xf32>
    %212 = arith.addf %210, %211 : vector<1x512xf32>
    %c128_i32_65 = arith.constant 128 : i32
    %213 = tpu.dynamic_rotate %212 by %c128_i32_65 dim 1 : vector<1x512xf32>, i32 -> vector<1x512xf32>
    %214 = arith.addf %212, %213 : vector<1x512xf32>
    %c256_i32_66 = arith.constant 256 : i32
    %215 = tpu.dynamic_rotate %214 by %c256_i32_66 dim 1 : vector<1x512xf32>, i32 -> vector<1x512xf32>
    %216 = arith.addf %214, %215 : vector<1x512xf32>
    %cst_67 = arith.constant 1.000000e+00 : f32
    %cst_68 = arith.constant 5.120000e+02 : f32
    %217 = arith.divf %cst_67, %cst_68 : f32
    %218 = vector.broadcast %217 : f32 to vector<1x512xf32>
    %219 = arith.mulf %208, %218 : vector<1x512xf32>
    %220 = vector.broadcast %217 : f32 to vector<1x512xf32>
    %221 = arith.mulf %216, %220 : vector<1x512xf32>
    %222 = arith.mulf %219, %219 : vector<1x512xf32>
    %223 = arith.subf %221, %222 : vector<1x512xf32>
    %cst_69 = arith.constant 0.000000e+00 : f32
    %224 = vector.broadcast %cst_69 : f32 to vector<1x512xf32>
    %225 = arith.maximumf %223, %224 : vector<1x512xf32>
    %cst_70 = arith.constant 9.99999974E-6 : f32
    %226 = vector.broadcast %cst_70 : f32 to vector<1x512xf32>
    %227 = arith.addf %225, %226 : vector<1x512xf32>
    %228 = math.rsqrt %227 : vector<1x512xf32>
    %229 = vector.broadcast %219 : vector<1x512xf32> to vector<32x512xf32>
    %230 = arith.subf %195, %229 : vector<32x512xf32>
    %231 = vector.broadcast %228 : vector<1x512xf32> to vector<32x512xf32>
    %232 = arith.mulf %230, %231 : vector<32x512xf32>
    %c13 = arith.constant 13 : index
    %c0_71 = arith.constant 0 : index
    %233 = vector.load %arg1[%c13, %c0_71] : memref<17x512xf32, #tpu.memory_space<vmem>>, vector<1x512xf32>
    %234 = vector.shape_cast %233 : vector<1x512xf32> to vector<512xf32>
    %235 = vector.shape_cast %234 : vector<512xf32> to vector<1x512xf32>
    %236 = arith.mulf %235, %235 : vector<1x512xf32>
    %237 = arith.mulf %225, %228 : vector<1x512xf32>
    %238 = arith.mulf %237, %228 : vector<1x512xf32>
    %239 = arith.mulf %236, %238 : vector<1x512xf32>
    %c15 = arith.constant 15 : index
    %c0_72 = arith.constant 0 : index
    %240 = vector.load %arg1[%c15, %c0_72] : memref<17x512xf32, #tpu.memory_space<vmem>>, vector<1x512xf32>
    %241 = vector.shape_cast %240 : vector<1x512xf32> to vector<512xf32>
    %242 = vector.shape_cast %241 : vector<512xf32> to vector<1x512xf32>
    %243 = arith.mulf %235, %242 : vector<1x512xf32>
    %cst_73 = arith.constant 9.99999974E-6 : f32
    %244 = vector.broadcast %cst_73 : f32 to vector<1x512xf32>
    %245 = arith.addf %239, %244 : vector<1x512xf32>
    %246 = math.rsqrt %245 : vector<1x512xf32>
    %247 = arith.mulf %243, %246 : vector<1x512xf32>
    %248 = vector.broadcast %247 : vector<1x512xf32> to vector<32x512xf32>
    %249 = arith.mulf %232, %248 : vector<32x512xf32>
    %c16 = arith.constant 16 : index
    %c0_74 = arith.constant 0 : index
    %250 = vector.load %arg1[%c16, %c0_74] : memref<17x512xf32, #tpu.memory_space<vmem>>, vector<1x512xf32>
    %251 = vector.shape_cast %250 : vector<1x512xf32> to vector<512xf32>
    %252 = vector.shape_cast %251 : vector<512xf32> to vector<1x512xf32>
    %253 = vector.broadcast %252 : vector<1x512xf32> to vector<32x512xf32>
    %254 = arith.addf %249, %253 : vector<32x512xf32>
    %c0_75 = arith.constant 0 : index
    %c0_76 = arith.constant 0 : index
    %255 = vector.load %arg3[%c0_75, %c0_76] : memref<32x512xf32, #tpu.memory_space<vmem>>, vector<32x512xf32>
    tpu.vector_store %arg3[%c0_75, %c0_76], %254 {strides = array<i32>} : memref<32x512xf32, #tpu.memory_space<vmem>>, vector<32x512xf32>,
    return
  }
}

</mosaic_0001>

<bundles_post_ra>
// kernel: tpu_custom_call.1
= control target key start
LH: loop header
LB: loop body
LE: loop exit
PB: predicated region body
PF: predicated region fallthrough
CT: control target
= control target key end

     0   :  { %8 = vsyncpa [#allocation3], 0  ;;  %s5087_s0 = inlined_call_operand.hbm [shape: f32[32,512], index: 0, kind: input, shape index: {}]   ;;  %s5088_s1 = inlined_call_operand.hbm [shape: f32[17,512], index: 1, kind: input, shape index: {}]   ;;  %s5089_s2 = inlined_call_operand.hbm [shape: f32[128,128], index: 2, kind: input, shape index: {}]   ;;  %s5090_s3 = inlined_call_operand.hbm [shape: f32[32,512], index: 3, kind: output, shape index: {}]  }
   0x1   :  { %9 = vsyncpa [#allocation6], 0 }
   0x2   :  { %10 = vsyncpa [#allocation4], 0  ;;  %s3008_s12 = smov [#allocation5]   ;;  %s3009_s14 = smov [#allocation2]  }
   0x3   :  { %s28_s13 = sshll.u32 %s3008_s12, 4  ;;  %s16_s15 = sshll.u32 %s3009_s14, 4  ;;  %s29_s13 = int_to_ptr.vmem [resolvable:$true] %s28_s13  ;;  %s3039_s15 = int_to_ptr.vmem [resolvable:$true] %s16_s15 }
   0x4   :  { %s2914_s18 = scalar_lea.hbm %s5088_s1, 1536 }
   0x5   :  { %p2915_p0 = scmp.ne.s32.totalorder %s5088_s1, %s2914_s18  ;;  %p2918_p1 = scmp.lt.u32.totalorder %s2914_s18, %s5088_s1 }
   0x7   :  { %p2920_p2 = pnand %p2918_p1, %p2915_p0 }
   0x9   :  { %2923 = shalt.err (!%p2920_p2)
}
   0xa   :  { %s2924_s23 = scalar_lea.vmem %s29_s13, 1536  ;;  %p2929_p4 = scmp.lt.s32.totalorder %s29_s13, %s29_s13 }
   0xb   :  { %p2925_p3 = scmp.ne.s32.totalorder %s29_s13, %s2924_s23  ;;  %p2930_p5 = scmp.lt.s32.totalorder %s2924_s23, %s2924_s23 }
   0xd   :  { %p2931_p6 = por %p2930_p5, %p2929_p4 }
   0xf   :  { %p2932_p7 = pnand %p2931_p6, %p2925_p3 }
  0x11   :  { %2935 = shalt.err (!%p2932_p7)
}
  0x12   :  { %s3010_s24 = smov 512   ;;  %s3011_s25 = smov 32  }
  0x13   :  { %34 = dma.hbm_to_vmem [thread:$0]  %s5088_s1, 1536, %s29_s13, [#allocation6], %s3010_s24, %s3010_s24, %s3011_s25  }
  0x14   :  { %s2936_s30 = scalar_lea.hbm %s5087_s0, 2048 }
  0x15   :  { %p2937_p8 = scmp.ne.s32.totalorder %s5087_s0, %s2936_s30  ;;  %p2940_p9 = scmp.lt.u32.totalorder %s2936_s30, %s5087_s0 }
  0x17   :  { %p2942_p10 = pnand %p2940_p9, %p2937_p8 }
  0x19   :  { %2945 = shalt.err (!%p2942_p10)
}
  0x1a   :  { %s2946_s8 = scalar_lea.vmem %s3039_s15, 2048  ;;  %p2951_p12 = scmp.lt.s32.totalorder %s3039_s15, %s3039_s15 }
  0x1b   :  { %p2947_p11 = scmp.ne.s32.totalorder %s3039_s15, %s2946_s8  ;;  %p2952_p13 = scmp.lt.s32.totalorder %s2946_s8, %s2946_s8 }
  0x1d   :  { %p2953_p0 = por %p2952_p13, %p2951_p12 }
  0x1f   :  { %p2954_p1 = pnand %p2953_p0, %p2947_p11 }
  0x21   :  { %2957 = shalt.err (!%p2954_p1)
}
  0x22   :  { %22 = dma.hbm_to_vmem [thread:$0]  %s5087_s0, 2048, %s3039_s15, [#allocation3], %s3010_s24, %s3010_s24, %s3011_s25  }
  0x23   :  { %s3012_s10 = smov [#allocation7]   ;;  %s2958_s14 = scalar_lea.hbm %s5089_s2, 2048 }
  0x24   :  { %s40_s11 = sshll.u32 %s3012_s10, 4  ;;  %p2959_p2 = scmp.ne.s32.totalorder %s5089_s2, %s2958_s14  ;;  %s41_s11 = int_to_ptr.vmem [resolvable:$true] %s40_s11 }
  0x25   :  { %p2962_p3 = scmp.lt.u32.totalorder %s2958_s14, %s5089_s2 }
  0x27   :  { %p2964_p4 = pnand %p2962_p3, %p2959_p2 }
  0x29   :  { %2967 = shalt.err (!%p2964_p4)
}
  0x2a   :  { %s2968_s20 = scalar_lea.vmem %s41_s11, 2048  ;;  %p2973_p6 = scmp.lt.s32.totalorder %s41_s11, %s41_s11 }
  0x2b   :  { %p2969_p5 = scmp.ne.s32.totalorder %s41_s11, %s2968_s20  ;;  %p2974_p7 = scmp.lt.s32.totalorder %s2968_s20, %s2968_s20 }
  0x2d   :  { %p2975_p8 = por %p2974_p7, %p2973_p6 }
  0x2f   :  { %p2976_p9 = pnand %p2975_p8, %p2969_p5 }
  0x31   :  { %2979 = shalt.err (!%p2976_p9)
}
  0x32   :  { %s3013_s0 = smov 128   ;;  %s3014_s15 = smov 8  }
  0x33   :  { %46 = dma.hbm_to_vmem [thread:$0]  %s5089_s2, 2048, %s41_s11, [#allocation6], %s3013_s0, %s3013_s0, %s3014_s15  }
  0x34   :  { %3002 = dma.done.wait [#allocation3], 2048  }
  0x35   :  { %3003 = vsyncadd [#allocation3], 4294965248 }
  0x36   :  { %3004 = dma.done.wait [#allocation6], 3584  }
  0x37   :  { %3005 = vsyncadd [#allocation6], 4294963712  ;;  %v5091_v0 = vlaneseq  ;;  %v3092_v3 = vld [vmem:[#allocation2 + $0x8] sm:$0xff]  ;;  %v3099_v8 = vld [vmem:[#allocation2] sm:$0xff]  ;;  %s3015_s2 = smov 96   ;;  %s3016_s23 = smov 64  }
  0x38   :  { %5144 = vst [vmem:[#allocation13_spill] sm:$0xff] %v3092_v3  ;;  %v3094_v4 = vld [vmem:[#allocation2 + $0x28] sm:$0xff]  ;;  %v126_v6 = vrot.slane %v3092_v3, 7  ;;  %5146 = vst [vmem:[#allocation15_spill] sm:$0xff] %v3099_v8  ;;  %v3101_v9 = vld [vmem:[#allocation2 + $0x20] sm:$0xff]  ;;  %v125_v11 = vrot.slane %v3099_v8, 7 }
  0x39   :  { %v3089_v1 = vshrl.u32 %v5091_v0, 7  ;;  %5145 = vst [vmem:[#allocation14_spill] sm:$0xff] %v3094_v4  ;;  %v130_v7 = vrot.slane %v3094_v4, 7  ;;  %5147 = vst [vmem:[#allocation16_spill] sm:$0xff] %v3101_v9  ;;  %v3103_v10 = vld [vmem:[#allocation2 + $0x10] sm:$0xff]  ;;  %v129_v12 = vrot.slane %v3101_v9, 7 }
  0x3a   :  { %5148 = vst [vmem:[#allocation17_spill] sm:$0xff] %v3103_v10  ;;  %v3107_v13 = vld [vmem:[#allocation2 + $0x30] sm:$0xff]  ;;  %v127_v14 = vrot.slane %v3103_v10, 7  ;;  %v3110_v15 = vld [vmem:[#allocation2 + $0x60] sm:$0xff]  ;;  %v3112_v16 = vld [vmem:[#allocation2 + $0x18] sm:$0xff]  ;;  %s3018_s26 = smov [#allocation8]  }
  0x3b   :  { %5143 = vst [vmem:[#allocation12_spill] sm:$0xff] %v3089_v1  ;;  %v81_v2 = vand.u32 15, %v3089_v1  ;;  %vm141_vm0 = vcmp.lt.s32.totalorder %v3089_v1, 1  ;;  %5149 = vst [vmem:[#allocation18_spill] sm:$0xff] %v3107_v13  ;;  %v131_v18 = vrot.slane %v3107_v13, 7  ;;  %v137_v19 = vrot.slane %v3110_v15, 7 }
  0x3c   :  { %5150 = vst [vmem:[#allocation19_spill] sm:$0xff] %v3112_v16  ;;  %v3116_v17 = vsel %vm141_vm0, %v126_v6, %v130_v7  ;;  %v3120_v20 = vld [vmem:[#allocation2 + $0x38] sm:$0xff]  ;;  %v3122_v21 = vld [vmem:[#allocation2 + $0x70] sm:$0xff]  ;;  %v3128_v22 = vsel %vm141_vm0, %v125_v11, %v129_v12  ;;  %v3130_v23 = vld [vmem:[#allocation2 + $0x68] sm:$0xff]  ;;  %v75_v25 = vadd.s32 16, %v3089_v1  ;;  %v128_v28 = vrot.slane %v3112_v16, 7 }
  0x3d   :  { %v158_v5 = vadd.s32 4294967295, %v81_v2  ;;  %5151 = vst [vmem:[#allocation20_spill] sm:$0xff] %v3120_v20  ;;  %200 = vrot.lane.b32.xlu1 %v3116_v17, %s3011_s25  ;;  %v3132_v24 = vld [vmem:[#allocation2 + $0x78] sm:$0xff]  ;;  %192 = vrot.lane.b32.xlu0 %v3128_v22, %s3011_s25  ;;  %v3139_v26 = vsel %vm141_vm0, %v127_v14, %v131_v18  ;;  %v154_v27 = vsel %vm141_vm0, %v137_v19, %v125_v11  ;;  %v132_v29 = vrot.slane %v3120_v20, 7  ;;  %v3153_v34 = vld [vmem:[#allocation2 + $0x48] sm:$0xff]  ;;  %v3159_v37 = vld [vmem:[#allocation2 + $0x40] sm:$0xff] }
  0x3e   :  { %v139_v31 = vrot.slane %v3122_v21, 7  ;;  %v138_v32 = vrot.slane %v3130_v23, 7  ;;  %v140_v33 = vrot.slane %v3132_v24, 7  ;;  %5152 = vst [vmem:[#allocation21_spill] sm:$0xff] %v3153_v34  ;;  %v95_v36 = vand.u32 15, %v75_v25  ;;  %5153 = vst [vmem:[#allocation22_spill] sm:$0xff] %v3159_v37 }
  0x3f   :  { %vm162_vm1 = vcmp.ge.s32.totalorder %v158_v5, 0  ;;  %v3165_v38 = vsel %vm141_vm0, %v128_v28, %v132_v29  ;;  %v134_v41 = vrot.slane %v3153_v34, 7  ;;  %v133_v44 = vrot.slane %v3159_v37, 7  ;;  %v3176_v45 = vld [vmem:[#allocation2 + $0x58] sm:$0xff]  ;;  %v3180_v46 = vld [vmem:[#allocation2 + $0x50] sm:$0xff]  ;;  %s2436_s27 = sshll.u32 %s3018_s26, 4  ;;  %s2437_s27 = int_to_ptr.vmem [resolvable:$true] %s2436_s27 }
  0x40   :  { %v3148_v30 = vsel %vm162_vm1, %v154_v27, 0.0  ;;  %v156_v35 = vsel %vm141_vm0, %v139_v31, %v127_v14  ;;  %v155_v40 = vsel %vm141_vm0, %v138_v32, %v126_v6  ;;  %v157_v42 = vsel %vm141_vm0, %v140_v33, %v128_v28  ;;  %5154 = vst [vmem:[#allocation23_spill] sm:$0xff] %v3176_v45  ;;  %5155 = vst [vmem:[#allocation24_spill] sm:$0xff] %v3180_v46  ;;  %s2980_s28 = scalar_lea.vmem %s2437_s27, 2048  ;;  %p2985_p11 = scmp.lt.s32.totalorder %s2437_s27, %s2437_s27 }
  0x41   :  { %208 = vrot.lane.b32.xlu1 %v3139_v26, %s3011_s25  ;;  %190 = vrot.lane.b32.xlu0 %v3148_v30, %s3011_s25  ;;  %v3168_v39 = vsel %vm162_vm1, %v156_v35, 0.0  ;;  %v160_v43 = vadd.s32 4294967295, %v95_v36  ;;  %v3185_v47 = vsel %vm162_vm1, %v155_v40, 0.0  ;;  %v3188_v48 = vsel %vm162_vm1, %v157_v42, 0.0  ;;  %p2981_p10 = scmp.ne.s32.totalorder %s2437_s27, %s2980_s28  ;;  %p2986_p12 = scmp.lt.s32.totalorder %s2980_s28, %s2980_s28 }
  0x42   :  { %v147_v49 = vsel %vm141_vm0, %v130_v7, %v134_v41  ;;  %v136_v50 = vrot.slane %v3176_v45, 7  ;;  %v146_v51 = vsel %vm141_vm0, %v129_v12, %v133_v44  ;;  %v135_v52 = vrot.slane %v3180_v46, 7 }
  0x43   :  { %vm164_vm2 = vcmp.ge.s32.totalorder %v160_v43, 0  ;;  %v3238_v59 = vsel %vm141_vm0, %v134_v41, %v138_v32  ;;  %v3244_v60 = vsel %vm141_vm0, %v133_v44, %v137_v19  ;;  %v74_v63 = vadd.s32 8, %v3089_v1  ;;  %p2987_p13 = por %p2986_p12, %p2985_p11 }
  0x44   :  { %v3200_v53 = vsel %vm164_vm2, %v147_v49, 0.0  ;;  %v3202_v54 = vsel %vm164_vm2, %v146_v51, 0.0  ;;  %v149_v55 = vsel %vm141_vm0, %v132_v29, %v136_v50  ;;  %v148_v56 = vsel %vm141_vm0, %v131_v18, %v135_v52 }
  0x45   :  { %216 = vrot.lane.b32.xlu1 %v3165_v38, %s3011_s25  ;;  %206 = vrot.lane.b32.xlu0 %v3168_v39, %s3011_s25  ;;  %5156 = vst [vmem:[#allocation25_spill] sm:$0xff] %v3202_v54  ;;  %v3212_v57 = vsel %vm164_vm2, %v149_v55, 0.0  ;;  %v3214_v58 = vsel %vm164_vm2, %v148_v56, 0.0  ;;  %v3252_v61 = vsel %vm141_vm0, %v136_v50, %v140_v33  ;;  %v3256_v62 = vsel %vm141_vm0, %v135_v52, %v139_v31  ;;  %p2988_p0 = pnand %p2987_p13, %p2981_p10 }
  0x46   :  { %5157 = vst [vmem:[#allocation26_spill] sm:$0xff] %v3212_v57  ;;  %5158 = vst [vmem:[#allocation27_spill] sm:$0xff] %v3214_v58  ;;  %v88_v2 = vand.u32 15, %v74_v63  ;;  %v719_v5 = vrot.slane %v3101_v9, 1  ;;  %v5093_v6 = vrot.slane %v3159_v37, 1  ;;  %vm731_vm3 = vcmp.lt.s32.totalorder %v3089_v1, 7 }
  0x47   :  { %5159 = vst [vmem:[#allocation28_spill] sm:$0xff] %v3252_v61  ;;  %5160 = vst [vmem:[#allocation29_spill] sm:$0xff] %v3256_v62  ;;  %v5092_v11 = vrot.slane %v3099_v8, 1  ;;  %v720_v18 = vrot.slane %v3094_v4, 1  ;;  %v724_v19 = vrot.slane %v3153_v34, 1  ;;  %v716_v28 = vrot.slane %v3092_v3, 1 }
  0x48   :  { %v749_v7 = vadd.s32 1, %v88_v2  ;;  %v736_v14 = vsel %vm731_vm3, %v719_v5, %v5093_v6  ;;  %v721_v33 = vrot.slane %v3107_v13, 1  ;;  %v725_v35 = vrot.slane %v3180_v46, 1 }
  0x49   :  { %198 = vrot.lane.b32.xlu1 %v3185_v47, %s3011_s25  ;;  %214 = vrot.lane.b32.xlu0 %v3188_v48, %s3011_s25  ;;  %v3359_v31 = vsel %vm731_vm3, %v5092_v11, %v719_v5  ;;  %v737_v32 = vsel %vm731_vm3, %v720_v18, %v724_v19  ;;  %v3376_v41 = vsel %vm731_vm3, %v716_v28, %v720_v18  ;;  %v717_v44 = vrot.slane %v3103_v10, 1 }
  0x4a   :  { %vm757_vm4 = vcmp.lt.s32.totalorder %v749_v7, 16  ;;  %5162 = vst [vmem:[#allocation31_spill] sm:$0xff] %v3359_v31  ;;  %5164 = vst [vmem:[#allocation33_spill] sm:$0xff] %v3376_v41  ;;  %v738_v43 = vsel %vm731_vm3, %v721_v33, %v725_v35  ;;  %v722_v49 = vrot.slane %v3120_v20, 1  ;;  %v726_v50 = vrot.slane %v3176_v45, 1 }
  0x4b   :  { %v3350_v27 = vsel %vm757_vm4, %v736_v14, 0.0  ;;  %v3372_v40 = vsel %vm757_vm4, %v737_v32, 0.0  ;;  %v3392_v52 = vsel %vm757_vm4, %v738_v43, 0.0  ;;  %v3398_v56 = vsel %vm731_vm3, %v717_v44, %v721_v33 }
  0x4c   :  { %5161 = vst [vmem:[#allocation30_spill] sm:$0xff] %v3350_v27  ;;  %5163 = vst [vmem:[#allocation32_spill] sm:$0xff] %v3372_v40  ;;  %v739_v63 = vsel %vm731_vm3, %v722_v49, %v726_v50  ;;  %v718_v2 = vrot.slane %v3112_v16, 1  ;;  %v76_v7 = vadd.s32 24, %v3089_v1  ;;  %v727_v11 = vrot.slane %v3110_v15, 1 }
  0x4d   :  { %202 = vrot.lane.b32.xlu1 %v3200_v53, %s3011_s25  ;;  %194 = vrot.lane.b32.xlu0 %v3202_v54, %s3011_s25  ;;  %5165 = vst [vmem:[#allocation34_spill] sm:$0xff] %v3392_v52  ;;  %5166 = vst [vmem:[#allocation35_spill] sm:$0xff] %v3398_v56  ;;  %v3410_v14 = vsel %vm757_vm4, %v739_v63, 0.0 }
  0x4e   :  { %v3416_v32 = vsel %vm731_vm3, %v718_v2, %v722_v49  ;;  %v728_v49 = vrot.slane %v3130_v23, 1  ;;  %v102_v6 = vand.u32 15, %v76_v7  ;;  %v729_v7 = vrot.slane %v3122_v21, 1 }
  0x51   :  { %218 = vrot.lane.b32.xlu1 %v3212_v57, %s3011_s25  ;;  %210 = vrot.lane.b32.xlu0 %v3214_v58, %s3011_s25 }
  0x55   :  { %352 = vrot.lane.b32.xlu1 %v3128_v22, %s3015_s2  ;;  %350 = vrot.lane.b32.xlu0 %v3148_v30, %s3015_s2 }
  0x59   :  { %360 = vrot.lane.b32.xlu1 %v3116_v17, %s3015_s2  ;;  %358 = vrot.lane.b32.xlu0 %v3185_v47, %s3015_s2 }
  0x5d   :  { %368 = vrot.lane.b32.xlu1 %v3139_v26, %s3015_s2  ;;  %366 = vrot.lane.b32.xlu0 %v3168_v39, %s3015_s2 }
  0x61   :  { %376 = vrot.lane.b32.xlu1 %v3165_v38, %s3015_s2  ;;  %374 = vrot.lane.b32.xlu0 %v3188_v48, %s3015_s2 }
  0x65   :  { %204 = vrot.lane.b32.xlu1 %v3238_v59, %s3011_s25  ;;  %196 = vrot.lane.b32.xlu0 %v3244_v60, %s3011_s25 }
  0x69   :  { %220 = vrot.lane.b32.xlu1 %v3252_v61, %s3011_s25  ;;  %212 = vrot.lane.b32.xlu0 %v3256_v62, %s3011_s25 }
  0x6d   :  { %362 = vrot.lane.b32.xlu1 %v3200_v53, %s3015_s2  ;;  %354 = vrot.lane.b32.xlu0 %v3202_v54, %s3015_s2 }
  0x71   :  { %378 = vrot.lane.b32.xlu1 %v3212_v57, %s3015_s2  ;;  %370 = vrot.lane.b32.xlu0 %v3214_v58, %s3015_s2 }
  0x75   :  { %456 = vrot.lane.b32.xlu1 %v3101_v9, %s3011_s25  ;;  %454 = vrot.lane.b32.xlu0 %v3099_v8, %s3011_s25 }
  0x79   :  { %464 = vrot.lane.b32.xlu1 %v3094_v4, %s3011_s25  ;;  %462 = vrot.lane.b32.xlu0 %v3092_v3, %s3011_s25 }
  0x7d   :  { %472 = vrot.lane.b32.xlu1 %v3107_v13, %s3011_s25  ;;  %470 = vrot.lane.b32.xlu0 %v3103_v10, %s3011_s25 }
  0x81   :  { %480 = vrot.lane.b32.xlu1 %v3120_v20, %s3011_s25  ;;  %478 = vrot.lane.b32.xlu0 %v3112_v16, %s3011_s25 }
  0x85   :  { %364 = vrot.lane.b32.xlu1 %v3238_v59, %s3015_s2  ;;  %356 = vrot.lane.b32.xlu0 %v3244_v60, %s3015_s2 }
  0x89   :  { %380 = vrot.lane.b32.xlu1 %v3252_v61, %s3015_s2  ;;  %372 = vrot.lane.b32.xlu0 %v3256_v62, %s3015_s2 }
  0x8d   :  { %466 = vrot.lane.b32.xlu1 %v3153_v34, %s3011_s25  ;;  %458 = vrot.lane.b32.xlu0 %v3159_v37, %s3011_s25 }
  0x91   :  { %482 = vrot.lane.b32.xlu1 %v3176_v45, %s3011_s25  ;;  %474 = vrot.lane.b32.xlu0 %v3180_v46, %s3011_s25 }
  0x95   :  { %468 = vrot.lane.b32.xlu1 %v3130_v23, %s3011_s25  ;;  %460 = vrot.lane.b32.xlu0 %v3110_v15, %s3011_s25 }
  0x99   :  { %484 = vrot.lane.b32.xlu1 %v3132_v24, %s3011_s25  ;;  %476 = vrot.lane.b32.xlu0 %v3122_v21, %s3011_s25 }
  0x9d   :  { %614 = vrot.lane.b32.xlu1 %v3101_v9, %s3015_s2  ;;  %612 = vrot.lane.b32.xlu0 %v3099_v8, %s3015_s2  ;;  %v5178_v9 = vlaneseq }
  0xa1   :  { %622 = vrot.lane.b32.xlu1 %v3094_v4, %s3015_s2  ;;  %620 = vrot.lane.b32.xlu0 %v3092_v3, %s3015_s2 }
  0xa5   :  { %630 = vrot.lane.b32.xlu1 %v3107_v13, %s3015_s2  ;;  %628 = vrot.lane.b32.xlu0 %v3103_v10, %s3015_s2  ;;  %v751_v10 = vadd.s32 1, %v102_v6 }
  0xa7   :  { %vm759_vm5 = vcmp.lt.s32.totalorder %v751_v10, 16 }
  0xa9   :  { %638 = vrot.lane.b32.xlu1 %v3120_v20, %s3015_s2  ;;  %636 = vrot.lane.b32.xlu0 %v3112_v16, %s3015_s2  ;;  %v5169_v16 = vrot.slane %v3159_v37, 1 }
  0xad   :  { %624 = vrot.lane.b32.xlu1 %v3153_v34, %s3015_s2  ;;  %616 = vrot.lane.b32.xlu0 %v3159_v37, %s3015_s2  ;;  %v3445_v34 = vsel %vm731_vm3, %v724_v19, %v728_v49  ;;  %v5170_v37 = vrot.slane %v3099_v8, 1 }
  0xaf   :  { %v3335_v12 = vpop.permute.xlu1 %200  ;;  %v3343_v25 = vpop.permute.xlu0 %192  ;;  %v744_v13 = vsel %vm731_vm3, %v727_v11, %v5170_v37  ;;  %v746_v37 = vsel %vm731_vm3, %v729_v7, %v717_v44  ;;  %v3516_v44 = vsub.s32 3, %v3089_v1 }
  0xb0   :  { %v3521_v4 = vsel %vm759_vm5, %v746_v37, 0.0 }
  0xb1   :  { %640 = vrot.lane.b32.xlu1 %v3176_v45, %s3015_s2  ;;  %632 = vrot.lane.b32.xlu0 %v3180_v46, %s3015_s2  ;;  %v730_v45 = vrot.slane %v3132_v24, 1  ;;  %5176 = vst [vmem:[#allocation43_spill] sm:$0xff] %v3516_v44  ;;  %5177 = vst [vmem:[#allocation44_spill] sm:$0xff] %v3521_v4 }
  0xb3   :  { %v3353_v29 = vpop.permute.xlu1 %208  ;;  %v3365_v36 = vpop.permute.xlu0 %190 }
  0xb5   :  { %782 = vrot.lane.b32.xlu1 %v3350_v27, %s3011_s25  ;;  %780 = vrot.lane.b32.xlu0 %v3359_v31, %s3011_s25 }
  0xb7   :  { %v3378_v42 = vpop.permute.xlu1 %216  ;;  %v3385_v51 = vpop.permute.xlu0 %206 }
  0xb9   :  { %790 = vrot.lane.b32.xlu1 %v3372_v40, %s3011_s25  ;;  %788 = vrot.lane.b32.xlu0 %v3376_v41, %s3011_s25 }
  0xbb   :  { %v3394_v55 = vpop.permute.xlu1 %198  ;;  %v3403_v5 = vpop.permute.xlu0 %214 }
  0xbd   :  { %798 = vrot.lane.b32.xlu1 %v3392_v52, %s3011_s25  ;;  %796 = vrot.lane.b32.xlu0 %v3398_v56, %s3011_s25 }
  0xbf   :  { %v3412_v18 = vpop.permute.xlu1 %202  ;;  %v3418_v33 = vpop.permute.xlu0 %194 }
  0xc1   :  { %806 = vrot.lane.b32.xlu1 %v3410_v14, %s3011_s25  ;;  %804 = vrot.lane.b32.xlu0 %v3416_v32, %s3011_s25 }
  0xc3   :  { %v3424_v43 = vpop.permute.xlu1 %218  ;;  %v3427_v63 = vpop.permute.xlu0 %210 }
  0xc4   :  { %5167 = vst [vmem:[#allocation36_spill] sm:$0xff] %v3424_v43  ;;  %5168 = vst [vmem:[#allocation37_spill] sm:$0xff] %v3427_v63  ;;  %v3526_v63 = vand.u32 127, %v5178_v9  ;;  %v241_v9 = vld [vmem:[#allocation5] ss:$8 sm:$0xf] }
  0xc5   :  { %626 = vrot.lane.b32.xlu1 %v3130_v23, %s3015_s2  ;;  %618 = vrot.lane.b32.xlu0 %v3110_v15, %s3015_s2  ;;  %v3454_v15 = vsel %vm731_vm3, %v5169_v16, %v727_v11  ;;  %v3471_v16 = vsel %vm731_vm3, %v725_v35, %v729_v7  ;;  %v3502_v11 = vsub.s32 1, %v3089_v1 }
  0xc6   :  { %vm224_vm6 = vcmp.lt.s32.totalorder %v3526_v63, 32  ;;  %vm382_vm7 = vcmp.lt.s32.totalorder %v3526_v63, 96  ;;  %vm1336_vm8 = vcmp.lt.s32.totalorder %v3526_v63, 64 }
  0xc7   :  { %v3434_v0 = vpop.permute.xlu1 %352  ;;  %v3437_v46 = vpop.permute.xlu0 %350  ;;  %5172 = vst [vmem:[#allocation39_spill] sm:$0xff] %v3502_v11  ;;  %v3564_v57 = vrot.slane %v241_v9, %v3502_v11  ;;  %v230_v54 = vsel %vm224_vm6, %v3335_v12, %v3353_v29 }
  0xc9   :  { %642 = vrot.lane.b32.xlu1 %v3132_v24, %s3015_s2  ;;  %634 = vrot.lane.b32.xlu0 %v3122_v21, %s3015_s2  ;;  %v3465_v24 = vsel %vm731_vm3, %v726_v50, %v730_v45  ;;  %v745_v21 = vsel %vm731_vm3, %v728_v49, %v716_v28  ;;  %v3491_v28 = vsel %vm759_vm5, %v744_v13, 0.0  ;;  %v747_v49 = vsel %vm731_vm3, %v730_v45, %v718_v2  ;;  %v296_v45 = vld [vmem:[#allocation5 + $0x1] ss:$8 sm:$0xf] }
  0xca   :  { %v3486_v35 = vsel %vm759_vm5, %v745_v21, 0.0  ;;  %5171 = vst [vmem:[#allocation38_spill] sm:$0xff] %v3491_v28  ;;  %v3505_v21 = vsub.s32 0, %v3089_v1  ;;  %v3510_v13 = vsel %vm759_vm5, %v747_v49, 0.0  ;;  %v3513_v2 = vsub.s32 2, %v3089_v1 }
  0xcb   :  { %v3448_v23 = vpop.permute.xlu1 %360  ;;  %v3457_v20 = vpop.permute.xlu0 %358  ;;  %5174 = vst [vmem:[#allocation41_spill] sm:$0xff] %v3510_v13  ;;  %v305_v49 = vrot.slane %v296_v45, %v3502_v11  ;;  %v3540_v37 = vrot.slane %v296_v45, %v3516_v44 }
  0xcc   :  { %5173 = vst [vmem:[#allocation40_spill] sm:$0xff] %v3505_v21  ;;  %5175 = vst [vmem:[#allocation42_spill] sm:$0xff] %v3513_v2  ;;  %v3532_v43 = vrot.slane %v296_v45, %v3505_v21  ;;  %v3537_v10 = vrot.slane %v296_v45, %v3513_v2 }
  0xcd   :  { %792 = vrot.lane.b32.xlu1 %v3445_v34, %s3011_s25  ;;  %784 = vrot.lane.b32.xlu0 %v3454_v15, %s3011_s25  ;;  %5179 = vst [vmem:[#allocation45_spill] sm:$0xff] %v3540_v37 }
  0xce   :  { %v324_v45 = vmul.f32 %v3537_v10, %v3139_v26  ;;  %v3559_v61 = vmul.f32 %v3532_v43, %v3148_v30  ;;  %v3576_v26 = vrot.slane %v241_v9, %v3505_v21  ;;  %v3579_v30 = vrot.slane %v241_v9, %v3516_v44 }
  0xcf   :  { %v3467_v19 = vpop.permute.xlu1 %368  ;;  %v3475_v6 = vpop.permute.xlu0 %366 }
  0xd1   :  { %808 = vrot.lane.b32.xlu1 %v3465_v24, %s3011_s25  ;;  %800 = vrot.lane.b32.xlu0 %v3471_v16, %s3011_s25 }
  0xd3   :  { %v3488_v50 = vpop.permute.xlu1 %376  ;;  %v3495_v3 = vpop.permute.xlu0 %374 }
  0xd5   :  { %794 = vrot.lane.b32.xlu1 %v3486_v35, %s3011_s25  ;;  %786 = vrot.lane.b32.xlu0 %v3491_v28, %s3011_s25  ;;  %v226_v28 = vsel %vm224_vm6, %v3353_v29, %v3378_v42  ;;  %v3611_v29 = vmul.f32 %v3532_v43, %v3244_v60 }
  0xd7   :  { %v3518_v7 = vpop.permute.xlu1 %204  ;;  %v3523_v8 = vpop.permute.xlu0 %196  ;;  %5183 = vst [vmem:[#allocation49_spill] sm:$0xff] %v3611_v29 }
  0xd9   :  { %810 = vrot.lane.b32.xlu1 %v3510_v13, %s3011_s25  ;;  %802 = vrot.lane.b32.xlu0 %v3521_v4, %s3011_s25  ;;  %v323_v4 = vmul.f32 %v305_v49, %v3116_v17  ;;  %v322_v13 = vmul.f32 %v3532_v43, %v3128_v22  ;;  %v234_v22 = vsel %vm224_vm6, %v3343_v25, %v3335_v12 }
  0xda   :  { %v3607_v12 = vmul.f32 %v305_v49, %v3238_v59 }
  0xdb   :  { %v3542_v1 = vpop.permute.xlu1 %220  ;;  %v3544_v58 = vpop.permute.xlu0 %212 }
  0xdc   :  { %5182 = vst [vmem:[#allocation48_spill] sm:$0xff] %v3607_v12 }
  0xdd   :  { %940 = vrot.lane.b32.xlu1 %v3350_v27, %s3015_s2  ;;  %938 = vrot.lane.b32.xlu0 %v3359_v31, %s3015_s2  ;;  %v325_v27 = vmul.f32 %v3540_v37, %v3165_v38  ;;  %v3573_v31 = vrot.slane %v241_v9, %v3513_v2  ;;  %v400_v38 = vld [vmem:[#allocation5 + $0x2] ss:$8 sm:$0xf]  ;;  %v238_v9 = vsel %vm224_vm6, %v3378_v42, %v3343_v25  ;;  %v503_v25 = vld [vmem:[#allocation5 + $0x3] ss:$8 sm:$0xf] }
  0xde   :  { %v3616_v42 = vmul.f32 %v305_v49, %v3200_v53  ;;  %v267_v12 = vmul.f32 %v3576_v26, %v238_v9  ;;  %v233_v53 = vsel %vm224_vm6, %v3365_v36, %v3394_v55  ;;  %v3640_v29 = vrot.slane %v400_v38, %v3516_v44 }
  0xdf   :  { %v3566_v17 = vpop.permute.xlu1 %362  ;;  %v3581_v62 = vpop.permute.xlu0 %354  ;;  %v269_v60 = vmul.f32 %v3573_v31, %v230_v54  ;;  %v3645_v54 = vrot.slane %v503_v25, %v3502_v11  ;;  %v229_v9 = vsel %vm224_vm6, %v3394_v55, %v3385_v51  ;;  %v225_v55 = vsel %vm224_vm6, %v3385_v51, %v3403_v5 }
  0xe0   :  { %5180 = vst [vmem:[#allocation46_spill] sm:$0xff] %v3566_v17  ;;  %5181 = vst [vmem:[#allocation47_spill] sm:$0xff] %v3581_v62  ;;  %v3585_v17 = vmul.f32 %v3537_v10, %v3168_v39  ;;  %v319_v39 = vmul.f32 %v305_v49, %v3185_v47  ;;  %v3604_v62 = vmul.f32 %v3540_v37, %v3188_v48 }
  0xe1   :  { %948 = vrot.lane.b32.xlu1 %v3372_v40, %s3015_s2  ;;  %946 = vrot.lane.b32.xlu0 %v3376_v41, %s3015_s2  ;;  %5184 = vst [vmem:[#allocation50_spill] sm:$0xff] %v3616_v42  ;;  %v268_v47 = vmul.f32 %v3564_v57, %v234_v22  ;;  %v3620_v40 = vrot.slane %v400_v38, %v3505_v21 }
  0xe2   :  { %v3623_v48 = vrot.slane %v400_v38, %v3502_v11  ;;  %v270_v41 = vmul.f32 %v3579_v30, %v226_v28  ;;  %v3637_v22 = vrot.slane %v400_v38, %v3513_v2  ;;  %v3648_v28 = vrot.slane %v503_v25, %v3513_v2 }
  0xe3   :  { %v3625_v59 = vpop.permute.xlu1 %378  ;;  %v3634_v49 = vpop.permute.xlu0 %370  ;;  %v388_v38 = vsel %vm382_vm7, %v3448_v23, %v3467_v19  ;;  %v3664_v11 = vrot.slane %v503_v25, %v3516_v44  ;;  %v264_v2 = vmul.f32 %v3564_v57, %v233_v53  ;;  %v340_v44 = vadd.f32 %v324_v45, %v269_v60 }
  0xe4   :  { %5185 = vst [vmem:[#allocation51_spill] sm:$0xff] %v3625_v59  ;;  %5186 = vst [vmem:[#allocation52_spill] sm:$0xff] %v3634_v49  ;;  %v237_v59 = vsel %vm224_vm6, %v3403_v5, %v3365_v36  ;;  %v338_v53 = vadd.f32 %v322_v13, %v267_v12  ;;  %v341_v49 = vadd.f32 %v325_v27, %v270_v41 }
  0xe5   :  { %956 = vrot.lane.b32.xlu1 %v3392_v52, %s3015_s2  ;;  %954 = vrot.lane.b32.xlu0 %v3398_v56, %s3015_s2  ;;  %v3661_v52 = vrot.slane %v503_v25, %v3505_v21  ;;  %v387_v56 = vsel %vm382_vm7, %v3457_v20, %v3475_v6  ;;  %v339_v25 = vadd.f32 %v323_v4, %v268_v47 }
  0xe6   :  { %v265_v51 = vmul.f32 %v3573_v31, %v229_v9  ;;  %v392_v36 = vsel %vm382_vm7, %v3434_v0, %v3448_v23  ;;  %v391_v5 = vsel %vm382_vm7, %v3437_v46, %v3457_v20  ;;  %v427_v37 = vmul.f32 %v3623_v48, %v388_v38 }
  0xe7   :  { %v3679_v21 = vpop.permute.xlu1 %456  ;;  %v3681_v42 = vpop.permute.xlu0 %454  ;;  %v263_v4 = vmul.f32 %v3576_v26, %v237_v59  ;;  %v266_v27 = vmul.f32 %v3579_v30, %v225_v55  ;;  %v423_v41 = vmul.f32 %v3623_v48, %v387_v56  ;;  %v384_v23 = vsel %vm382_vm7, %v3467_v19, %v3488_v50 }
  0xe8   :  { %v335_v20 = vadd.f32 %v319_v39, %v264_v2  ;;  %v235_v13 = vsel %vm224_vm6, %v3418_v33, %v3412_v18  ;;  %v396_v45 = vsel %vm382_vm7, %v3488_v50, %v3434_v0  ;;  %v383_v56 = vsel %vm382_vm7, %v3475_v6, %v3495_v3 }
  0xe9   :  { %964 = vrot.lane.b32.xlu1 %v3410_v14, %s3015_s2  ;;  %962 = vrot.lane.b32.xlu0 %v3416_v32, %s3015_s2  ;;  %v426_v12 = vmul.f32 %v3620_v40, %v392_v36  ;;  %v422_v2 = vmul.f32 %v3620_v40, %v391_v5  ;;  %v395_v39 = vsel %vm382_vm7, %v3495_v3, %v3437_v46 }
  0xea   :  { %v443_v50 = vadd.f32 %v427_v37, %v339_v25  ;;  %v428_v59 = vmul.f32 %v3637_v22, %v384_v23  ;;  %v439_v9 = vadd.f32 %v423_v41, %v335_v20  ;;  %v429_v3 = vmul.f32 %v3640_v29, %v396_v45 }
  0xeb   :  { %v465_v19 = vpop.permute.xlu1 %464  ;;  %v463_v0 = vpop.permute.xlu0 %462  ;;  %v424_v46 = vmul.f32 %v3637_v22, %v383_v56  ;;  %v336_v37 = vadd.f32 %v3585_v17, %v265_v51  ;;  %v334_v55 = vadd.f32 %v3559_v61, %v263_v4  ;;  %v425_v25 = vmul.f32 %v3640_v29, %v395_v39 }
  0xec   :  { %v495_v47 = vsel %vm224_vm6, %v3679_v21, %v465_v19  ;;  %v494_v60 = vsel %vm224_vm6, %v3681_v42, %v463_v0  ;;  %v337_v41 = vadd.f32 %v3604_v62, %v266_v27  ;;  %v272_v23 = vmul.f32 %v3564_v57, %v235_v13 }
  0xed   :  { %v530_v6 = vmul.f32 %v3645_v54, %v495_v47  ;;  %950 = vrot.lane.b32.xlu1 %v3445_v34, %s3015_s2  ;;  %v526_v38 = vmul.f32 %v3645_v54, %v494_v60  ;;  %942 = vrot.lane.b32.xlu0 %v3454_v15, %s3015_s2  ;;  %v442_v47 = vadd.f32 %v426_v12, %v338_v53 }
  0xee   :  { %v444_v60 = vadd.f32 %v428_v59, %v340_v44  ;;  %v438_v51 = vadd.f32 %v422_v2, %v334_v55  ;;  %v445_v62 = vadd.f32 %v429_v3, %v341_v49  ;;  %v440_v4 = vadd.f32 %v424_v46, %v336_v37  ;;  %v5188_v37 = vld [vmem:[#allocation25_spill] sm:$0xff] }
  0xef   :  { %v3740_v36 = vadd.f32 %v530_v6, %v443_v50  ;;  %v473_v5 = vpop.permute.xlu1 %472  ;;  %v3744_v20 = vadd.f32 %v526_v38, %v439_v9  ;;  %v471_v56 = vpop.permute.xlu0 %470  ;;  %v441_v13 = vadd.f32 %v425_v25, %v337_v41  ;;  %v236_v44 = vsel %vm224_vm6, %v3523_v8, %v3518_v7  ;;  %v5187_v38 = vld [vmem:[#allocation38_spill] sm:$0xff]  ;;  %v5189_v55 = vld [vmem:[#allocation29_spill] sm:$0xff] }
  0xf0   :  { %v491_v45 = vsel %vm224_vm6, %v465_v19, %v473_v5  ;;  %v490_v61 = vsel %vm224_vm6, %v463_v0, %v471_v56  ;;  %v240_v53 = vsel %vm224_vm6, %v3542_v1, %v3523_v8  ;;  %v232_v12 = vsel %vm224_vm6, %v3518_v7, %v3544_v58 }
  0xf1   :  { %v531_v17 = vmul.f32 %v3648_v28, %v491_v45  ;;  %966 = vrot.lane.b32.xlu1 %v3465_v24, %s3015_s2  ;;  %v527_v27 = vmul.f32 %v3648_v28, %v490_v61  ;;  %958 = vrot.lane.b32.xlu0 %v3471_v16, %s3015_s2  ;;  %v275_v9 = vmul.f32 %v3576_v26, %v240_v53  ;;  %v5190_v61 = vld [vmem:[#allocation26_spill] sm:$0xff] }
  0xf2   :  { %v332_v25 = vmul.f32 %v3537_v10, %v5189_v55 }
  0xf3   :  { %v3764_v19 = vadd.f32 %v531_v17, %v444_v60  ;;  %v481_v49 = vpop.permute.xlu1 %480  ;;  %v3770_v2 = vadd.f32 %v527_v27, %v440_v4  ;;  %v479_v50 = vpop.permute.xlu0 %478  ;;  %v5191_v4 = vld [vmem:[#allocation45_spill] sm:$0xff]  ;;  %v5192_v27 = vld [vmem:[#allocation28_spill] sm:$0xff] }
  0xf4   :  { %v487_v39 = vsel %vm224_vm6, %v473_v5, %v481_v49  ;;  %v499_v0 = vsel %vm224_vm6, %v481_v49, %v3679_v21  ;;  %v486_v6 = vsel %vm224_vm6, %v471_v56, %v479_v50  ;;  %v498_v7 = vsel %vm224_vm6, %v479_v50, %v3681_v42  ;;  %v5197_v50 = vld [vmem:[#allocation44_spill] sm:$0xff] }
  0xf5   :  { %v529_v8 = vmul.f32 %v3661_v52, %v499_v0  ;;  %v532_v59 = vmul.f32 %v3664_v11, %v487_v39  ;;  %952 = vrot.lane.b32.xlu1 %v3486_v35, %s3015_s2  ;;  %v228_v21 = vsel %vm224_vm6, %v3544_v58, %v3542_v1  ;;  %v525_v3 = vmul.f32 %v3661_v52, %v498_v7 }
  0xf6   :  { %v528_v46 = vmul.f32 %v3664_v11, %v486_v6  ;;  %944 = vrot.lane.b32.xlu0 %v5187_v38, %s3015_s2  ;;  %v326_v42 = vmul.f32 %v3532_v43, %v5188_v37  ;;  %v276_v1 = vmul.f32 %v3564_v57, %v236_v44  ;;  %v277_v58 = vmul.f32 %v3573_v31, %v232_v12  ;;  %v5193_v57 = vld [vmem:[#allocation41_spill] sm:$0xff]  ;;  %v5194_v44 = vld [vmem:[#allocation27_spill] sm:$0xff] }
  0xf7   :  { %v3799_v5 = vadd.f32 %v529_v8, %v442_v47  ;;  %v3801_v41 = vadd.f32 %v532_v59, %v445_v62  ;;  %v365_v45 = vpop.permute.xlu1 %364  ;;  %v3805_v56 = vadd.f32 %v525_v3, %v438_v51  ;;  %v357_v17 = vpop.permute.xlu0 %356  ;;  %v329_v43 = vmul.f32 %v5191_v4, %v5190_v61  ;;  %v5196_v12 = vld [vmem:[#allocation49_spill] sm:$0xff]  ;;  %v5198_v8 = vld [vmem:[#allocation36_spill] sm:$0xff] }
  0xf8   :  { %v3807_v60 = vadd.f32 %v528_v46, %v441_v13  ;;  %v333_v53 = vmul.f32 %v5191_v4, %v5192_v27  ;;  %v278_v47 = vmul.f32 %v3579_v30, %v228_v21  ;;  %v394_v62 = vsel %vm382_vm7, %v357_v17, %v365_v45  ;;  %v5195_v13 = vld [vmem:[#allocation50_spill] sm:$0xff]  ;;  %v5199_v6 = vld [vmem:[#allocation37_spill] sm:$0xff]  ;;  %v5202_v46 = vld [vmem:[#allocation48_spill] sm:$0xff] }
  0xf9   :  { %968 = vrot.lane.b32.xlu1 %v5193_v57, %s3015_s2  ;;  %v328_v51 = vmul.f32 %v3537_v10, %v5194_v44  ;;  %v343_v49 = vadd.f32 %v5195_v13, %v272_v23  ;;  %v346_v39 = vadd.f32 %v5196_v12, %v275_v9  ;;  %v434_v0 = vmul.f32 %v3620_v40, %v394_v62  ;;  %v5200_v23 = vld [vmem:[#allocation52_spill] sm:$0xff]  ;;  %v5201_v9 = vld [vmem:[#allocation46_spill] sm:$0xff]  ;;  %v5203_v13 = vld [vmem:[#allocation47_spill] sm:$0xff] }
  0xfa   :  { %960 = vrot.lane.b32.xlu0 %v5197_v50, %s3015_s2  ;;  %v239_v59 = vsel %vm224_vm6, %v5198_v8, %v3418_v33  ;;  %v227_v7 = vsel %vm224_vm6, %v5199_v6, %v5198_v8  ;;  %v231_v10 = vsel %vm224_vm6, %v3412_v18, %v5199_v6  ;;  %v389_v21 = vsel %vm382_vm7, %v5201_v9, %v5200_v23 }
  0xfb   :  { %v381_v3 = vpop.permute.xlu1 %380  ;;  %v347_v37 = vadd.f32 %v5202_v46, %v276_v1  ;;  %v348_v55 = vadd.f32 %v332_v25, %v277_v58  ;;  %v450_v33 = vadd.f32 %v434_v0, %v346_v39  ;;  %v373_v4 = vpop.permute.xlu0 %372  ;;  %v349_v27 = vadd.f32 %v333_v53, %v278_v47  ;;  %v5204_v47 = vld [vmem:[#allocation51_spill] sm:$0xff] }
  0xfc   :  { %v398_v61 = vsel %vm382_vm7, %v381_v3, %v357_v17  ;;  %v386_v18 = vsel %vm382_vm7, %v373_v4, %v381_v3  ;;  %v390_v44 = vsel %vm382_vm7, %v365_v45, %v373_v4  ;;  %v393_v1 = vsel %vm382_vm7, %v5203_v13, %v5201_v9 }
  0xfd   :  { %v437_v62 = vmul.f32 %v3640_v29, %v398_v61  ;;  %v431_v25 = vmul.f32 %v3623_v48, %v389_v21  ;;  %v435_v58 = vmul.f32 %v3623_v48, %v390_v44  ;;  %v436_v17 = vmul.f32 %v3637_v22, %v386_v18 }
  0xfe   :  { %v271_v53 = vmul.f32 %v3576_v26, %v239_v59  ;;  %v397_v12 = vsel %vm382_vm7, %v5204_v47, %v5203_v13  ;;  %v385_v45 = vsel %vm382_vm7, %v5200_v23, %v5204_v47  ;;  %v273_v8 = vmul.f32 %v3573_v31, %v231_v10 }
  0xff   :  { %v453_v39 = vadd.f32 %v437_v62, %v349_v27  ;;  %v467_v0 = vpop.permute.xlu1 %466  ;;  %v274_v48 = vmul.f32 %v3579_v30, %v227_v7  ;;  %v451_v6 = vadd.f32 %v435_v58, %v347_v37  ;;  %v452_v9 = vadd.f32 %v436_v17, %v348_v55  ;;  %v459_v21 = vpop.permute.xlu0 %458 }
 0x100   :  { %v430_v26 = vmul.f32 %v3620_v40, %v393_v1  ;;  %v496_v59 = vsel %vm224_vm6, %v459_v21, %v467_v0  ;;  %v433_v3 = vmul.f32 %v3640_v29, %v397_v12  ;;  %v432_v46 = vmul.f32 %v3637_v22, %v385_v45  ;;  %v558_v45 = vld [vmem:[#allocation5 + $0x4] ss:$8 sm:$0xf] }
 0x101   :  { %v447_v61 = vadd.f32 %v431_v25, %v343_v49  ;;  %v534_v23 = vmul.f32 %v3645_v54, %v496_v59  ;;  %v342_v4 = vadd.f32 %v326_v42, %v271_v53  ;;  %v344_v31 = vadd.f32 %v328_v51, %v273_v8  ;;  %v661_v59 = vld [vmem:[#allocation5 + $0x5] ss:$8 sm:$0xf] }
 0x102   :  { %v345_v10 = vadd.f32 %v329_v43, %v274_v48 }
 0x103   :  { %v483_v27 = vpop.permute.xlu1 %482  ;;  %v3873_v30 = vadd.f32 %v534_v23, %v447_v61  ;;  %v475_v40 = vpop.permute.xlu0 %474  ;;  %v446_v37 = vadd.f32 %v430_v26, %v342_v4  ;;  %v448_v42 = vadd.f32 %v432_v46, %v344_v31  ;;  %v5206_v4 = vld [vmem:[#allocation39_spill] sm:$0xff]  ;;  %v5207_v31 = vld [vmem:[#allocation16_spill] sm:$0xff] }
 0x104   :  { %v500_v7 = vsel %vm224_vm6, %v483_v27, %v459_v21  ;;  %v488_v29 = vsel %vm224_vm6, %v475_v40, %v483_v27  ;;  %v492_v22 = vsel %vm224_vm6, %v467_v0, %v475_v40  ;;  %v449_v49 = vadd.f32 %v433_v3, %v345_v10  ;;  %v5205_v21 = vld [vmem:[#allocation40_spill] sm:$0xff]  ;;  %v5209_v40 = vld [vmem:[#allocation42_spill] sm:$0xff] }
 0x105   :  { %v533_v55 = vmul.f32 %v3661_v52, %v500_v7  ;;  %v535_v51 = vmul.f32 %v3648_v28, %v492_v22  ;;  %v536_v43 = vmul.f32 %v3664_v11, %v488_v29  ;;  %v3903_v26 = vrot.slane %v558_v45, %v5205_v21  ;;  %v5211_v22 = vld [vmem:[#allocation43_spill] sm:$0xff] }
 0x106   :  { %v3914_v27 = vrot.slane %v558_v45, %v5206_v4  ;;  %v3919_v7 = vrot.slane %v661_v59, %v5205_v21 }
 0x107   :  { %v3884_v62 = vadd.f32 %v533_v55, %v446_v37  ;;  %v469_v18 = vpop.permute.xlu1 %468  ;;  %v3886_v44 = vadd.f32 %v535_v51, %v448_v42  ;;  %v3888_v13 = vadd.f32 %v536_v43, %v449_v49  ;;  %v461_v1 = vpop.permute.xlu0 %460  ;;  %v584_v10 = vmul.f32 %v3903_v26, %v5207_v31  ;;  %v5210_v55 = vld [vmem:[#allocation14_spill] sm:$0xff] }
 0x108   :  { %v497_v25 = vsel %vm224_vm6, %v461_v1, %v469_v18  ;;  %v3924_v37 = vrot.slane %v558_v45, %v5209_v40  ;;  %v585_v29 = vmul.f32 %v3914_v27, %v5210_v55  ;;  %v3931_v49 = vrot.slane %v558_v45, %v5211_v22  ;;  %v5213_v45 = vld [vmem:[#allocation18_spill] sm:$0xff]  ;;  %v5216_v55 = vld [vmem:[#allocation17_spill] sm:$0xff] }
 0x109   :  { %v538_v58 = vmul.f32 %v3645_v54, %v497_v25  ;;  %v600_v42 = vadd.f32 %v584_v10, %v3799_v5 }
 0x10a   :  { %v586_v5 = vmul.f32 %v3924_v37, %v5213_v45  ;;  %v601_v31 = vadd.f32 %v585_v29, %v3740_v36 }
 0x10b   :  { %v485_v17 = vpop.permute.xlu1 %484  ;;  %v3893_v53 = vadd.f32 %v538_v58, %v451_v6  ;;  %v477_v12 = vpop.permute.xlu0 %476  ;;  %v5212_v58 = vld [vmem:[#allocation13_spill] sm:$0xff] }
 0x10c   :  { %v501_v47 = vsel %vm224_vm6, %v485_v17, %v461_v1  ;;  %v489_v8 = vsel %vm224_vm6, %v477_v12, %v485_v17  ;;  %v493_v48 = vsel %vm224_vm6, %v469_v18, %v477_v12  ;;  %v3938_v18 = vrot.slane %v661_v59, %v5206_v4 }
 0x10d   :  { %v537_v0 = vmul.f32 %v3661_v52, %v501_v47  ;;  %v539_v54 = vmul.f32 %v3648_v28, %v493_v48  ;;  %v540_v6 = vmul.f32 %v3664_v11, %v489_v8  ;;  %v5208_v28 = vld [vmem:[#allocation15_spill] sm:$0xff]  ;;  %v581_v17 = vmul.f32 %v3914_v27, %v5212_v58 }
 0x10e   :  { %v580_v11 = vmul.f32 %v3903_v26, %v5208_v28  ;;  %v602_v36 = vadd.f32 %v586_v5, %v3764_v19 }
 0x10f   :  { %v3907_v3 = vadd.f32 %v537_v0, %v450_v33  ;;  %v615_v46 = vpop.permute.xlu1 %614  ;;  %v3909_v61 = vadd.f32 %v539_v54, %v452_v9  ;;  %v3911_v52 = vadd.f32 %v540_v6, %v453_v39  ;;  %v613_v23 = vpop.permute.xlu0 %612  ;;  %v5214_v54 = vld [vmem:[#allocation20_spill] sm:$0xff]  ;;  %v3955_v6 = vrot.slane %v661_v59, %v5209_v40 }
 0x110   :  { %v596_v1 = vadd.f32 %v580_v11, %v3805_v56  ;;  %v587_v56 = vmul.f32 %v3931_v49, %v5214_v54  ;;  %v3962_v11 = vrot.slane %v661_v59, %v5211_v22 }
 0x111   :  { %5215 = vst [vmem:[#allocation38_spill] sm:$0xff] %v3955_v6 }
 0x113   :  { %v623_v33 = vpop.permute.xlu1 %622  ;;  %v621_v9 = vpop.permute.xlu0 %620 }
 0x114   :  { %v653_v39 = vsel %vm382_vm7, %v615_v46, %v623_v33  ;;  %v652_v43 = vsel %vm382_vm7, %v613_v23, %v621_v9 }
 0x115   :  { %v687_v51 = vmul.f32 %v3919_v7, %v653_v39  ;;  %v683_v25 = vmul.f32 %v3919_v7, %v652_v43  ;;  %v597_v39 = vadd.f32 %v581_v17, %v3744_v20  ;;  %v603_v20 = vadd.f32 %v587_v56, %v3801_v41 }
 0x117   :  { %v3944_v47 = vadd.f32 %v687_v51, %v600_v42  ;;  %v631_v12 = vpop.permute.xlu1 %630  ;;  %v3948_v0 = vadd.f32 %v683_v25, %v596_v1  ;;  %v629_v48 = vpop.permute.xlu0 %628  ;;  %v582_v42 = vmul.f32 %v3924_v37, %v5216_v55  ;;  %v5217_v51 = vld [vmem:[#allocation19_spill] sm:$0xff]  ;;  %v5218_v25 = vld [vmem:[#allocation22_spill] sm:$0xff] }
 0x118   :  { %v649_v8 = vsel %vm382_vm7, %v623_v33, %v631_v12  ;;  %v648_v28 = vsel %vm382_vm7, %v621_v9, %v629_v48  ;;  %v583_v43 = vmul.f32 %v3931_v49, %v5217_v51  ;;  %v588_v9 = vmul.f32 %v3903_v26, %v5218_v25  ;;  %v5220_v51 = vld [vmem:[#allocation21_spill] sm:$0xff] }
 0x119   :  { %v688_v10 = vmul.f32 %v3938_v18, %v649_v8  ;;  %v684_v33 = vmul.f32 %v3938_v18, %v648_v28 }
 0x11a   :  { %v599_v41 = vadd.f32 %v583_v43, %v3807_v60  ;;  %v604_v55 = vadd.f32 %v588_v9, %v3884_v62  ;;  %v589_v43 = vmul.f32 %v3914_v27, %v5220_v51 }
 0x11b   :  { %v3970_v1 = vadd.f32 %v688_v10, %v601_v31  ;;  %v639_v29 = vpop.permute.xlu1 %638  ;;  %v3975_v59 = vadd.f32 %v684_v33, %v597_v39  ;;  %v637_v45 = vpop.permute.xlu0 %636  ;;  %v598_v31 = vadd.f32 %v582_v42, %v3770_v2  ;;  %v5219_v2 = vld [vmem:[#allocation23_spill] sm:$0xff] }
 0x11c   :  { %v645_v58 = vsel %vm382_vm7, %v631_v12, %v639_v29  ;;  %v657_v17 = vsel %vm382_vm7, %v639_v29, %v615_v46  ;;  %v644_v19 = vsel %vm382_vm7, %v629_v48, %v637_v45  ;;  %v656_v5 = vsel %vm382_vm7, %v637_v45, %v613_v23 }
 0x11d   :  { %v689_v8 = vmul.f32 %v3955_v6, %v645_v58  ;;  %v690_v54 = vmul.f32 %v3962_v11, %v657_v17  ;;  %v685_v12 = vmul.f32 %v3955_v6, %v644_v19  ;;  %v686_v56 = vmul.f32 %v3962_v11, %v656_v5 }
 0x11e   :  { %v591_v60 = vmul.f32 %v3931_v49, %v5219_v2 }
 0x11f   :  { %v3992_v46 = vadd.f32 %v689_v8, %v602_v36  ;;  %v3994_v10 = vadd.f32 %v690_v54, %v603_v20  ;;  %v625_v28 = vpop.permute.xlu1 %624  ;;  %v3996_v39 = vadd.f32 %v685_v12, %v598_v31  ;;  %v3998_v33 = vadd.f32 %v686_v56, %v599_v41  ;;  %v617_v48 = vpop.permute.xlu0 %616  ;;  %v5221_v36 = vld [vmem:[#allocation24_spill] sm:$0xff] }
 0x120   :  { %v654_v23 = vsel %vm382_vm7, %v617_v48, %v625_v28  ;;  %v590_v29 = vmul.f32 %v3924_v37, %v5221_v36  ;;  %v607_v45 = vadd.f32 %v591_v60, %v3888_v13  ;;  %v605_v54 = vadd.f32 %v589_v43, %v3873_v30 }
 0x121   :  { %v691_v42 = vmul.f32 %v3919_v7, %v654_v23 }
 0x122   :  { %v606_v19 = vadd.f32 %v590_v29, %v3886_v44 }
 0x123   :  { %v641_v25 = vpop.permute.xlu1 %640  ;;  %v4010_v20 = vadd.f32 %v691_v42, %v604_v55  ;;  %v633_v17 = vpop.permute.xlu0 %632  ;;  %v884_v55 = vld [vmem:[#allocation5 + $0x7] ss:$8 sm:$0xf] }
 0x124   :  { %v658_v58 = vsel %vm382_vm7, %v641_v25, %v617_v48  ;;  %v646_v62 = vsel %vm382_vm7, %v633_v17, %v641_v25  ;;  %v650_v9 = vsel %vm382_vm7, %v625_v28, %v633_v17  ;;  %v889_v43 = vrot.slane %v884_v55, %v5205_v21  ;;  %v829_v17 = vld [vmem:[#allocation5 + $0x6] ss:$8 sm:$0xf] }
 0x125   :  { %5222 = vst [vmem:[#allocation25_spill] sm:$0xff] %v4010_v20  ;;  %v694_v8 = vmul.f32 %v3962_v11, %v658_v58  ;;  %v692_v5 = vmul.f32 %v3938_v18, %v650_v9  ;;  %v693_v31 = vmul.f32 %v3955_v6, %v646_v62  ;;  %v893_v36 = vrot.slane %v884_v55, %v5206_v4  ;;  %v5227_v9 = vld [vmem:[#allocation31_spill] sm:$0xff] }
 0x126   :  { %v897_v29 = vrot.slane %v884_v55, %v5209_v40  ;;  %v901_v25 = vrot.slane %v884_v55, %v5211_v22  ;;  %v5232_v55 = vld [vmem:[#allocation35_spill] sm:$0xff] }
 0x127   :  { %v4024_v41 = vadd.f32 %v694_v8, %v607_v45  ;;  %v4026_v12 = vpop.permute.xlu1 %782  ;;  %v4028_v13 = vadd.f32 %v692_v5, %v605_v54  ;;  %v4030_v56 = vadd.f32 %v693_v31, %v606_v19  ;;  %v4032_v48 = vpop.permute.xlu0 %780  ;;  %v5226_v8 = vld [vmem:[#allocation30_spill] sm:$0xff]  ;;  %v4054_v54 = vmul.f32 %v889_v43, %v5227_v9  ;;  %v5229_v19 = vld [vmem:[#allocation32_spill] sm:$0xff]  ;;  %v5230_v31 = vld [vmem:[#allocation33_spill] sm:$0xff] }
 0x128   :  { %v4051_v62 = vmul.f32 %v889_v43, %v5226_v8  ;;  %v4057_v5 = vmul.f32 %v893_v36, %v5229_v19  ;;  %v4069_v6 = vmul.f32 %v901_v25, %v3410_v14  ;;  %v4072_v8 = vmul.f32 %v901_v25, %v3416_v32 }
 0x129   :  { %5223 = vst [vmem:[#allocation29_spill] sm:$0xff] %v4024_v41  ;;  %5224 = vst [vmem:[#allocation26_spill] sm:$0xff] %v4028_v13  ;;  %v5231_v41 = vld [vmem:[#allocation34_spill] sm:$0xff]  ;;  %v4066_v13 = vmul.f32 %v897_v29, %v5232_v55  ;;  %v4075_v9 = vmul.f32 %v893_v36, %v3445_v34  ;;  %v4078_v19 = vmul.f32 %v889_v43, %v3454_v15 }
 0x12a   :  { %5225 = vst [vmem:[#allocation45_spill] sm:$0xff] %v4030_v56  ;;  %5228 = vst [vmem:[#allocation28_spill] sm:$0xff] %v4054_v54  ;;  %v4060_v56 = vmul.f32 %v893_v36, %v5230_v31  ;;  %v4063_v20 = vmul.f32 %v897_v29, %v5231_v41  ;;  %v4081_v31 = vrot.slane %v829_v17, %v5206_v4  ;;  %v2894_v54 = vld [vmem:[#allocation2 + $0x60] sm:$0xff] }
 0x12b   :  { %v791_v23 = vpop.permute.xlu1 %790  ;;  %v789_v28 = vpop.permute.xlu0 %788  ;;  %5233 = vst [vmem:[#allocation41_spill] sm:$0xff] %v4069_v6  ;;  %5234 = vst [vmem:[#allocation27_spill] sm:$0xff] %v4072_v8  ;;  %v4084_v41 = vrot.slane %v829_v17, %v5209_v40  ;;  %v4089_v14 = vmul.f32 %v901_v25, %v3465_v24  ;;  %v4105_v8 = vmul.f32 %v893_v36, %v3486_v35  ;;  %v987_v36 = vld [vmem:[#allocation5 + $0x20] ss:$8 sm:$0xf] }
 0x12c   :  { %5235 = vst [vmem:[#allocation50_spill] sm:$0xff] %v4075_v9  ;;  %5236 = vst [vmem:[#allocation49_spill] sm:$0xff] %v4078_v19  ;;  %v821_v32 = vsel %vm224_vm6, %v4026_v12, %v791_v23  ;;  %v820_v34 = vsel %vm224_vm6, %v4032_v48, %v789_v28  ;;  %v4102_v9 = vmul.f32 %v897_v29, %v3471_v16 }
 0x12d   :  { %5237 = vst [vmem:[#allocation44_spill] sm:$0xff] %v4089_v14  ;;  %5239 = vst [vmem:[#allocation37_spill] sm:$0xff] %v4105_v8  ;;  %v4108_v24 = vmul.f32 %v889_v43, %v5187_v38  ;;  %v4114_v6 = vmul.f32 %v901_v25, %v5193_v57  ;;  %v592_v16 = vmul.f32 %v2894_v54, %v3903_v26  ;;  %v1042_v8 = vld [vmem:[#allocation5 + $0x21] ss:$8 sm:$0xf] }
 0x12e   :  { %5238 = vst [vmem:[#allocation36_spill] sm:$0xff] %v4102_v9  ;;  %v2895_v9 = vld [vmem:[#allocation2 + $0x68] sm:$0xff]  ;;  %v856_v38 = vmul.f32 %v4081_v31, %v821_v32  ;;  %v852_v43 = vmul.f32 %v4081_v31, %v820_v34  ;;  %v4130_v26 = vrot.slane %v829_v17, %v5211_v22  ;;  %v4137_v34 = vrot.slane %v987_v36, %v5205_v21 }
 0x12f   :  { %v799_v2 = vpop.permute.xlu1 %798  ;;  %v4034_v30 = vpop.permute.xlu0 %796  ;;  %5240 = vst [vmem:[#allocation52_spill] sm:$0xff] %v4108_v24  ;;  %5241 = vst [vmem:[#allocation46_spill] sm:$0xff] %v4114_v6  ;;  %v593_v35 = vmul.f32 %v2895_v9, %v3914_v27  ;;  %v2896_v24 = vld [vmem:[#allocation2 + $0x78] sm:$0xff]  ;;  %v2897_v27 = vld [vmem:[#allocation2 + $0x70] sm:$0xff]  ;;  %v4167_v6 = vrot.slane %v987_v36, %v5211_v22 }
 0x130   :  { %v817_v15 = vsel %vm224_vm6, %v791_v23, %v799_v2  ;;  %v816_v14 = vsel %vm224_vm6, %v789_v28, %v4034_v30  ;;  %v4117_v23 = vmul.f32 %v897_v29, %v5197_v50  ;;  %v595_v57 = vmul.f32 %v2896_v24, %v3931_v49 }
 0x131   :  { %v857_v28 = vmul.f32 %v4084_v41, %v817_v15  ;;  %v853_v50 = vmul.f32 %v4084_v41, %v816_v14  ;;  %v4127_v29 = vrot.slane %v829_v17, %v5205_v21  ;;  %v594_v54 = vmul.f32 %v2897_v27, %v3924_v37 }
 0x132   :  { %5242 = vst [vmem:[#allocation48_spill] sm:$0xff] %v4117_v23  ;;  %v4140_v49 = vrot.slane %v1042_v8, %v5205_v21  ;;  %v4143_v14 = vrot.slane %v987_v36, %v5206_v4  ;;  %v4152_v15 = vrot.slane %v1042_v8, %v5206_v4  ;;  %v872_v24 = vadd.f32 %v856_v38, %v3970_v1 }
 0x133   :  { %v807_v44 = vpop.permute.xlu1 %806  ;;  %v4036_v60 = vpop.permute.xlu0 %804  ;;  %v868_v27 = vadd.f32 %v852_v43, %v3975_v59  ;;  %v873_v21 = vadd.f32 %v857_v28, %v3992_v46  ;;  %v4170_v1 = vrot.slane %v1042_v8, %v5209_v40  ;;  %v609_v38 = vadd.f32 %v593_v35, %v3893_v53 }
 0x134   :  { %v825_v32 = vsel %vm224_vm6, %v807_v44, %v4026_v12  ;;  %v813_v17 = vsel %vm224_vm6, %v799_v2, %v807_v44  ;;  %v824_v37 = vsel %vm224_vm6, %v4036_v60, %v4032_v48  ;;  %v4155_v12 = vrot.slane %v987_v36, %v5209_v40 }
 0x135   :  { %v812_v2 = vsel %vm224_vm6, %v4034_v30, %v4036_v60  ;;  %v869_v48 = vadd.f32 %v853_v50, %v3996_v39  ;;  %v855_v4 = vmul.f32 %v4127_v29, %v825_v32  ;;  %v858_v59 = vmul.f32 %v4130_v26, %v813_v17  ;;  %v5244_v17 = vld [vmem:[#allocation41_spill] sm:$0xff] }
 0x136   :  { %v851_v46 = vmul.f32 %v4127_v29, %v824_v37  ;;  %v4176_v30 = vrot.slane %v1042_v8, %v5211_v22  ;;  %v854_v39 = vmul.f32 %v4130_v26, %v812_v2  ;;  %v608_v60 = vadd.f32 %v592_v16, %v3907_v3 }
 0x137   :  { %v4038_v42 = vpop.permute.xlu1 %626  ;;  %v4040_v51 = vpop.permute.xlu0 %618  ;;  %v611_v43 = vadd.f32 %v595_v57, %v3911_v52  ;;  %v610_v36 = vadd.f32 %v594_v54, %v3909_v61  ;;  %v4187_v32 = vadd.f32 %v4057_v5, %v872_v24  ;;  %v4190_v53 = vadd.f32 %v4060_v56, %v868_v27  ;;  %v5245_v27 = vld [vmem:[#allocation38_spill] sm:$0xff] }
 0x138   :  { %v655_v28 = vsel %vm382_vm7, %v4040_v51, %v4038_v42  ;;  %v4193_v8 = vadd.f32 %v4063_v20, %v873_v21  ;;  %v871_v3 = vadd.f32 %v855_v4, %v3944_v47  ;;  %v4205_v16 = vadd.f32 %v4066_v13, %v869_v48 }
 0x139   :  { %v874_v56 = vadd.f32 %v858_v59, %v3994_v10  ;;  %v867_v21 = vadd.f32 %v851_v46, %v3948_v0  ;;  %v870_v20 = vadd.f32 %v854_v39, %v3998_v33  ;;  %v5246_v59 = vld [vmem:[#allocation27_spill] sm:$0xff]  ;;  %v5247_v39 = vld [vmem:[#allocation26_spill] sm:$0xff] }
 0x13a   :  { %v926_v54 = vadd.f32 %v4051_v62, %v871_v3 }
 0x13b   :  { %v4046_v58 = vpop.permute.xlu1 %642  ;;  %v4048_v45 = vpop.permute.xlu0 %634  ;;  %v929_v37 = vadd.f32 %v5244_v17, %v874_v56  ;;  %v4245_v46 = vadd.f32 %v5246_v59, %v870_v20  ;;  %v5249_v56 = vld [vmem:[#allocation29_spill] sm:$0xff]  ;;  %v5254_v17 = vld [vmem:[#allocation36_spill] sm:$0xff] }
 0x13c   :  { %v651_v61 = vsel %vm382_vm7, %v4038_v42, %v4048_v45  ;;  %v695_v42 = vmul.f32 %v3919_v7, %v655_v28  ;;  %v659_v13 = vsel %vm382_vm7, %v4046_v58, %v4040_v51  ;;  %v647_v10 = vsel %vm382_vm7, %v4048_v45, %v4046_v58  ;;  %v5243_v45 = vld [vmem:[#allocation28_spill] sm:$0xff] }
 0x13d   :  { %v698_v58 = vmul.f32 %v3962_v11, %v659_v13  ;;  %v697_v2 = vmul.f32 %v5245_v27, %v647_v10 }
 0x13e   :  { %v711_v24 = vadd.f32 %v695_v42, %v608_v60 }
 0x13f   :  { %v4086_v55 = vpop.permute.xlu1 %792  ;;  %v4099_v19 = vpop.permute.xlu0 %784  ;;  %v713_v42 = vadd.f32 %v697_v2, %v610_v36 }
 0x140   :  { %v822_v52 = vsel %vm224_vm6, %v4099_v19, %v4086_v55 }
 0x141   :  { %v860_v33 = vmul.f32 %v4081_v31, %v822_v52 }
 0x143   :  { %v809_v25 = vpop.permute.xlu1 %808  ;;  %v801_v9 = vpop.permute.xlu0 %800  ;;  %v876_v28 = vadd.f32 %v860_v33, %v5247_v39 }
 0x144   :  { %v826_v4 = vsel %vm224_vm6, %v809_v25, %v4099_v19  ;;  %v814_v47 = vsel %vm224_vm6, %v801_v9, %v809_v25  ;;  %v818_v0 = vsel %vm224_vm6, %v4086_v55, %v801_v9  ;;  %v696_v19 = vmul.f32 %v3938_v18, %v651_v61  ;;  %v5248_v61 = vld [vmem:[#allocation25_spill] sm:$0xff] }
 0x145   :  { %v859_v57 = vmul.f32 %v4127_v29, %v826_v4  ;;  %v862_v51 = vmul.f32 %v4130_v26, %v814_v47  ;;  %v861_v18 = vmul.f32 %v4084_v41, %v818_v0  ;;  %v922_v9 = vadd.f32 %v5243_v45, %v867_v21  ;;  %v5250_v47 = vld [vmem:[#allocation45_spill] sm:$0xff] }
 0x147   :  { %v795_v44 = vpop.permute.xlu1 %794  ;;  %v787_v23 = vpop.permute.xlu0 %786  ;;  %v875_v52 = vadd.f32 %v859_v57, %v5248_v61  ;;  %v878_v60 = vadd.f32 %v862_v51, %v5249_v56  ;;  %v877_v20 = vadd.f32 %v861_v18, %v5250_v47  ;;  %v5253_v18 = vld [vmem:[#allocation44_spill] sm:$0xff] }
 0x148   :  { %v823_v7 = vsel %vm224_vm6, %v787_v23, %v795_v44 }
 0x149   :  { %v864_v48 = vmul.f32 %v4081_v31, %v823_v7 }
 0x14b   :  { %v811_v50 = vpop.permute.xlu1 %810  ;;  %v803_v5 = vpop.permute.xlu0 %802 }
 0x14c   :  { %v827_v55 = vsel %vm224_vm6, %v811_v50, %v787_v23  ;;  %v712_v23 = vadd.f32 %v696_v19, %v609_v38  ;;  %v819_v11 = vsel %vm224_vm6, %v795_v44, %v803_v5  ;;  %v815_v21 = vsel %vm224_vm6, %v803_v5, %v811_v50 }
 0x14d   :  { %v863_v62 = vmul.f32 %v4127_v29, %v827_v55  ;;  %v714_v38 = vadd.f32 %v698_v58, %v611_v43  ;;  %v865_v0 = vmul.f32 %v4084_v41, %v819_v11  ;;  %v866_v5 = vmul.f32 %v4130_v26, %v815_v21  ;;  %v5251_v43 = vld [vmem:[#allocation50_spill] sm:$0xff]  ;;  %v5252_v58 = vld [vmem:[#allocation49_spill] sm:$0xff]  ;;  %v5256_v11 = vld [vmem:[#allocation52_spill] sm:$0xff] }
 0x14e   :  { %v880_v13 = vadd.f32 %v864_v48, %v712_v23  ;;  %v4266_v7 = vadd.f32 %v5251_v43, %v876_v28  ;;  %v4271_v36 = vadd.f32 %v5252_v58, %v875_v52  ;;  %v4274_v41 = vadd.f32 %v5253_v18, %v878_v60  ;;  %v5255_v48 = vld [vmem:[#allocation37_spill] sm:$0xff] }
 0x14f   :  { %v941_v35 = vpop.permute.xlu1 %940  ;;  %v4235_v25 = vpop.permute.xlu0 %938  ;;  %v879_v50 = vadd.f32 %v863_v62, %v711_v24  ;;  %v4281_v24 = vadd.f32 %v5254_v17, %v877_v20  ;;  %v882_v23 = vadd.f32 %v866_v5, %v714_v38  ;;  %v5257_v17 = vld [vmem:[#allocation46_spill] sm:$0xff] }
 0x150   :  { %v4288_v59 = vadd.f32 %v5255_v48, %v880_v13  ;;  %v5258_v48 = vld [vmem:[#allocation48_spill] sm:$0xff] }
 0x153   :  { %v949_v3 = vpop.permute.xlu1 %948  ;;  %v947_v4 = vpop.permute.xlu0 %946 }
 0x154   :  { %v979_v31 = vsel %vm382_vm7, %v941_v35, %v949_v3  ;;  %v978_v44 = vsel %vm382_vm7, %v4235_v25, %v947_v4 }
 0x155   :  { %v1013_v29 = vmul.f32 %v4137_v34, %v979_v31  ;;  %v1009_v10 = vmul.f32 %v4137_v34, %v978_v44 }
 0x157   :  { %v1029_v19 = vadd.f32 %v1013_v29, %v926_v54  ;;  %v957_v33 = vpop.permute.xlu1 %956  ;;  %v1025_v57 = vadd.f32 %v1009_v10, %v922_v9  ;;  %v955_v55 = vpop.permute.xlu0 %954  ;;  %v881_v9 = vadd.f32 %v865_v0, %v713_v42 }
 0x158   :  { %v975_v51 = vsel %vm382_vm7, %v949_v3, %v957_v33  ;;  %v974_v54 = vsel %vm382_vm7, %v947_v4, %v955_v55  ;;  %v4292_v3 = vadd.f32 %v5256_v11, %v879_v50 }
 0x159   :  { %v1068_v45 = vadd.f32 %v4140_v49, %v1029_v19  ;;  %v1014_v26 = vmul.f32 %v4143_v14, %v975_v51  ;;  %v4284_v27 = vadd.f32 %v4140_v49, %v1025_v57  ;;  %v1010_v2 = vmul.f32 %v4143_v14, %v974_v54 }
 0x15b   :  { %v1100_v39 = vmul.f32 0.044715, %v1068_v45  ;;  %v1030_v28 = vadd.f32 %v1014_v26, %v4187_v32  ;;  %v965_v62 = vpop.permute.xlu1 %964  ;;  %v1096_v61 = vmul.f32 0.044715, %v4284_v27  ;;  %v1026_v52 = vadd.f32 %v1010_v2, %v4190_v53  ;;  %v963_v21 = vpop.permute.xlu0 %962 }
 0x15c   :  { %v971_v56 = vsel %vm382_vm7, %v957_v33, %v965_v62  ;;  %v983_v60 = vsel %vm382_vm7, %v965_v62, %v941_v35  ;;  %v970_v53 = vsel %vm382_vm7, %v955_v55, %v963_v21  ;;  %v982_v35 = vsel %vm382_vm7, %v963_v21, %v4235_v25 }
 0x15d   :  { %v1116_v31 = vmul.f32 %v1100_v39, %v1068_v45  ;;  %v4301_v4 = vadd.f32 %v4152_v15, %v1030_v28  ;;  %v1015_v32 = vmul.f32 %v4155_v12, %v971_v56  ;;  %v1016_v38 = vmul.f32 %v4167_v6, %v983_v60 }
 0x15e   :  { %v1112_v47 = vmul.f32 %v1096_v61, %v4284_v27  ;;  %v4307_v20 = vadd.f32 %v4152_v15, %v1026_v52  ;;  %v1011_v5 = vmul.f32 %v4155_v12, %v970_v53  ;;  %v1012_v19 = vmul.f32 %v4167_v6, %v982_v35 }
 0x15f   :  { %v1132_v29 = vmul.f32 %v1116_v31, %v1068_v45  ;;  %v1101_v44 = vmul.f32 0.044715, %v4301_v4  ;;  %v1031_v42 = vadd.f32 %v1015_v32, %v4193_v8  ;;  %v1032_v13 = vadd.f32 %v1016_v38, %v929_v37  ;;  %v951_v0 = vpop.permute.xlu1 %950  ;;  %v943_v33 = vpop.permute.xlu0 %942 }
 0x160   :  { %v1128_v10 = vmul.f32 %v1112_v47, %v4284_v27  ;;  %v1097_v50 = vmul.f32 0.044715, %v4307_v20  ;;  %v1027_v55 = vadd.f32 %v1011_v5, %v4205_v16  ;;  %v1028_v58 = vadd.f32 %v1012_v19, %v4245_v46 }
 0x161   :  { %v1148_v43 = vadd.f32 %v1132_v29, %v1068_v45  ;;  %v1117_v57 = vmul.f32 %v1101_v44, %v4301_v4  ;;  %v1070_v25 = vadd.f32 %v4170_v1, %v1031_v42  ;;  %v1071_v51 = vadd.f32 %v4176_v30, %v1032_v13 }
 0x162   :  { %v1144_v8 = vadd.f32 %v1128_v10, %v4284_v27  ;;  %v1113_v37 = vmul.f32 %v1097_v50, %v4307_v20  ;;  %v4329_v2 = vadd.f32 %v5257_v17, %v882_v23  ;;  %v4332_v39 = vadd.f32 %v5258_v48, %v881_v9 }
 0x163   :  { %v1164_v18 = vmul.f32 0.7978846, %v1148_v43  ;;  %v1133_v26 = vmul.f32 %v1117_v57, %v4301_v4  ;;  %v967_v54 = vpop.permute.xlu1 %966  ;;  %v1102_v11 = vmul.f32 0.044715, %v1070_v25  ;;  %v1103_v61 = vmul.f32 0.044715, %v1071_v51  ;;  %v959_v52 = vpop.permute.xlu0 %958 }
 0x164   :  { %v1160_v28 = vmul.f32 0.7978846, %v1144_v8  ;;  %v1129_v62 = vmul.f32 %v1113_v37, %v4307_v20  ;;  %v1066_v46 = vadd.f32 %v4170_v1, %v1027_v55  ;;  %v4338_v56 = vadd.f32 %v4176_v30, %v1028_v58 }
 0x165   :  { %v1149_v16 = vadd.f32 %v1133_v26, %v4301_v4  ;;  %v4340_v60 = vmul.f32 0.5, %v1068_v45  ;;  %v4343_v21 = vmul.f32 0.5, %v1070_v25  ;;  %v1118_v9 = vmul.f32 %v1102_v11, %v1070_v25 }
 0x166   :  { %v1145_v23 = vadd.f32 %v1129_v62, %v4307_v20  ;;  %v1119_v31 = vmul.f32 %v1103_v61, %v1071_v51  ;;  %2820 = vtanh.f32 %v1164_v18  ;;  %v4345_v38 = vmul.f32 0.5, %v1071_v51 }
 0x167   :  { %v1165_v32 = vmul.f32 0.7978846, %v1149_v16  ;;  %v1098_v47 = vmul.f32 0.044715, %v1066_v46  ;;  %2822 = vtanh.f32 %v1160_v28  ;;  %v1134_v53 = vmul.f32 %v1118_v9, %v1070_v25  ;;  %v953_v44 = vpop.permute.xlu1 %952 }
 0x168   :  { %v1135_v35 = vmul.f32 %v1119_v31, %v1071_v51  ;;  %v1099_v29 = vmul.f32 0.044715, %v4338_v56  ;;  %v1161_v42 = vmul.f32 0.7978846, %v1145_v23  ;;  %v980_v13 = vsel %vm382_vm7, %v943_v33, %v951_v0  ;;  %v945_v43 = vpop.permute.xlu0 %944 }
 0x169   :  { %v1114_v45 = vmul.f32 %v1098_v47, %v1066_v46  ;;  %v984_v10 = vsel %vm382_vm7, %v967_v54, %v943_v33  ;;  %2824 = vtanh.f32 %v1165_v32  ;;  %v1150_v50 = vadd.f32 %v1134_v53, %v1070_v25 }
 0x16a   :  { %v1151_v5 = vadd.f32 %v1135_v35, %v1071_v51  ;;  %v1115_v19 = vmul.f32 %v1099_v29, %v4338_v56  ;;  %v1017_v8 = vmul.f32 %v4137_v34, %v980_v13  ;;  %v1020_v37 = vmul.f32 %v4167_v6, %v984_v10 }
 0x16b   :  { %v1130_v57 = vmul.f32 %v1114_v45, %v1066_v46  ;;  %v972_v55 = vsel %vm382_vm7, %v959_v52, %v967_v54  ;;  %v1166_v58 = vmul.f32 0.7978846, %v1150_v50  ;;  %v976_v33 = vsel %vm382_vm7, %v951_v0, %v959_v52  ;;  %v969_v11 = vpop.permute.xlu1 %968 }
 0x16c   :  { %v1167_v18 = vmul.f32 0.7978846, %v1151_v5  ;;  %v1131_v26 = vmul.f32 %v1115_v19, %v4338_v56  ;;  %v1033_v51 = vadd.f32 %v1017_v8, %v4271_v36  ;;  %v1036_v17 = vadd.f32 %v1020_v37, %v4274_v41  ;;  %v961_v23 = vpop.permute.xlu0 %960 }
 0x16d   :  { %v1146_v25 = vadd.f32 %v1130_v57, %v1066_v46  ;;  %v1018_v48 = vmul.f32 %v4143_v14, %v976_v33  ;;  %2826 = vtanh.f32 %v1161_v42  ;;  %v1019_v62 = vmul.f32 %v4155_v12, %v972_v55 }
 0x16e   :  { %v1147_v28 = vadd.f32 %v1131_v26, %v4338_v56  ;;  %v981_v54 = vsel %vm382_vm7, %v945_v43, %v953_v44  ;;  %2828 = vtanh.f32 %v1166_v58  ;;  %v4367_v61 = vmul.f32 0.5, %v1066_v46 }
 0x16f   :  { %v4370_v0 = vadd.f32 %v4140_v49, %v1033_v51  ;;  %v4373_v36 = vadd.f32 %v4176_v30, %v1036_v17  ;;  %2830 = vtanh.f32 %v1167_v18  ;;  %v1034_v41 = vadd.f32 %v1018_v48, %v4266_v7 }
 0x170   :  { %v1035_v52 = vadd.f32 %v1019_v62, %v4281_v24  ;;  %v1021_v16 = vmul.f32 %v4137_v34, %v981_v54  ;;  %v2821_v9 = vpop.eup %2820  ;;  %v1162_v31 = vmul.f32 0.7978846, %v1146_v25  ;;  %v985_v47 = vsel %vm382_vm7, %v969_v11, %v945_v43 }
 0x171   :  { %v1104_v32 = vmul.f32 0.044715, %v4370_v0  ;;  %v1107_v46 = vmul.f32 0.044715, %v4373_v36  ;;  %v2823_v53 = vpop.eup %2822  ;;  %v1163_v35 = vmul.f32 0.7978846, %v1147_v28  ;;  %v4383_v29 = vadd.f32 %v4152_v15, %v1034_v41 }
 0x172   :  { %v4386_v7 = vadd.f32 %v4170_v1, %v1035_v52  ;;  %v1037_v34 = vadd.f32 %v1021_v16, %v4292_v3  ;;  %v1024_v45 = vmul.f32 %v4167_v6, %v985_v47  ;;  %v973_v13 = vsel %vm382_vm7, %v961_v23, %v969_v11 }
 0x173   :  { %v1120_v24 = vmul.f32 %v1104_v32, %v4370_v0  ;;  %v1123_v42 = vmul.f32 %v1107_v46, %v4373_v36  ;;  %v4394_v10 = vpop.eup %2824  ;;  %v1105_v50 = vmul.f32 0.044715, %v4383_v29  ;;  %v977_v3 = vsel %vm382_vm7, %v953_v44, %v961_v23 }
 0x174   :  { %v1106_v5 = vmul.f32 0.044715, %v4386_v7  ;;  %v1076_v19 = vadd.f32 %v4140_v49, %v1037_v34  ;;  %v1040_v6 = vadd.f32 %v1024_v45, %v4329_v2  ;;  %v1022_v8 = vmul.f32 %v4143_v14, %v977_v3 }
 0x175   :  { %v1136_v43 = vmul.f32 %v1120_v24, %v4370_v0  ;;  %v1139_v57 = vmul.f32 %v1123_v42, %v4373_v36  ;;  %v1121_v37 = vmul.f32 %v1105_v50, %v4383_v29  ;;  %v1023_v18 = vmul.f32 %v4155_v12, %v973_v13 }
 0x176   :  { %v1122_v55 = vmul.f32 %v1106_v5, %v4386_v7  ;;  %v1108_v58 = vmul.f32 0.044715, %v1076_v19  ;;  %2832 = vtanh.f32 %v1162_v31  ;;  %v4410_v44 = vadd.f32 %v4176_v30, %v1040_v6 }
 0x177   :  { %v1155_v49 = vadd.f32 %v1139_v57, %v4373_v36  ;;  %v1038_v26 = vadd.f32 %v1022_v8, %v4288_v59  ;;  %v2827_v33 = vpop.eup %2826  ;;  %v1137_v2 = vmul.f32 %v1121_v37, %v4383_v29  ;;  %v1039_v51 = vadd.f32 %v1023_v18, %v4332_v39 }
 0x178   :  { %v1138_v14 = vmul.f32 %v1122_v55, %v4386_v7  ;;  %v1124_v25 = vmul.f32 %v1108_v58, %v1076_v19  ;;  %v2829_v17 = vpop.eup %2828  ;;  %v1152_v48 = vadd.f32 %v1136_v43, %v4370_v0  ;;  %v1111_v28 = vmul.f32 0.044715, %v4410_v44 }
 0x179   :  { %v1171_v12 = vmul.f32 0.7978846, %v1155_v49  ;;  %v1077_v62 = vadd.f32 %v4152_v15, %v1038_v26  ;;  %v2831_v30 = vpop.eup %2830  ;;  %2834 = vtanh.f32 %v1163_v35  ;;  %v1078_v11 = vadd.f32 %v4170_v1, %v1039_v51 }
 0x17a   :  { %v1154_v59 = vadd.f32 %v1138_v14, %v4386_v7  ;;  %v1140_v54 = vmul.f32 %v1124_v25, %v1076_v19  ;;  %v1127_v41 = vmul.f32 %v1111_v28, %v4410_v44  ;;  %v1080_v39 = vmul.f32 0.5, %v4284_v27 }
 0x17b   :  { %2836 = vtanh.f32 %v1171_v12  ;;  %v1109_v52 = vmul.f32 0.044715, %v1077_v62  ;;  %v1153_v16 = vadd.f32 %v1137_v2, %v4383_v29  ;;  %v1110_v31 = vmul.f32 0.044715, %v1078_v11 }
 0x17c   :  { %v1170_v23 = vmul.f32 0.7978846, %v1154_v59  ;;  %v1156_v32 = vadd.f32 %v1140_v54, %v1076_v19  ;;  %v1143_v15 = vmul.f32 %v1127_v41, %v4410_v44  ;;  %v1168_v47 = vmul.f32 0.7978846, %v1152_v48 }
 0x17d   :  { %v1125_v46 = vmul.f32 %v1109_v52, %v1077_v62  ;;  %v1192_v35 = vadd.f32 1.0, %v2823_v53  ;;  %v1126_v34 = vmul.f32 %v1110_v31, %v1078_v11  ;;  %v1196_v1 = vadd.f32 1.0, %v2821_v9 }
 0x17e   :  { %2838 = vtanh.f32 %v1170_v23  ;;  %v1172_v24 = vmul.f32 0.7978846, %v1156_v32  ;;  %v1083_v42 = vmul.f32 0.5, %v4338_v56  ;;  %v1088_v13 = vmul.f32 0.5, %v4370_v0 }
 0x17f   :  { %v1141_v45 = vmul.f32 %v1125_v46, %v1077_v62  ;;  %2840 = vtanh.f32 %v1168_v47  ;;  %v1142_v27 = vmul.f32 %v1126_v34, %v1078_v11  ;;  %v4427_v50 = vmul.f32 %v1192_v35, %v1080_v39 }
 0x180   :  { %2842 = vtanh.f32 %v1172_v24  ;;  %v4430_v5 = vmul.f32 %v1196_v1, %v4340_v60  ;;  %v2833_v3 = vpop.eup %2832  ;;  %v1159_v53 = vadd.f32 %v1143_v15, %v4410_v44  ;;  %v1092_v43 = vmul.f32 0.5, %v1076_v19 }
 0x181   :  { %v1081_v57 = vmul.f32 0.5, %v4307_v20  ;;  %v1157_v9 = vadd.f32 %v1141_v45, %v1077_v62  ;;  %v1158_v6 = vadd.f32 %v1142_v27, %v1078_v11  ;;  %v1085_v56 = vmul.f32 0.5, %v4301_v4 }
 0x182   :  { %v1169_v8 = vmul.f32 0.7978846, %v1153_v16  ;;  %v1193_v0 = vadd.f32 1.0, %v2827_v33  ;;  %v4436_v37 = vmul.f32 0.5, %v4383_v29  ;;  %v4438_v55 = vmul.f32 0.5, %v1077_v62 }
 0x183   :  { %v1173_v58 = vmul.f32 0.7978846, %v1157_v9  ;;  %v1197_v60 = vadd.f32 1.0, %v4394_v10  ;;  %v2835_v18 = vpop.eup %2834  ;;  %v1224_v19 = vadd.f32 %v4430_v5, %v4427_v50  ;;  %v1174_v20 = vmul.f32 0.7978846, %v1158_v6 }
 0x184   :  { %2844 = vtanh.f32 %v1169_v8  ;;  %v1194_v49 = vadd.f32 1.0, %v2833_v3  ;;  %v4443_v4 = vmul.f32 %v1193_v0, %v1081_v57  ;;  %v1090_v33 = vmul.f32 0.5, %v4386_v7 }
 0x185   :  { %v2837_v26 = vpop.eup %2836  ;;  %2846 = vtanh.f32 %v1173_v58  ;;  %v1198_v29 = vadd.f32 1.0, %v2829_v17  ;;  %v4446_v2 = vmul.f32 %v1197_v60, %v1085_v56  ;;  %v1175_v10 = vmul.f32 0.7978846, %v1159_v53 }
 0x186   :  { %2848 = vtanh.f32 %v1174_v20  ;;  %v4449_v14 = vmul.f32 %v1194_v49, %v4367_v61  ;;  %v1094_v25 = vmul.f32 0.5, %v1078_v11  ;;  %v1195_v48 = vadd.f32 1.0, %v2835_v18 }
 0x187   :  { %v4452_v51 = vmul.f32 %v1198_v29, %v4343_v21  ;;  %v1199_v12 = vadd.f32 1.0, %v2831_v30  ;;  %2850 = vtanh.f32 %v1175_v10  ;;  %v1203_v62 = vadd.f32 1.0, %v2837_v26 }
 0x188   :  { %v2839_v28 = vpop.eup %2838  ;;  %v1260_v7 = vmul.f32 %v4427_v50, %v4427_v50  ;;  %v1264_v17 = vmul.f32 %v4430_v5, %v4430_v5  ;;  %v1091_v61 = vmul.f32 0.5, %v4373_v36  ;;  %v4459_v41 = vmul.f32 %v1195_v48, %v1083_v42 }
 0x189   :  { %v2841_v59 = vpop.eup %2840  ;;  %v1202_v54 = vadd.f32 1.0, %v2839_v28  ;;  %v4462_v21 = vmul.f32 %v1199_v12, %v4345_v38  ;;  %v1233_v52 = vadd.f32 %v4446_v2, %v4443_v4  ;;  %v1242_v39 = vadd.f32 %v4452_v51, %v4449_v14 }
 0x18a   :  { %v2843_v11 = vpop.eup %2842  ;;  %v1200_v30 = vadd.f32 1.0, %v2841_v59  ;;  %v1095_v16 = vmul.f32 0.5, %v4410_v44  ;;  %v4471_v32 = vmul.f32 %v1203_v62, %v1091_v61  ;;  %v1276_v36 = vadd.f32 %v1264_v17, %v1260_v7 }
 0x18b   :  { %v1204_v23 = vadd.f32 1.0, %v2843_v11  ;;  %v4469_v31 = vmul.f32 %v1202_v54, %v1090_v33  ;;  %v1261_v38 = vmul.f32 %v4443_v4, %v4443_v4  ;;  %v1262_v46 = vmul.f32 %v4449_v14, %v4449_v14 }
 0x18c   :  { %v4473_v15 = vmul.f32 %v1200_v30, %v1088_v13  ;;  %v1266_v47 = vmul.f32 %v4452_v51, %v4452_v51  ;;  %v1251_v44 = vadd.f32 %v4462_v21, %v4459_v41  ;;  %v1265_v34 = vmul.f32 %v4446_v2, %v4446_v2 }
 0x18d   :  { %v4481_v35 = vmul.f32 %v1204_v23, %v1092_v43  ;;  %v1263_v24 = vmul.f32 %v4459_v41, %v4459_v41  ;;  %v1243_v45 = vadd.f32 %v1242_v39, %v4469_v31  ;;  %v1270_v27 = vmul.f32 %v4469_v31, %v4469_v31 }
 0x18e   :  { %v2845_v1 = vpop.eup %2844  ;;  %v1225_v42 = vadd.f32 %v1224_v19, %v4473_v15  ;;  %v1268_v13 = vmul.f32 %v4473_v15, %v4473_v15  ;;  %v1252_v43 = vadd.f32 %v1251_v44, %v4471_v32  ;;  %v1294_v9 = vadd.f32 %v1266_v47, %v1262_v46 }
 0x18f   :  { %v2847_v3 = vpop.eup %2846  ;;  %v1201_v53 = vadd.f32 1.0, %v2845_v1  ;;  %v1272_v57 = vmul.f32 %v4481_v35, %v4481_v35  ;;  %v1267_v58 = vmul.f32 %v4462_v21, %v4462_v21  ;;  %v1285_v19 = vadd.f32 %v1265_v34, %v1261_v38 }
 0x190   :  { %v2849_v6 = vpop.eup %2848  ;;  %v1226_v56 = vadd.f32 %v1225_v42, %v4481_v35  ;;  %v1205_v8 = vadd.f32 1.0, %v2847_v3  ;;  %v1277_v0 = vadd.f32 %v1276_v36, %v1268_v13  ;;  %v1271_v20 = vmul.f32 %v4471_v32, %v4471_v32 }
 0x191   :  { %v4502_v60 = vmul.f32 %v1201_v53, %v4436_v37  ;;  %v1206_v18 = vadd.f32 1.0, %v2849_v6  ;;  %v2851_v49 = vpop.eup %2850  ;;  %v1295_v10 = vadd.f32 %v1294_v9, %v1270_v27  ;;  %v1303_v59 = vadd.f32 %v1267_v58, %v1263_v24 }
 0x192   :  { %v1227_v26 = vrot.slane %v1226_v56, 4  ;;  %v4507_v33 = vmul.f32 %v1205_v8, %v4438_v55  ;;  %v1278_v29 = vadd.f32 %v1277_v0, %v1272_v57  ;;  %v1207_v28 = vadd.f32 1.0, %v2851_v49 }
 0x193   :  { %v1234_v48 = vadd.f32 %v1233_v52, %v4502_v60  ;;  %v4510_v12 = vmul.f32 %v1206_v18, %v1094_v25  ;;  %v1269_v37 = vmul.f32 %v4502_v60, %v4502_v60  ;;  %v1304_v39 = vadd.f32 %v1303_v59, %v1271_v20 }
 0x194   :  { %v1228_v62 = vadd.f32 %v1227_v26, %v1226_v56  ;;  %v1279_v7 = vrot.slane %v1278_v29, 4  ;;  %v1273_v17 = vmul.f32 %v4507_v33, %v4507_v33  ;;  %v4518_v61 = vmul.f32 %v1207_v28, %v1095_v16 }
 0x195   :  { %v1235_v54 = vadd.f32 %v1234_v48, %v4507_v33  ;;  %v1244_v55 = vadd.f32 %v1243_v45, %v4510_v12  ;;  %v1286_v11 = vadd.f32 %v1285_v19, %v1269_v37  ;;  %v1274_v52 = vmul.f32 %v4510_v12, %v4510_v12 }
 0x196   :  { %v1229_v30 = vrot.slane %v1228_v62, 2  ;;  %v1280_v25 = vadd.f32 %v1279_v7, %v1278_v29  ;;  %v1253_v38 = vadd.f32 %v1252_v43, %v4518_v61  ;;  %v1275_v24 = vmul.f32 %v4518_v61, %v4518_v61 }
 0x197   :  { %v1236_v23 = vrot.slane %v1235_v54, 4  ;;  %v1245_v36 = vrot.slane %v1244_v55, 4  ;;  %v1287_v46 = vadd.f32 %v1286_v11, %v1273_v17  ;;  %v1296_v34 = vadd.f32 %v1295_v10, %v1274_v52 }
 0x198   :  { %v1230_v47 = vadd.f32 %v1229_v30, %v1228_v62  ;;  %v1281_v44 = vrot.slane %v1280_v25, 2  ;;  %v1254_v42 = vrot.slane %v1253_v38, 4  ;;  %v1305_v3 = vadd.f32 %v1304_v39, %v1275_v24 }
 0x199   :  { %v1237_v16 = vadd.f32 %v1236_v23, %v1235_v54  ;;  %v1246_v1 = vadd.f32 %v1245_v36, %v1244_v55  ;;  %v1288_v45 = vrot.slane %v1287_v46, 4  ;;  %v1297_v27 = vrot.slane %v1296_v34, 4 }
 0x19a   :  { %v1231_v13 = vrot.slane %v1230_v47, 1  ;;  %v1255_v9 = vadd.f32 %v1254_v42, %v1253_v38  ;;  %v1282_v43 = vadd.f32 %v1281_v44, %v1280_v25  ;;  %v1306_v0 = vrot.slane %v1305_v3, 4 }
 0x19b   :  { %v1238_v53 = vrot.slane %v1237_v16, 2  ;;  %v1247_v57 = vrot.slane %v1246_v1, 2  ;;  %v1289_v6 = vadd.f32 %v1288_v45, %v1287_v46  ;;  %v1298_v8 = vadd.f32 %v1297_v27, %v1296_v34 }
 0x19c   :  { %v1232_v56 = vadd.f32 %v1231_v13, %v1230_v47  ;;  %v1256_v19 = vrot.slane %v1255_v9, 2  ;;  %v1307_v26 = vadd.f32 %v1306_v0, %v1305_v3  ;;  %v1283_v28 = vrot.slane %v1282_v43, 1 }
 0x19d   :  { %v1239_v58 = vadd.f32 %v1238_v53, %v1237_v16  ;;  %v1248_v18 = vadd.f32 %v1247_v57, %v1246_v1  ;;  %v1290_v20 = vrot.slane %v1289_v6, 2  ;;  %v1299_v49 = vrot.slane %v1298_v8, 2 }
 0x19e   :  { %1312 = vrot.lane.b32.xlu0 %v1232_v56, %s3011_s25  ;;  %v1257_v48 = vadd.f32 %v1256_v19, %v1255_v9  ;;  %v1308_v54 = vrot.slane %v1307_v26, 2  ;;  %v1284_v55 = vadd.f32 %v1283_v28, %v1282_v43 }
 0x19f   :  { %v1240_v29 = vrot.slane %v1239_v58, 1  ;;  %v1249_v10 = vrot.slane %v1248_v18, 1  ;;  %v1291_v37 = vadd.f32 %v1290_v20, %v1289_v6  ;;  %v1300_v62 = vadd.f32 %v1299_v49, %v1298_v8  ;;  %v1541_v49 = vld [vmem:[#allocation7] sm:$0xff] }
 0x1a0   :  { %v1258_v59 = vrot.slane %v1257_v48, 1  ;;  %v1309_v52 = vadd.f32 %v1308_v54, %v1307_v26  ;;  %v1542_v26 = vld [vmem:[#allocation7 + $0x8] sm:$0xff] }
 0x1a1   :  { %v1241_v7 = vadd.f32 %v1240_v29, %v1239_v58  ;;  %v1250_v17 = vadd.f32 %v1249_v10, %v1248_v18  ;;  %v1292_v30 = vrot.slane %v1291_v37, 1  ;;  %v1301_v25 = vrot.slane %v1300_v62, 1  ;;  %v1543_v29 = vld [vmem:[#allocation7 + $0x10] sm:$0xff] }
 0x1a2   :  { %v1259_v11 = vadd.f32 %v1258_v59, %v1257_v48  ;;  %v1310_v36 = vrot.slane %v1309_v52, 1  ;;  %v4581_v10 = vpack.c.bf16 %v1542_v26, %v1541_v49  ;;  %v1544_v48 = vld [vmem:[#allocation7 + $0x18] sm:$0xff] }
 0x1a3   :  { %1314 = vrot.lane.b32.xlu1 %v1241_v7, %s3011_s25  ;;  %1316 = vrot.lane.b32.xlu0 %v1250_v17, %s3011_s25  ;;  %v1293_v39 = vadd.f32 %v1292_v30, %v1291_v37  ;;  %v1302_v23 = vadd.f32 %v1301_v25, %v1300_v62  ;;  %v4583_v28 = vpack.c.bf16 %v1544_v48, %v1543_v29  ;;  %v1545_v37 = vld [vmem:[#allocation7 + $0x20] sm:$0xff]  ;;  %v1546_v62 = vld [vmem:[#allocation7 + $0x28] sm:$0xff]  ;;  %v1548_v59 = vld [vmem:[#allocation7 + $0x38] sm:$0xff] }
 0x1a4   :  { %v1311_v38 = vadd.f32 %v1310_v36, %v1309_v52  ;;  %2682 = vmatprep.subr.bf16.mxu0 %v4581_v10  ;;  %2714 = vmatprep.subr.bf16.mxu1 %v4581_v10  ;;  %v1551_v25 = vld [vmem:[#allocation7 + $0x50] sm:$0xff]  ;;  %v1552_v52 = vld [vmem:[#allocation7 + $0x58] sm:$0xff]  ;;  %v1554_v36 = vld [vmem:[#allocation7 + $0x68] sm:$0xff] }
 0x1a5   :  { %2684 = vmatpush3.bf16.msra.mxu0 %v4581_v10  ;;  %2716 = vmatpush3.bf16.msra.mxu1 %v4581_v10 }
 0x1a6   :  { %2686 = vmatprep.subr.bf16.mxu0 %v4583_v28  ;;  %2718 = vmatprep.subr.bf16.mxu1 %v4583_v28 }
 0x1a7   :  { %1318 = vrot.lane.b32.xlu1 %v1259_v11, %s3011_s25  ;;  %1351 = vrot.lane.b32.xlu0 %v1284_v55, %s3011_s25 }
 0x1a9   :  { %2688 = vmatpush3.bf16.msra.mxu0 %v4583_v28  ;;  %2720 = vmatpush3.bf16.msra.mxu1 %v4583_v28 }
 0x1ab   :  { %1353 = vrot.lane.b32.xlu1 %v1293_v39, %s3011_s25  ;;  %1355 = vrot.lane.b32.xlu0 %v1302_v23, %s3011_s25 }
 0x1af   :  { %1357 = vrot.lane.b32.xlu1 %v1311_v38, %s3011_s25 }
 0x210   :  { %v1313_v46 = vpop.permute.xlu0 %1312 }
 0x215   :  { %v1315_v47 = vpop.permute.xlu1 %1314  ;;  %v1317_v44 = vpop.permute.xlu0 %1316 }
 0x216   :  { %v1322_v34 = vsel %vm224_vm6, %v1313_v46, %v1315_v47  ;;  %v1321_v3 = vsel %vm224_vm6, %v1315_v47, %v1317_v44  ;;  %v1556_v47 = vld [vmem:[#allocation7 + $0x78] sm:$0xff] }
 0x217   :  { %v4535_v24 = vadd.f32 %v1322_v34, %v1241_v7  ;;  %v4555_v9 = vadd.f32 %v1321_v3, %v1250_v17  ;;  %v4591_v7 = vpack.c.bf16 %v1546_v62, %v1545_v37  ;;  %v1547_v17 = vld [vmem:[#allocation7 + $0x30] sm:$0xff] }
 0x218   :  { %v4597_v54 = vpack.c.bf16 %v1548_v59, %v1547_v17 }
 0x219   :  { %v1319_v16 = vpop.permute.xlu1 %1318  ;;  %1330 = vrot.lane.b32.xlu1 %v4535_v24, %s3016_s23  ;;  %v1352_v27 = vpop.permute.xlu0 %1351  ;;  %2690 = vmatprep.subr.bf16.mxu0 %v4591_v7 }
 0x21a   :  { %v1320_v1 = vsel %vm224_vm6, %v1317_v44, %v1319_v16  ;;  %v1323_v42 = vsel %vm224_vm6, %v1319_v16, %v1313_v46  ;;  %2722 = vmatprep.subr.bf16.mxu1 %v4591_v7  ;;  %2692 = vmatpush3.bf16.msra.mxu0 %v4591_v7  ;;  %v1555_v46 = vld [vmem:[#allocation7 + $0x70] sm:$0xff] }
 0x21b   :  { %v4543_v45 = vadd.f32 %v1323_v42, %v1232_v56  ;;  %v4545_v13 = vadd.f32 %v1320_v1, %v1259_v11  ;;  %v1550_v11 = vld [vmem:[#allocation7 + $0x48] sm:$0xff]  ;;  %2724 = vmatpush3.bf16.msra.mxu1 %v4591_v7  ;;  %2694 = vmatprep.subr.bf16.mxu0 %v4597_v54  ;;  %v4621_v44 = vpack.c.bf16 %v1556_v47, %v1555_v46 }
 0x21c   :  { %2726 = vmatprep.subr.bf16.mxu1 %v4597_v54 }
 0x21d   :  { %v1354_v53 = vpop.permute.xlu1 %1353  ;;  %1328 = vrot.lane.b32.xlu0 %v4543_v45, %s3016_s23  ;;  %1334 = vrot.lane.b32.xlu1 %v4545_v13, %s3016_s23  ;;  %v1356_v56 = vpop.permute.xlu0 %1355 }
 0x21e   :  { %v1361_v57 = vsel %vm224_vm6, %v1352_v27, %v1354_v53  ;;  %v1360_v19 = vsel %vm224_vm6, %v1354_v53, %v1356_v56  ;;  %2696 = vmatpush3.bf16.msra.mxu0 %v4597_v54 }
 0x21f   :  { %v4557_v6 = vadd.f32 %v1361_v57, %v1293_v39  ;;  %v4577_v20 = vadd.f32 %v1360_v19, %v1302_v23  ;;  %2728 = vmatpush3.bf16.msra.mxu1 %v4597_v54  ;;  %v4609_v39 = vpack.c.bf16 %v1552_v52, %v1551_v25  ;;  %v1553_v23 = vld [vmem:[#allocation7 + $0x60] sm:$0xff] }
 0x221   :  { %v1358_v43 = vpop.permute.xlu1 %1357  ;;  %1332 = vrot.lane.b32.xlu0 %v4555_v9, %s3016_s23  ;;  %1369 = vrot.lane.b32.xlu1 %v4557_v6, %s3016_s23 }
 0x222   :  { %v1359_v8 = vsel %vm224_vm6, %v1356_v56, %v1358_v43  ;;  %v1362_v0 = vsel %vm224_vm6, %v1358_v43, %v1352_v27 }
 0x223   :  { %v4567_v58 = vadd.f32 %v1362_v0, %v1284_v55  ;;  %v4569_v18 = vadd.f32 %v1359_v8, %v1311_v38  ;;  %v1549_v55 = vld [vmem:[#allocation7 + $0x40] sm:$0xff]  ;;  %v4615_v38 = vpack.c.bf16 %v1554_v36, %v1553_v23 }
 0x224   :  { %v4603_v30 = vpack.c.bf16 %v1550_v11, %v1549_v55 }
 0x225   :  { %1367 = vrot.lane.b32.xlu0 %v4567_v58, %s3016_s23  ;;  %1373 = vrot.lane.b32.xlu1 %v4569_v18, %s3016_s23 }
 0x226   :  { %2698 = vmatprep.subr.bf16.mxu0 %v4603_v30  ;;  %2730 = vmatprep.subr.bf16.mxu1 %v4603_v30 }
 0x227   :  { %2700 = vmatpush3.bf16.msra.mxu0 %v4603_v30  ;;  %2732 = vmatpush3.bf16.msra.mxu1 %v4603_v30 }
 0x228   :  { %2702 = vmatprep.subr.bf16.mxu0 %v4609_v39  ;;  %2734 = vmatprep.subr.bf16.mxu1 %v4609_v39 }
 0x229   :  { %1371 = vrot.lane.b32.xlu0 %v4577_v20, %s3016_s23 }
 0x22b   :  { %2704 = vmatpush3.bf16.msra.mxu0 %v4609_v39  ;;  %2736 = vmatpush3.bf16.msra.mxu1 %v4609_v39 }
 0x22c   :  { %2706 = vmatprep.subr.bf16.mxu0 %v4615_v38  ;;  %2738 = vmatprep.subr.bf16.mxu1 %v4615_v38 }
 0x22f   :  { %2708 = vmatpush3.bf16.msra.mxu0 %v4615_v38  ;;  %2740 = vmatpush3.bf16.msra.mxu1 %v4615_v38 }
 0x230   :  { %2710 = vmatprep.subr.bf16.mxu0 %v4621_v44  ;;  %2742 = vmatprep.subr.bf16.mxu1 %v4621_v44 }
 0x233   :  { %2712 = vmatpush3.bf16.msra.mxu0 %v4621_v44  ;;  %2744 = vmatpush3.bf16.msra.mxu1 %v4621_v44 }
 0x234   :  { %2746 = vmatprep.subr.bf16.mxu0 %v4581_v10  ;;  %2778 = vmatprep.subr.bf16.mxu1 %v4581_v10 }
 0x28b   :  { %v1331_v34 = vpop.permute.xlu1 %1330 }
 0x28f   :  { %v1335_v16 = vpop.permute.xlu1 %1334  ;;  %v1329_v1 = vpop.permute.xlu0 %1328 }
 0x290   :  { %v1339_v42 = vsel %vm1336_vm8, %v1329_v1, %v1331_v34  ;;  %v1340_v27 = vsel %vm1336_vm8, %v1335_v16, %v1329_v1 }
 0x291   :  { %v1341_v43 = vadd.f32 %v1340_v27, %v4543_v45  ;;  %v1342_v8 = vadd.f32 %v1339_v42, %v4535_v24 }
 0x293   :  { %v1370_v3 = vpop.permute.xlu1 %1369  ;;  %v1333_v53 = vpop.permute.xlu0 %1332  ;;  %v1346_v62 = vadd.f32 %v1342_v8, %v1341_v43 }
 0x294   :  { %v1337_v57 = vsel %vm1336_vm8, %v1333_v53, %v1335_v16  ;;  %v1338_v56 = vsel %vm1336_vm8, %v1331_v34, %v1333_v53 }
 0x295   :  { %v1343_v0 = vadd.f32 %v1338_v56, %v4555_v9  ;;  %v1344_v19 = vadd.f32 %v1337_v57, %v4545_v13 }
 0x297   :  { %v1345_v49 = vadd.f32 %v1344_v19, %v1341_v43  ;;  %v1347_v26 = vadd.f32 %v1343_v0, %v1342_v8  ;;  %v1348_v29 = vadd.f32 %v1344_v19, %v1343_v0  ;;  %v1374_v48 = vpop.permute.xlu1 %1373  ;;  %v1368_v37 = vpop.permute.xlu0 %1367  ;;  %v5259_v19 = vld [vmem:[#allocation40_spill] sm:$0xff] }
 0x298   :  { %v1377_v17 = vsel %vm1336_vm8, %v1368_v37, %v1370_v3  ;;  %v1378_v59 = vsel %vm1336_vm8, %v1374_v48, %v1368_v37 }
 0x299   :  { %v1349_v55 = vadd.f32 %v1347_v26, %v1345_v49  ;;  %v1350_v45 = vadd.f32 %v1348_v29, %v1346_v62  ;;  %v1379_v24 = vadd.f32 %v1378_v59, %v4567_v58  ;;  %v1380_v9 = vadd.f32 %v1377_v17, %v4557_v6  ;;  %v1487_v26 = vld [vmem:[#allocation5 + $0x23] ss:$8 sm:$0xf] }
 0x29a   :  { %v5260_v62 = vld [vmem:[#allocation39_spill] sm:$0xff] }
 0x29b   :  { %v1372_v11 = vpop.permute.xlu0 %1371  ;;  %v1389_v36 = vmul.f32 0.001953125, %v1349_v55  ;;  %v1390_v46 = vmul.f32 0.001953125, %v1350_v45  ;;  %v1384_v47 = vadd.f32 %v1380_v9, %v1379_v24  ;;  %v1492_v45 = vrot.slane %v1487_v26, %v5259_v19 }
 0x29c   :  { %v1375_v13 = vsel %vm1336_vm8, %v1372_v11, %v1374_v48  ;;  %v1376_v25 = vsel %vm1336_vm8, %v1370_v3, %v1372_v11  ;;  %v1496_v11 = vrot.slane %v1487_v26, %v5260_v62 }
 0x29d   :  { %v1381_v52 = vadd.f32 %v1376_v25, %v4577_v20  ;;  %v1382_v23 = vadd.f32 %v1375_v13, %v4569_v18  ;;  %v1393_v27 = vmul.f32 %v1389_v36, %v1389_v36  ;;  %v1394_v6 = vmul.f32 %v1390_v46, %v1390_v46  ;;  %v1428_v18 = vld [vmem:[#allocation5 + $0x22] ss:$8 sm:$0xf] }
 0x29e   :  { %v1433_v49 = vrot.slane %v1428_v18, %v5259_v19  ;;  %v1441_v29 = vrot.slane %v1428_v18, %v5209_v40  ;;  %v4659_v48 = vrot.slane %v1389_v36, %v5259_v19  ;;  %v4662_v37 = vrot.slane %v1390_v46, %v5259_v19 }
 0x29f   :  { %v1383_v34 = vadd.f32 %v1382_v23, %v1379_v24  ;;  %v1385_v16 = vadd.f32 %v1381_v52, %v1380_v9  ;;  %v1386_v1 = vadd.f32 %v1382_v23, %v1381_v52  ;;  %v1437_v17 = vrot.slane %v1428_v18, %v5260_v62 }
 0x2a0   :  { %v1445_v59 = vrot.slane %v1428_v18, %v5211_v22  ;;  %v4669_v25 = vrot.slane %v1487_v26, %v5209_v40  ;;  %v4672_v52 = vrot.slane %v1487_v26, %v5211_v22  ;;  %v1407_v23 = vsub.f32 %v4427_v50, %v4659_v48 }
 0x2a1   :  { %v1387_v42 = vadd.f32 %v1385_v16, %v1383_v34  ;;  %v1388_v58 = vadd.f32 %v1386_v1, %v1384_v47  ;;  %v1408_v36 = vsub.f32 %v4443_v4, %v4662_v37  ;;  %v1411_v47 = vsub.f32 %v4430_v5, %v4659_v48 }
 0x2a2   :  { %v1412_v16 = vsub.f32 %v4446_v2, %v4662_v37  ;;  %v1415_v1 = vsub.f32 %v4473_v15, %v4659_v48  ;;  %v1416_v50 = vsub.f32 %v4502_v60, %v4662_v37  ;;  %v1419_v4 = vsub.f32 %v4481_v35, %v4659_v48 }
 0x2a3   :  { %v1391_v53 = vmul.f32 0.001953125, %v1387_v42  ;;  %v1392_v57 = vmul.f32 0.001953125, %v1388_v58  ;;  %v1420_v5 = vsub.f32 %v4507_v33, %v4662_v37  ;;  %v1409_v33 = vsub.f32 %v4449_v14, %v4659_v48  ;;  %v2902_v14 = vld [vmem:[#allocation2 + $0x40] sm:$0xff] }
 0x2a5   :  { %v1395_v56 = vsub.f32 %v1391_v53, %v1393_v27  ;;  %v1396_v43 = vsub.f32 %v1392_v57, %v1394_v6 }
 0x2a7   :  { %v1397_v8 = vmax.f32 %v1395_v56, 0.0  ;;  %v1398_v3 = vmax.f32 %v1396_v43, 0.0 }
 0x2a9   :  { %v1423_v0 = vadd.f32 1e-05, %v1397_v8  ;;  %v1424_v20 = vadd.f32 1e-05, %v1398_v3 }
 0x2ab   :  { %2852 = vrsqrt.f32 %v1423_v0 }
 0x2ac   :  { %2854 = vrsqrt.f32 %v1424_v20 }
 0x2b5   :  { %v2853_v55 = vpop.eup %2852 }
 0x2b6   :  { %v2855_v24 = vpop.eup %2854  ;;  %v1450_v9 = vmul.f32 %v2853_v55, %v1433_v49  ;;  %v1452_v13 = vmul.f32 %v2853_v55, %v1441_v29  ;;  %v2898_v49 = vld [vmem:[#allocation2] sm:$0xff]  ;;  %v1410_v55 = vsub.f32 %v4459_v41, %v4662_v37 }
 0x2b7   :  { %v1451_v46 = vmul.f32 %v2855_v24, %v1437_v17  ;;  %v1453_v42 = vmul.f32 %v2855_v24, %v1445_v59  ;;  %v2899_v29 = vld [vmem:[#allocation2 + $0x20] sm:$0xff]  ;;  %v2900_v24 = vld [vmem:[#allocation2 + $0x8] sm:$0xff] }
 0x2b8   :  { %v1457_v34 = vrot.slane %v1450_v9, %v5259_v19  ;;  %v4693_v2 = vrot.slane %v1452_v13, %v5259_v19  ;;  %v2901_v13 = vld [vmem:[#allocation2 + $0x28] sm:$0xff] }
 0x2b9   :  { %v1461_v58 = vrot.slane %v1451_v46, %v5259_v19  ;;  %v4696_v60 = vrot.slane %v1453_v42, %v5259_v19 }
 0x2ba   :  { %v1470_v27 = vmul.f32 %v1457_v34, %v1407_v23  ;;  %v1474_v6 = vmul.f32 %v1457_v34, %v1411_v47  ;;  %v1478_v53 = vmul.f32 %v1457_v34, %v1415_v1  ;;  %v1482_v43 = vmul.f32 %v1457_v34, %v1419_v4  ;;  %v2903_v1 = vld [vmem:[#allocation2 + $0x48] sm:$0xff] }
 0x2bb   :  { %v1471_v57 = vmul.f32 %v1461_v58, %v1408_v36  ;;  %v1475_v15 = vmul.f32 %v1461_v58, %v1412_v16  ;;  %v1479_v56 = vmul.f32 %v1461_v58, %v1416_v50  ;;  %v1483_v0 = vmul.f32 %v1461_v58, %v1420_v5  ;;  %v2905_v50 = vld [vmem:[#allocation2 + $0x68] sm:$0xff]  ;;  %v2906_v5 = vld [vmem:[#allocation2 + $0x10] sm:$0xff] }
 0x2bc   :  { %v1509_v8 = vadd.f32 %v1492_v45, %v1470_v27  ;;  %v1513_v3 = vadd.f32 %v1492_v45, %v1474_v6  ;;  %v1517_v18 = vadd.f32 %v1492_v45, %v1478_v53  ;;  %v1521_v36 = vadd.f32 %v1492_v45, %v1482_v43  ;;  %v2904_v45 = vld [vmem:[#allocation2 + $0x60] sm:$0xff]  ;;  %v2907_v6 = vld [vmem:[#allocation2 + $0x18] sm:$0xff] }
 0x2bd   :  { %v1510_v35 = vadd.f32 %v1496_v11, %v1471_v57  ;;  %v1514_v20 = vadd.f32 %v1496_v11, %v1475_v15  ;;  %v1518_v59 = vadd.f32 %v1496_v11, %v1479_v56  ;;  %v1522_v46 = vadd.f32 %v1496_v11, %v1483_v0 }
 0x2be   :  { %v1525_v26 = vadd.f32 %v2898_v49, %v1509_v8  ;;  %v1529_v17 = vadd.f32 %v2899_v29, %v1513_v3  ;;  %v1472_v47 = vmul.f32 %v4693_v2, %v1409_v33  ;;  %v1473_v34 = vmul.f32 %v4696_v60, %v1410_v55  ;;  %v2909_v8 = vld [vmem:[#allocation2 + $0x38] sm:$0xff]  ;;  %v2910_v3 = vld [vmem:[#allocation2 + $0x50] sm:$0xff] }
 0x2bf   :  { %v1526_v9 = vadd.f32 %v2900_v24, %v1510_v35  ;;  %v1530_v23 = vadd.f32 %v2901_v13, %v1514_v20  ;;  %v1533_v16 = vadd.f32 %v2902_v14, %v1517_v18  ;;  %v1534_v41 = vadd.f32 %v2903_v1, %v1518_v59  ;;  %v2911_v20 = vld [vmem:[#allocation2 + $0x58] sm:$0xff] }
 0x2c0   :  { %2561 = vmatprep.mubr.f32.mxu0 %v1525_v26  ;;  %v1511_v42 = vadd.f32 %v4669_v25, %v1472_v47  ;;  %v1512_v58 = vadd.f32 %v4672_v52, %v1473_v34  ;;  %v1537_v11 = vadd.f32 %v2904_v45, %v1521_v36  ;;  %v1538_v4 = vadd.f32 %v2905_v50, %v1522_v46  ;;  %v2913_v49 = vld [vmem:[#allocation2 + $0x78] sm:$0xff] }
 0x2c1   :  { %2599 = vmatprep.mubr.f32.mxu1 %v1526_v9  ;;  %2562 = vmatmul.mubr.f32.vlgmr.msra.gmra.mrb[0].mxu0 %v1529_v17  ;;  %v4760_v26 = vld [vmem:[#allocation5 + $0x24] ss:$8 sm:$0xf] }
 0x2c2   :  { %2600 = vmatmul.mubr.f32.vlgmr.msra.gmra.mrb[0].mxu1 %v1530_v23  ;;  %2748 = vmatpush3.bf16.msra.mxu0 %v4581_v10  ;;  %v1527_v27 = vadd.f32 %v2906_v5, %v1511_v42  ;;  %v1528_v53 = vadd.f32 %v2907_v6, %v1512_v58 }
 0x2c3   :  { %2780 = vmatpush3.bf16.msra.mxu1 %v4581_v10  ;;  %2564 = vmatprep.mubr.f32.mxu0 %v1533_v16  ;;  %v1413_v10 = vsub.f32 %v4452_v51, %v4659_v48 }
 0x2c4   :  { %2602 = vmatprep.mubr.f32.mxu1 %v1534_v41  ;;  %2750 = vmatprep.subr.bf16.mxu0 %v4583_v28 }
 0x2c5   :  { %2782 = vmatprep.subr.bf16.mxu1 %v4583_v28  ;;  %2565 = vmatmul.mubr.f32.gmra.mrb[2].mxu0 %v1537_v11 }
 0x2c6   :  { %2603 = vmatmul.mubr.f32.gmra.mrb[2].mxu1 %v1538_v4  ;;  %2752 = vmatpush3.bf16.msra.mxu0 %v4583_v28 }
 0x2c7   :  { %2784 = vmatpush3.bf16.msra.mxu1 %v4583_v28  ;;  %2637 = vmatprep.mubr.f32.mxu0 %v1527_v27  ;;  %v1414_v28 = vsub.f32 %v4462_v21, %v4662_v37 }
 0x2c8   :  { %2675 = vmatprep.mubr.f32.mxu1 %v1528_v53  ;;  %2754 = vmatprep.subr.bf16.mxu0 %v4591_v7 }
 0x2c9   :  { %2786 = vmatprep.subr.bf16.mxu1 %v4591_v7  ;;  %v1477_v51 = vmul.f32 %v4696_v60, %v1414_v28 }
 0x2ca   :  { %2756 = vmatpush3.bf16.msra.mxu0 %v4591_v7 }
 0x2cb   :  { %2788 = vmatpush3.bf16.msra.mxu1 %v4591_v7  ;;  %2758 = vmatprep.subr.bf16.mxu0 %v4597_v54  ;;  %v1417_v7 = vsub.f32 %v4469_v31, %v4659_v48  ;;  %v1421_v31 = vsub.f32 %v4510_v12, %v4659_v48  ;;  %v1516_v56 = vadd.f32 %v4672_v52, %v1477_v51 }
 0x2cc   :  { %2790 = vmatprep.subr.bf16.mxu1 %v4597_v54 }
 0x2cd   :  { %v1480_v57 = vmul.f32 %v4693_v2, %v1417_v7  ;;  %v1484_v15 = vmul.f32 %v4693_v2, %v1421_v31 }
 0x2ce   :  { %2760 = vmatpush3.bf16.msra.mxu0 %v4597_v54 }
 0x2cf   :  { %2792 = vmatpush3.bf16.msra.mxu1 %v4597_v54  ;;  %2762 = vmatprep.subr.bf16.mxu0 %v4603_v30  ;;  %v1476_v54 = vmul.f32 %v4693_v2, %v1413_v10  ;;  %v1519_v43 = vadd.f32 %v4669_v25, %v1480_v57  ;;  %v1532_v2 = vadd.f32 %v2909_v8, %v1516_v56 }
 0x2d0   :  { %2794 = vmatprep.subr.bf16.mxu1 %v4603_v30 }
 0x2d1   :  { %v1535_v0 = vadd.f32 %v2910_v3, %v1519_v43 }
 0x2d2   :  { %2764 = vmatpush3.bf16.msra.mxu0 %v4603_v30 }
 0x2d3   :  { %2796 = vmatpush3.bf16.msra.mxu1 %v4603_v30  ;;  %2766 = vmatprep.subr.bf16.mxu0 %v4609_v39  ;;  %v1418_v30 = vsub.f32 %v4471_v32, %v4662_v37  ;;  %v1515_v32 = vadd.f32 %v4669_v25, %v1476_v54 }
 0x2d4   :  { %2798 = vmatprep.subr.bf16.mxu1 %v4609_v39 }
 0x2d5   :  { %v1481_v21 = vmul.f32 %v4696_v60, %v1418_v30 }
 0x2d6   :  { %2768 = vmatpush3.bf16.msra.mxu0 %v4609_v39 }
 0x2d7   :  { %2800 = vmatpush3.bf16.msra.mxu1 %v4609_v39  ;;  %2770 = vmatprep.subr.bf16.mxu0 %v4615_v38  ;;  %v1422_v39 = vsub.f32 %v4518_v61, %v4662_v37  ;;  %v1520_v48 = vadd.f32 %v4672_v52, %v1481_v21  ;;  %v2908_v61 = vld [vmem:[#allocation2 + $0x30] sm:$0xff]  ;;  %v1523_v37 = vadd.f32 %v4669_v25, %v1484_v15 }
 0x2d8   :  { %2802 = vmatprep.subr.bf16.mxu1 %v4615_v38  ;;  %v1903_v25 = vrot.slane %v4760_v26, %v5259_v19 }
 0x2d9   :  { %v1485_v12 = vmul.f32 %v4696_v60, %v1422_v39  ;;  %v1536_v18 = vadd.f32 %v2911_v20, %v1520_v48  ;;  %v2912_v60 = vld [vmem:[#allocation2 + $0x70] sm:$0xff] }
 0x2da   :  { %2772 = vmatpush3.bf16.msra.mxu0 %v4615_v38  ;;  %v1539_v33 = vadd.f32 %v2912_v60, %v1523_v37 }
 0x2db   :  { %2804 = vmatpush3.bf16.msra.mxu1 %v4615_v38  ;;  %2774 = vmatprep.subr.bf16.mxu0 %v4621_v44  ;;  %v1531_v38 = vadd.f32 %v2908_v61, %v1515_v32  ;;  %v1524_v35 = vadd.f32 %v4672_v52, %v1485_v12  ;;  %v1907_v52 = vrot.slane %v4760_v26, %v5260_v62 }
 0x2dc   :  { %2806 = vmatprep.subr.bf16.mxu1 %v4621_v44 }
 0x2de   :  { %2776 = vmatpush3.bf16.msra.mxu0 %v4621_v44 }
 0x2df   :  { %2808 = vmatpush3.bf16.msra.mxu1 %v4621_v44  ;;  %v1540_v44 = vadd.f32 %v2913_v49, %v1524_v35 }
 0x2e1   :  { %2638 = vmatmul.mubr.f32.vlgmr.msra.gmra.mrb[4].mxu0 %v1531_v38 }
 0x2e2   :  { %2676 = vmatmul.mubr.f32.vlgmr.msra.gmra.mrb[4].mxu1 %v1532_v2  ;;  %2640 = vmatprep.mubr.f32.mxu0 %v1535_v0 }
 0x2e3   :  { %2678 = vmatprep.mubr.f32.mxu1 %v1536_v18 }
 0x2e5   :  { %2641 = vmatmul.mubr.f32.gmra.mrb[6].mxu0 %v1539_v33 }
 0x2e6   :  { %2679 = vmatmul.mubr.f32.gmra.mrb[6].mxu1 %v1540_v44 }
 0x394   :  { %v2563_v29 = vpop.f32.mrb[0].mxu0 }
 0x395   :  { %v4766_v17 = vadd.f32 %v2563_v29, %v1903_v25  ;;  %v2601_v59 = vpop.f32.mrb[0].mxu1  ;;  %v1623_v55 = vpop.f32.mrb[1].mxu0 }
 0x396   :  { %v4768_v24 = vadd.f32 %v2601_v59, %v1907_v52  ;;  %v4770_v9 = vadd.f32 %v1903_v25, %v1623_v55  ;;  %v1708_v13 = vpop.f32.mrb[1].mxu1 }
 0x397   :  { %v1956_v23 = vmul.f32 0.044715, %v4766_v17  ;;  %v4773_v36 = vadd.f32 %v1907_v52, %v1708_v13 }
 0x398   :  { %v1957_v46 = vmul.f32 0.044715, %v4768_v24  ;;  %v1952_v47 = vmul.f32 0.044715, %v4770_v9  ;;  %v2566_v16 = vpop.f32.mrb[2].mxu0 }
 0x399   :  { %v1972_v34 = vmul.f32 %v1956_v23, %v4766_v17  ;;  %v1953_v14 = vmul.f32 0.044715, %v4773_v36  ;;  %v2604_v1 = vpop.f32.mrb[2].mxu1  ;;  %v4781_v58 = vadd.f32 %v2566_v16, %v1903_v25  ;;  %v1633_v11 = vpop.f32.mrb[3].mxu0 }
 0x39a   :  { %v1973_v41 = vmul.f32 %v1957_v46, %v4768_v24  ;;  %v1968_v42 = vmul.f32 %v1952_v47, %v4770_v9  ;;  %v4783_v45 = vadd.f32 %v2604_v1, %v1907_v52  ;;  %v1718_v50 = vpop.f32.mrb[3].mxu1  ;;  %v4787_v27 = vadd.f32 %v1903_v25, %v1633_v11 }
 0x39b   :  { %v1988_v4 = vmul.f32 %v1972_v34, %v4766_v17  ;;  %v1969_v5 = vmul.f32 %v1953_v14, %v4773_v36  ;;  %v1964_v10 = vmul.f32 0.044715, %v4781_v58  ;;  %v1929_v21 = vadd.f32 %v1907_v52, %v1718_v50 }
 0x39c   :  { %v1989_v6 = vmul.f32 %v1973_v41, %v4768_v24  ;;  %v1984_v53 = vmul.f32 %v1968_v42, %v4770_v9  ;;  %v1965_v54 = vmul.f32 0.044715, %v4783_v45  ;;  %v1960_v15 = vmul.f32 0.044715, %v4787_v27 }
 0x39d   :  { %v2004_v28 = vadd.f32 %v1988_v4, %v4766_v17  ;;  %v1985_v7 = vmul.f32 %v1969_v5, %v4773_v36  ;;  %v1980_v57 = vmul.f32 %v1964_v10, %v4781_v58  ;;  %v1961_v8 = vmul.f32 0.044715, %v1929_v21 }
 0x39e   :  { %v2005_v30 = vadd.f32 %v1989_v6, %v4768_v24  ;;  %v2000_v51 = vadd.f32 %v1984_v53, %v4770_v9  ;;  %v1981_v32 = vmul.f32 %v1965_v54, %v4783_v45  ;;  %v1976_v38 = vmul.f32 %v1960_v15, %v4787_v27 }
 0x39f   :  { %v2020_v31 = vmul.f32 0.7978846, %v2004_v28  ;;  %v2001_v39 = vadd.f32 %v1985_v7, %v4773_v36  ;;  %v1996_v12 = vmul.f32 %v1980_v57, %v4781_v58  ;;  %v1977_v35 = vmul.f32 %v1961_v8, %v1929_v21 }
 0x3a0   :  { %v2021_v56 = vmul.f32 0.7978846, %v2005_v30  ;;  %v2016_v43 = vmul.f32 0.7978846, %v2000_v51  ;;  %v1997_v61 = vmul.f32 %v1981_v32, %v4783_v45  ;;  %v1992_v3 = vmul.f32 %v1976_v38, %v4787_v27 }
 0x3a1   :  { %2856 = vtanh.f32 %v2020_v31  ;;  %v2017_v48 = vmul.f32 0.7978846, %v2001_v39  ;;  %v2012_v37 = vadd.f32 %v1996_v12, %v4781_v58  ;;  %v1993_v60 = vmul.f32 %v1977_v35, %v1929_v21 }
 0x3a2   :  { %2858 = vtanh.f32 %v2021_v56  ;;  %v2013_v2 = vadd.f32 %v1997_v61, %v4783_v45  ;;  %v2008_v18 = vadd.f32 %v1992_v3, %v4787_v27  ;;  %v1940_v46 = vmul.f32 0.5, %v4766_v17 }
 0x3a3   :  { %2860 = vtanh.f32 %v2016_v43  ;;  %v2028_v0 = vmul.f32 0.7978846, %v2012_v37  ;;  %v2009_v49 = vadd.f32 %v1993_v60, %v1929_v21  ;;  %v1941_v47 = vmul.f32 0.5, %v4768_v24 }
 0x3a4   :  { %2862 = vtanh.f32 %v2017_v48  ;;  %v2029_v20 = vmul.f32 0.7978846, %v2013_v2  ;;  %v2024_v33 = vmul.f32 0.7978846, %v2008_v18  ;;  %v1936_v34 = vmul.f32 0.5, %v4770_v9 }
 0x3a5   :  { %2864 = vtanh.f32 %v2028_v0  ;;  %v2025_v44 = vmul.f32 0.7978846, %v2009_v49  ;;  %v1937_v1 = vmul.f32 0.5, %v4773_v36  ;;  %v1911_v4 = vrot.slane %v4760_v26, %v5209_v40 }
 0x3a6   :  { %2866 = vtanh.f32 %v2029_v20  ;;  %v1915_v17 = vrot.slane %v4760_v26, %v5211_v22  ;;  %v1948_v24 = vmul.f32 0.5, %v4781_v58  ;;  %v1949_v36 = vmul.f32 0.5, %v4783_v45 }
 0x3a7   :  { %2868 = vtanh.f32 %v2024_v33  ;;  %v1944_v6 = vmul.f32 0.5, %v4787_v27  ;;  %v1945_v53 = vmul.f32 0.5, %v1929_v21 }
 0x3a8   :  { %2870 = vtanh.f32 %v2025_v44 }
 0x3ab   :  { %v2857_v25 = vpop.eup %2856 }
 0x3ac   :  { %v2859_v52 = vpop.eup %2858  ;;  %v2052_v59 = vadd.f32 1.0, %v2857_v25 }
 0x3ad   :  { %v2861_v29 = vpop.eup %2860  ;;  %v2053_v55 = vadd.f32 1.0, %v2859_v52 }
 0x3ae   :  { %v2863_v13 = vpop.eup %2862  ;;  %v2048_v23 = vadd.f32 1.0, %v2861_v29  ;;  %v4812_v42 = vmul.f32 %v2052_v59, %v1940_v46 }
 0x3af   :  { %v2049_v14 = vadd.f32 1.0, %v2863_v13  ;;  %v2865_v16 = vpop.eup %2864  ;;  %v4814_v11 = vmul.f32 %v2053_v55, %v1941_v47 }
 0x3b0   :  { %v2867_v41 = vpop.eup %2866  ;;  %v4816_v50 = vmul.f32 %v2048_v23, %v1936_v34  ;;  %v2060_v9 = vadd.f32 1.0, %v2865_v16  ;;  %v2120_v58 = vmul.f32 %v4812_v42, %v4812_v42 }
 0x3b1   :  { %v4820_v5 = vmul.f32 %v2049_v14, %v1937_v1  ;;  %v2061_v28 = vadd.f32 1.0, %v2867_v41  ;;  %v2869_v7 = vpop.eup %2868  ;;  %v2121_v57 = vmul.f32 %v4814_v11, %v4814_v11 }
 0x3b2   :  { %v2116_v26 = vmul.f32 %v4816_v50, %v4816_v50  ;;  %v2871_v45 = vpop.eup %2870  ;;  %v2080_v32 = vadd.f32 %v4812_v42, %v4816_v50  ;;  %v4846_v43 = vmul.f32 %v2060_v9, %v1948_v24  ;;  %v2056_v48 = vadd.f32 1.0, %v2869_v7 }
 0x3b3   :  { %v2089_v39 = vadd.f32 %v4814_v11, %v4820_v5  ;;  %v2117_v12 = vmul.f32 %v4820_v5, %v4820_v5  ;;  %v4852_v37 = vmul.f32 %v2061_v28, %v1949_v36  ;;  %v2057_v8 = vadd.f32 1.0, %v2871_v45 }
 0x3b4   :  { %v2639_v10 = vpop.f32.mrb[4].mxu0  ;;  %v2132_v20 = vadd.f32 %v2120_v58, %v2116_v26  ;;  %v4866_v13 = vmul.f32 %v2056_v48, %v1944_v6 }
 0x3b5   :  { %v4827_v54 = vadd.f32 %v2639_v10, %v1911_v4  ;;  %v2677_v30 = vpop.f32.mrb[4].mxu1  ;;  %v1793_v51 = vpop.f32.mrb[5].mxu0  ;;  %v2141_v55 = vadd.f32 %v2121_v57, %v2117_v12  ;;  %v4871_v34 = vmul.f32 %v2057_v8, %v1945_v53 }
 0x3b6   :  { %v4835_v31 = vadd.f32 %v2677_v30, %v1915_v17  ;;  %v4837_v27 = vadd.f32 %v1911_v4, %v1793_v51  ;;  %v1878_v21 = vpop.f32.mrb[5].mxu1  ;;  %v2128_v51 = vmul.f32 %v4846_v43, %v4846_v43  ;;  %v2081_v48 = vadd.f32 %v2080_v32, %v4866_v13 }
 0x3b7   :  { %v1958_v15 = vmul.f32 0.044715, %v4827_v54  ;;  %v4844_v56 = vadd.f32 %v1915_v17, %v1878_v21  ;;  %v2090_v21 = vadd.f32 %v2089_v39, %v4871_v34  ;;  %v2125_v39 = vmul.f32 %v4871_v34, %v4871_v34 }
 0x3b8   :  { %v1959_v61 = vmul.f32 0.044715, %v4835_v31  ;;  %v1954_v38 = vmul.f32 0.044715, %v4837_v27  ;;  %v2642_v0 = vpop.f32.mrb[6].mxu0  ;;  %v2124_v32 = vmul.f32 %v4866_v13, %v4866_v13 }
 0x3b9   :  { %v1974_v2 = vmul.f32 %v1958_v15, %v4827_v54  ;;  %v1955_v3 = vmul.f32 0.044715, %v4844_v56  ;;  %v2680_v35 = vpop.f32.mrb[6].mxu1  ;;  %v4858_v33 = vadd.f32 %v2642_v0, %v1911_v4  ;;  %v1803_v44 = vpop.f32.mrb[7].mxu0  ;;  %v2091_v8 = vadd.f32 %v2090_v21, %v4852_v37 }
 0x3ba   :  { %v1975_v18 = vmul.f32 %v1959_v61, %v4835_v31  ;;  %v1970_v60 = vmul.f32 %v1954_v38, %v4837_v27  ;;  %v4860_v49 = vadd.f32 %v2680_v35, %v1915_v17  ;;  %v1888_v25 = vpop.f32.mrb[7].mxu1  ;;  %v4864_v59 = vadd.f32 %v1911_v4, %v1803_v44 }
 0x3bb   :  { %v1990_v52 = vmul.f32 %v1974_v2, %v4827_v54  ;;  %v1971_v29 = vmul.f32 %v1955_v3, %v4844_v56  ;;  %v1966_v47 = vmul.f32 0.044715, %v4858_v33  ;;  %v4879_v9 = vadd.f32 %v1915_v17, %v1888_v25 }
 0x3bc   :  { %v1991_v23 = vmul.f32 %v1975_v18, %v4835_v31  ;;  %v1986_v46 = vmul.f32 %v1970_v60, %v4837_v27  ;;  %v1967_v1 = vmul.f32 0.044715, %v4860_v49  ;;  %v1962_v10 = vmul.f32 0.044715, %v4864_v59 }
 0x3bd   :  { %v2006_v14 = vadd.f32 %v1990_v52, %v4827_v54  ;;  %v1987_v16 = vmul.f32 %v1971_v29, %v4844_v56  ;;  %v1982_v24 = vmul.f32 %v1966_v47, %v4858_v33  ;;  %v1963_v45 = vmul.f32 0.044715, %v4879_v9 }
 0x3be   :  { %v2007_v41 = vadd.f32 %v1991_v23, %v4835_v31  ;;  %v2002_v4 = vadd.f32 %v1986_v46, %v4837_v27  ;;  %v1983_v53 = vmul.f32 %v1967_v1, %v4860_v49  ;;  %v1978_v17 = vmul.f32 %v1962_v10, %v4864_v59 }
 0x3bf   :  { %v2022_v36 = vmul.f32 0.7978846, %v2006_v14  ;;  %v2003_v6 = vadd.f32 %v1987_v16, %v4844_v56  ;;  %v1998_v30 = vmul.f32 %v1982_v24, %v4858_v33  ;;  %v1979_v38 = vmul.f32 %v1963_v45, %v4879_v9 }
 0x3c0   :  { %v2023_v28 = vmul.f32 0.7978846, %v2007_v41  ;;  %v2018_v7 = vmul.f32 0.7978846, %v2002_v4  ;;  %v1999_v26 = vmul.f32 %v1983_v53, %v4860_v49  ;;  %v1994_v12 = vmul.f32 %v1978_v17, %v4864_v59 }
 0x3c1   :  { %2872 = vtanh.f32 %v2022_v36  ;;  %v2019_v57 = vmul.f32 0.7978846, %v2003_v6  ;;  %v2014_v58 = vadd.f32 %v1998_v30, %v4858_v33  ;;  %v2082_v0 = vadd.f32 %v2081_v48, %v4846_v43 }
 0x3c2   :  { %2874 = vtanh.f32 %v2023_v28  ;;  %v2015_v15 = vadd.f32 %v1999_v26, %v4860_v49  ;;  %v2010_v3 = vadd.f32 %v1994_v12, %v4864_v59  ;;  %v1995_v35 = vmul.f32 %v1979_v38, %v4879_v9 }
 0x3c3   :  { %2876 = vtanh.f32 %v2018_v7  ;;  %v2030_v61 = vmul.f32 0.7978846, %v2014_v58  ;;  %v2092_v18 = vrot.slane %v2091_v8, 4  ;;  %v2083_v44 = vrot.slane %v2082_v0, 4 }
 0x3c4   :  { %2878 = vtanh.f32 %v2019_v57  ;;  %v2031_v2 = vmul.f32 0.7978846, %v2015_v15  ;;  %v2026_v60 = vmul.f32 0.7978846, %v2010_v3  ;;  %v2129_v25 = vmul.f32 %v4852_v37, %v4852_v37 }
 0x3c5   :  { %2880 = vtanh.f32 %v2030_v61  ;;  %v2142_v52 = vadd.f32 %v2141_v55, %v2125_v39  ;;  %v2011_v29 = vadd.f32 %v1995_v35, %v4879_v9  ;;  %v2093_v23 = vadd.f32 %v2092_v18, %v2091_v8 }
 0x3c6   :  { %2882 = vtanh.f32 %v2031_v2  ;;  %v2133_v46 = vadd.f32 %v2132_v20, %v2124_v32  ;;  %v2084_v47 = vadd.f32 %v2083_v44, %v2082_v0  ;;  %v1942_v7 = vmul.f32 0.5, %v4827_v54 }
 0x3c7   :  { %2884 = vtanh.f32 %v2026_v60  ;;  %v2143_v14 = vadd.f32 %v2142_v52, %v2129_v25  ;;  %v2027_v16 = vmul.f32 0.7978846, %v2011_v29  ;;  %v2094_v1 = vrot.slane %v2093_v23, 2 }
 0x3c8   :  { %v2134_v41 = vadd.f32 %v2133_v46, %v2128_v51  ;;  %v2085_v24 = vrot.slane %v2084_v47, 2  ;;  %v1938_v26 = vmul.f32 0.5, %v4837_v27  ;;  %v1943_v2 = vmul.f32 0.5, %v4835_v31 }
 0x3c9   :  { %v2144_v36 = vrot.slane %v2143_v14, 4  ;;  %2886 = vtanh.f32 %v2027_v16  ;;  %v2095_v10 = vadd.f32 %v2094_v1, %v2093_v23  ;;  %v1939_v3 = vmul.f32 0.5, %v4844_v56 }
 0x3ca   :  { %v2135_v28 = vrot.slane %v2134_v41, 4  ;;  %v2086_v30 = vadd.f32 %v2085_v24, %v2084_v47  ;;  %v1950_v35 = vmul.f32 0.5, %v4858_v33  ;;  %v1946_v31 = vmul.f32 0.5, %v4864_v59 }
 0x3cb   :  { %v2873_v4 = vpop.eup %2872  ;;  %v2145_v57 = vadd.f32 %v2144_v36, %v2143_v14  ;;  %v2096_v58 = vrot.slane %v2095_v10, 1  ;;  %v1951_v46 = vmul.f32 0.5, %v4860_v49  ;;  %v1947_v24 = vmul.f32 0.5, %v4879_v9 }
 0x3cc   :  { %v2875_v6 = vpop.eup %2874  ;;  %v2054_v53 = vadd.f32 1.0, %v2873_v4  ;;  %v2136_v45 = vadd.f32 %v2135_v28, %v2134_v41  ;;  %v2087_v15 = vrot.slane %v2086_v30, 1 }
 0x3cd   :  { %v2877_v55 = vpop.eup %2876  ;;  %v2055_v51 = vadd.f32 1.0, %v2875_v6  ;;  %v2146_v12 = vrot.slane %v2145_v57, 2  ;;  %v4913_v8 = vadd.f32 %v2096_v58, %v2095_v10 }
 0x3ce   :  { %v2879_v20 = vpop.eup %2878  ;;  %v2050_v17 = vadd.f32 1.0, %v2877_v55  ;;  %v4909_v61 = vmul.f32 %v2054_v53, %v1942_v7  ;;  %v2137_v54 = vrot.slane %v2136_v45, 2  ;;  %v4917_v27 = vadd.f32 %v2087_v15, %v2086_v30 }
 0x3cf   :  { %v2051_v21 = vadd.f32 1.0, %v2879_v20  ;;  %v2881_v48 = vpop.eup %2880  ;;  %v2147_v0 = vadd.f32 %v2146_v12, %v2145_v57  ;;  %2170 = vrot.lane.b32.xlu1 %v4913_v8, %s3011_s25  ;;  %v4922_v44 = vmul.f32 %v2055_v51, %v1943_v2 }
 0x3d0   :  { %v4911_v38 = vmul.f32 %v2050_v17, %v1938_v26  ;;  %v2883_v39 = vpop.eup %2882  ;;  %v2138_v18 = vadd.f32 %v2137_v54, %v2136_v45  ;;  %v2062_v32 = vadd.f32 1.0, %v2881_v48  ;;  %2168 = vrot.lane.b32.xlu0 %v4917_v27, %s3011_s25  ;;  %v2122_v23 = vmul.f32 %v4909_v61, %v4909_v61 }
 0x3d1   :  { %v2885_v60 = vpop.eup %2884  ;;  %v4924_v25 = vmul.f32 %v2051_v21, %v1939_v3  ;;  %v2148_v56 = vrot.slane %v2147_v0, 1  ;;  %v2063_v14 = vadd.f32 1.0, %v2883_v39  ;;  %v2123_v6 = vmul.f32 %v4922_v44, %v4922_v44 }
 0x3d2   :  { %v2058_v52 = vadd.f32 1.0, %v2885_v60  ;;  %v2139_v29 = vrot.slane %v2138_v18, 1  ;;  %v2118_v33 = vmul.f32 %v4911_v38, %v4911_v38  ;;  %v4940_v41 = vmul.f32 %v2062_v32, %v1950_v35 }
 0x3d3   :  { %v4934_v47 = vadd.f32 %v2148_v56, %v2147_v0  ;;  %v2887_v16 = vpop.eup %2886  ;;  %v2098_v4 = vadd.f32 %v4909_v61, %v4911_v38  ;;  %v2119_v49 = vmul.f32 %v4924_v25, %v4924_v25  ;;  %v4958_v55 = vmul.f32 %v2063_v14, %v1951_v46 }
 0x3d4   :  { %v4936_v1 = vmul.f32 %v2058_v52, %v1946_v31  ;;  %v4938_v59 = vadd.f32 %v2139_v29, %v2138_v18  ;;  %v2059_v36 = vadd.f32 1.0, %v2887_v16  ;;  %v2150_v28 = vadd.f32 %v2122_v23, %v2118_v33 }
 0x3d5   :  { %2208 = vrot.lane.b32.xlu1 %v4934_v47, %s3011_s25  ;;  %v2107_v7 = vadd.f32 %v4922_v44, %v4924_v25  ;;  %v2130_v57 = vmul.f32 %v4940_v41, %v4940_v41  ;;  %v2159_v58 = vadd.f32 %v2123_v6, %v2119_v49  ;;  %v2131_v15 = vmul.f32 %v4958_v55, %v4958_v55 }
 0x3d6   :  { %2206 = vrot.lane.b32.xlu0 %v4938_v59, %s3011_s25  ;;  %v2099_v53 = vadd.f32 %v2098_v4, %v4936_v1  ;;  %v2126_v10 = vmul.f32 %v4936_v1, %v4936_v1  ;;  %v4956_v9 = vmul.f32 %v2059_v36, %v1947_v24 }
 0x3d8   :  { %v2100_v30 = vadd.f32 %v2099_v53, %v4940_v41  ;;  %v2151_v20 = vadd.f32 %v2150_v28, %v2126_v10  ;;  %v2108_v26 = vadd.f32 %v2107_v7, %v4956_v9  ;;  %v2127_v17 = vmul.f32 %v4956_v9, %v4956_v9 }
 0x3da   :  { %v2101_v45 = vrot.slane %v2100_v30, 4  ;;  %v2152_v51 = vadd.f32 %v2151_v20, %v2130_v57  ;;  %v2109_v21 = vadd.f32 %v2108_v26, %v4958_v55  ;;  %v2160_v12 = vadd.f32 %v2159_v58, %v2127_v17 }
 0x3dc   :  { %v2102_v48 = vadd.f32 %v2101_v45, %v2100_v30  ;;  %v2153_v54 = vrot.slane %v2152_v51, 4  ;;  %v2110_v2 = vrot.slane %v2109_v21, 4  ;;  %v2161_v3 = vadd.f32 %v2160_v12, %v2131_v15 }
 0x3de   :  { %v2103_v0 = vrot.slane %v2102_v48, 2  ;;  %v2154_v39 = vadd.f32 %v2153_v54, %v2152_v51  ;;  %v2111_v35 = vadd.f32 %v2110_v2, %v2109_v21  ;;  %v2162_v18 = vrot.slane %v2161_v3, 4 }
 0x3e0   :  { %v2104_v32 = vadd.f32 %v2103_v0, %v2102_v48  ;;  %v2155_v60 = vrot.slane %v2154_v39, 2  ;;  %v2112_v31 = vrot.slane %v2111_v35, 2  ;;  %v2163_v56 = vadd.f32 %v2162_v18, %v2161_v3 }
 0x3e2   :  { %v2105_v52 = vrot.slane %v2104_v32, 1  ;;  %v2156_v29 = vadd.f32 %v2155_v60, %v2154_v39  ;;  %v2113_v33 = vadd.f32 %v2112_v31, %v2111_v35  ;;  %v2164_v23 = vrot.slane %v2163_v56, 2 }
 0x3e4   :  { %v2106_v46 = vadd.f32 %v2105_v52, %v2104_v32  ;;  %v2157_v14 = vrot.slane %v2156_v29, 1  ;;  %v2114_v16 = vrot.slane %v2113_v33, 1  ;;  %v2165_v4 = vadd.f32 %v2164_v23, %v2163_v56 }
 0x3e6   :  { %2172 = vrot.lane.b32.xlu0 %v2106_v46, %s3011_s25  ;;  %v2115_v24 = vadd.f32 %v2114_v16, %v2113_v33  ;;  %v2166_v36 = vrot.slane %v2165_v4, 1  ;;  %v2158_v49 = vadd.f32 %v2157_v14, %v2156_v29 }
 0x3e8   :  { %2174 = vrot.lane.b32.xlu1 %v2115_v24, %s3011_s25  ;;  %v2167_v6 = vadd.f32 %v2166_v36, %v2165_v4 }
 0x3ea   :  { %2210 = vrot.lane.b32.xlu0 %v2158_v49, %s3011_s25 }
 0x3ec   :  { %2212 = vrot.lane.b32.xlu1 %v2167_v6, %s3011_s25 }
 0x441   :  { %v2171_v53 = vpop.permute.xlu1 %2170 }
 0x442   :  { %v2169_v10 = vpop.permute.xlu0 %2168 }
 0x443   :  { %v2178_v28 = vsel %vm224_vm6, %v2169_v10, %v2171_v53 }
 0x444   :  { %v2181_v7 = vadd.f32 %v2178_v28, %v4913_v8 }
 0x446   :  { %2186 = vrot.lane.b32.xlu1 %v2181_v7, %s3016_s23 }
 0x447   :  { %v2209_v30 = vpop.permute.xlu1 %2208 }
 0x448   :  { %v2207_v57 = vpop.permute.xlu0 %2206 }
 0x449   :  { %v2216_v20 = vsel %vm224_vm6, %v2207_v57, %v2209_v30 }
 0x44a   :  { %v2219_v26 = vadd.f32 %v2216_v20, %v4934_v47 }
 0x44c   :  { %2224 = vrot.lane.b32.xlu1 %v2219_v26, %s3016_s23 }
 0x458   :  { %v2173_v17 = vpop.permute.xlu0 %2172 }
 0x459   :  { %v2177_v12 = vsel %vm224_vm6, %v2171_v53, %v2173_v17 }
 0x45a   :  { %v2175_v58 = vpop.permute.xlu1 %2174  ;;  %v2182_v54 = vadd.f32 %v2177_v12, %v2106_v46 }
 0x45b   :  { %v2179_v45 = vsel %vm224_vm6, %v2175_v58, %v2169_v10  ;;  %v2176_v51 = vsel %vm224_vm6, %v2173_v17, %v2175_v58 }
 0x45c   :  { %v2180_v8 = vadd.f32 %v2179_v45, %v4917_v27  ;;  %v2183_v21 = vadd.f32 %v2176_v51, %v2115_v24  ;;  %v2211_v15 = vpop.permute.xlu0 %2210 }
 0x45d   :  { %v2215_v0 = vsel %vm224_vm6, %v2209_v30, %v2211_v15 }
 0x45e   :  { %v2213_v48 = vpop.permute.xlu1 %2212  ;;  %2184 = vrot.lane.b32.xlu0 %v2180_v8, %s3016_s23  ;;  %2190 = vrot.lane.b32.xlu1 %v2183_v21, %s3016_s23  ;;  %v2220_v39 = vadd.f32 %v2215_v0, %v2158_v49 }
 0x45f   :  { %v2214_v47 = vsel %vm224_vm6, %v2211_v15, %v2213_v48  ;;  %v2217_v3 = vsel %vm224_vm6, %v2213_v48, %v2207_v57 }
 0x460   :  { %v2221_v2 = vadd.f32 %v2214_v47, %v2167_v6  ;;  %v2218_v27 = vadd.f32 %v2217_v3, %v4938_v59 }
 0x462   :  { %2188 = vrot.lane.b32.xlu0 %v2182_v54, %s3016_s23  ;;  %2228 = vrot.lane.b32.xlu1 %v2221_v2, %s3016_s23 }
 0x466   :  { %2222 = vrot.lane.b32.xlu0 %v2218_v27, %s3016_s23 }
 0x46a   :  { %2226 = vrot.lane.b32.xlu0 %v2220_v39, %s3016_s23 }
 0x4b8   :  { %v2187_v35 = vpop.permute.xlu1 %2186 }
 0x4be   :  { %v2225_v18 = vpop.permute.xlu1 %2224 }
 0x4d0   :  { %v2185_v32 = vpop.permute.xlu0 %2184  ;;  %v2191_v60 = vpop.permute.xlu1 %2190 }
 0x4d1   :  { %v2194_v56 = vsel %vm1336_vm8, %v2185_v32, %v2187_v35  ;;  %v2195_v52 = vsel %vm1336_vm8, %v2191_v60, %v2185_v32 }
 0x4d2   :  { %v2196_v46 = vadd.f32 %v2195_v52, %v2180_v8  ;;  %v2197_v14 = vadd.f32 %v2194_v56, %v2181_v7 }
 0x4d4   :  { %v2189_v31 = vpop.permute.xlu0 %2188  ;;  %v2201_v49 = vadd.f32 %v2197_v14, %v2196_v46  ;;  %v2229_v6 = vpop.permute.xlu1 %2228 }
 0x4d5   :  { %v2192_v59 = vsel %vm1336_vm8, %v2189_v31, %v2191_v60  ;;  %v2193_v29 = vsel %vm1336_vm8, %v2187_v35, %v2189_v31 }
 0x4d6   :  { %v2198_v33 = vadd.f32 %v2193_v29, %v2182_v54  ;;  %v2199_v23 = vadd.f32 %v2192_v59, %v2183_v21 }
 0x4d8   :  { %v2223_v16 = vpop.permute.xlu0 %2222  ;;  %v2200_v4 = vadd.f32 %v2199_v23, %v2196_v46  ;;  %v2202_v24 = vadd.f32 %v2198_v33, %v2197_v14  ;;  %v2203_v36 = vadd.f32 %v2199_v23, %v2198_v33  ;;  %v5261_v46 = vld [vmem:[#allocation12_spill] sm:$0xff] }
 0x4d9   :  { %v2232_v10 = vsel %vm1336_vm8, %v2223_v16, %v2225_v18  ;;  %v2233_v28 = vsel %vm1336_vm8, %v2229_v6, %v2223_v16 }
 0x4da   :  { %v2204_v7 = vadd.f32 %v2202_v24, %v2200_v4  ;;  %v2205_v20 = vadd.f32 %v2203_v36, %v2201_v49  ;;  %v2234_v17 = vadd.f32 %v2233_v28, %v2218_v27  ;;  %v2235_v58 = vadd.f32 %v2232_v10, %v2219_v26  ;;  %v2307_v36 = vld [vmem:[#allocation5 + $0x25] ss:$8 sm:$0xf] }
 0x4dc   :  { %v2227_v53 = vpop.permute.xlu0 %2226  ;;  %v2244_v8 = vmul.f32 0.001953125, %v2204_v7  ;;  %v2245_v21 = vmul.f32 0.001953125, %v2205_v20  ;;  %v2239_v15 = vadd.f32 %v2235_v58, %v2234_v17  ;;  %v2334_v20 = vld [vmem:[#allocation5 + $0x27] ss:$8 sm:$0xf] }
 0x4dd   :  { %v2230_v30 = vsel %vm1336_vm8, %v2227_v53, %v2229_v6  ;;  %v2231_v57 = vsel %vm1336_vm8, %v2225_v18, %v2227_v53  ;;  %v2308_v6 = vmul.f32 %v2307_v36, %v2307_v36 }
 0x4de   :  { %v2236_v45 = vadd.f32 %v2231_v57, %v2220_v39  ;;  %v2237_v51 = vadd.f32 %v2230_v30, %v2221_v2  ;;  %v2248_v0 = vmul.f32 %v2244_v8, %v2244_v8  ;;  %v2249_v35 = vmul.f32 %v2245_v21, %v2245_v21 }
 0x4df   :  { %v3017_v2 = vmov 1966171168   ;;  %v2261_v57 = vrot.slane %v2244_v8, %v5259_v19  ;;  %v2265_v7 = vrot.slane %v2245_v21, %v5259_v19 }
 0x4e0   :  { %v2238_v12 = vadd.f32 %v2237_v51, %v2234_v17  ;;  %v2240_v48 = vadd.f32 %v2236_v45, %v2235_v58  ;;  %v2241_v47 = vadd.f32 %v2237_v51, %v2236_v45  ;;  %v2317_v39 = vunpack.c.l.s4 %v3017_v2  ;;  %v2377_v17 = vld [vmem:[#allocation5 + $0x40] ss:$8 sm:$0xf] }
 0x4e1   :  { %v2335_v58 = vmul.f32 %v2334_v20, %v2307_v36  ;;  %v5023_v45 = vrot.slane %v2377_v17, %v5259_v19  ;;  %v5026_v51 = vrot.slane %v2377_v17, %v5260_v62  ;;  %v5034_v8 = vrot.slane %v2377_v17, %v5211_v22 }
 0x4e2   :  { %v2242_v54 = vadd.f32 %v2240_v48, %v2238_v12  ;;  %v2243_v3 = vadd.f32 %v2241_v47, %v2239_v15  ;;  %v2318_v29 = vunpack.c.0.s8 %v2317_v39  ;;  %v5029_v15 = vrot.slane %v2377_v17, %v5209_v40 }
 0x4e3   :  { %v2266_v12 = vsub.f32 %v4816_v50, %v2261_v57  ;;  %v2267_v48 = vsub.f32 %v4820_v5, %v2265_v7  ;;  %v2268_v47 = vsub.f32 %v4911_v38, %v2261_v57  ;;  %v2273_v50 = vsub.f32 %v4922_v44, %v2265_v7 }
 0x4e4   :  { %v2246_v32 = vmul.f32 0.001953125, %v2242_v54  ;;  %v2247_v60 = vmul.f32 0.001953125, %v2243_v3  ;;  %v2321_v14 = vsub.s32 %v2318_v29, %v5261_v46  ;;  %v2269_v54 = vsub.f32 %v4924_v25, %v2265_v7 }
 0x4e5   :  { %v2270_v3 = vsub.f32 %v4812_v42, %v2261_v57  ;;  %v2274_v5 = vsub.f32 %v4866_v13, %v2261_v57  ;;  %v2277_v38 = vsub.f32 %v4956_v9, %v2265_v7  ;;  %v2278_v25 = vsub.f32 %v4846_v43, %v2261_v57 }
 0x4e6   :  { %v2250_v63 = vsub.f32 %v2246_v32, %v2248_v0  ;;  %v2251_v18 = vsub.f32 %v2247_v60, %v2249_v35  ;;  %v2271_v35 = vsub.f32 %v4814_v11, %v2265_v7  ;;  %v2272_v32 = vsub.f32 %v4909_v61, %v2261_v57 }
 0x4e7   :  { %v2275_v60 = vsub.f32 %v4871_v34, %v2265_v7  ;;  %v2279_v42 = vsub.f32 %v4852_v37, %v2265_v7  ;;  %v2281_v11 = vsub.f32 %v4958_v55, %v2265_v7 }
 0x4e8   :  { %v2252_v31 = vmax.f32 %v2250_v63, 0.0  ;;  %v2253_v56 = vmax.f32 %v2251_v18, 0.0  ;;  %v2276_v63 = vsub.f32 %v4936_v1, %v2261_v57  ;;  %v2280_v18 = vsub.f32 %v4940_v41, %v2261_v57 }
 0x4ea   :  { %v2254_v27 = vadd.f32 1e-05, %v2252_v31  ;;  %v2255_v26 = vadd.f32 1e-05, %v2253_v56 }
 0x4ec   :  { %2888 = vrsqrt.f32 %v2254_v27 }
 0x4ed   :  { %2890 = vrsqrt.f32 %v2255_v26 }
 0x4f6   :  { %v2889_v52 = vpop.eup %2888 }
 0x4f7   :  { %v2891_v59 = vpop.eup %2890  ;;  %v2309_v33 = vmul.f32 %v2889_v52, %v2252_v31  ;;  %v2285_v21 = vrot.slane %v2889_v52, %v5259_v19 }
 0x4f8   :  { %v2310_v23 = vmul.f32 %v2891_v59, %v2253_v56  ;;  %v2289_v0 = vrot.slane %v2891_v59, %v5259_v19 }
 0x4f9   :  { %v2311_v16 = vmul.f32 %v2889_v52, %v2309_v33  ;;  %v2290_v31 = vmul.f32 %v2285_v21, %v2266_v12  ;;  %v2292_v44 = vmul.f32 %v2285_v21, %v2268_v47  ;;  %v2294_v27 = vmul.f32 %v2285_v21, %v2270_v3 }
 0x4fa   :  { %v2312_v4 = vmul.f32 %v2891_v59, %v2310_v23  ;;  %v2291_v56 = vmul.f32 %v2289_v0, %v2267_v48  ;;  %v2296_v13 = vmul.f32 %v2285_v21, %v2272_v32  ;;  %v2293_v26 = vmul.f32 %v2289_v0, %v2269_v54 }
 0x4fb   :  { %v2295_v34 = vmul.f32 %v2289_v0, %v2271_v35  ;;  %v2297_v2 = vmul.f32 %v2289_v0, %v2273_v50  ;;  %v2298_v39 = vmul.f32 %v2285_v21, %v2274_v5  ;;  %v2299_v9 = vmul.f32 %v2289_v0, %v2275_v60 }
 0x4fc   :  { %v2315_v24 = vcombine.low %v2311_v16, %v2312_v4  ;;  %v2300_v52 = vmul.f32 %v2285_v21, %v2276_v63  ;;  %v2301_v43 = vmul.f32 %v2289_v0, %v2277_v38  ;;  %v2302_v29 = vmul.f32 %v2285_v21, %v2278_v25 }
 0x4fd   :  { %v2303_v33 = vmul.f32 %v2289_v0, %v2279_v42  ;;  %v2304_v23 = vmul.f32 %v2285_v21, %v2280_v18  ;;  %v2305_v46 = vmul.f32 %v2289_v0, %v2281_v11 }
 0x4fe   :  { %v2322_v49 = vrot.slane %v2315_v24, %v2321_v14 }
 0x500   :  { %v2323_v53 = vcombine.low %v2322_v49, %v2322_v49 }
 0x502   :  { %v2330_v10 = vrot.slane %v2323_v53, %v2321_v14 }
 0x504   :  { %v2332_v28 = vmul.f32 %v2330_v10, %v2308_v6 }
 0x506   :  { %v2336_v30 = vadd.f32 1e-05, %v2332_v28 }
 0x508   :  { %2892 = vrsqrt.f32 %v2336_v30 }
 0x512   :  { %v2893_v61 = vpop.eup %2892 }
 0x513   :  { %v2338_v1 = vmul.f32 %v2893_v61, %v2335_v58 }
 0x515   :  { %v2343_v37 = vrot.slane %v2338_v1, %v5259_v19  ;;  %v2347_v41 = vrot.slane %v2338_v1, %v5260_v62  ;;  %v2351_v55 = vrot.slane %v2338_v1, %v5209_v40  ;;  %v2355_v59 = vrot.slane %v2338_v1, %v5211_v22 }
 0x517   :  { %v2360_v14 = vmul.f32 %v2343_v37, %v2290_v31  ;;  %v2361_v16 = vmul.f32 %v2347_v41, %v2291_v56  ;;  %v2362_v4 = vmul.f32 %v2351_v55, %v2292_v44  ;;  %v2363_v24 = vmul.f32 %v2355_v59, %v2293_v26 }
 0x518   :  { %v2364_v36 = vmul.f32 %v2343_v37, %v2294_v27  ;;  %v2365_v49 = vmul.f32 %v2347_v41, %v2295_v34  ;;  %v2366_v6 = vmul.f32 %v2351_v55, %v2296_v13  ;;  %v2367_v53 = vmul.f32 %v2355_v59, %v2297_v2 }
 0x519   :  { %v2368_v10 = vmul.f32 %v2343_v37, %v2298_v39  ;;  %v2369_v19 = vmul.f32 %v2347_v41, %v2299_v9  ;;  %v2370_v28 = vmul.f32 %v2351_v55, %v2300_v52  ;;  %v2371_v62 = vmul.f32 %v2355_v59, %v2301_v43 }
 0x51a   :  { %v2372_v30 = vmul.f32 %v2343_v37, %v2302_v29  ;;  %v2373_v40 = vmul.f32 %v2347_v41, %v2303_v33  ;;  %v2374_v57 = vmul.f32 %v2351_v55, %v2304_v23  ;;  %v2375_v22 = vmul.f32 %v2355_v59, %v2305_v46 }
 0x51b   :  { %v2399_v7 = vadd.f32 %v5023_v45, %v2360_v14  ;;  %v2400_v20 = vadd.f32 %v5026_v51, %v2361_v16  ;;  %v2401_v17 = vadd.f32 %v5029_v15, %v2362_v4  ;;  %v2402_v58 = vadd.f32 %v5034_v8, %v2363_v24 }
 0x51c   :  { %v2403_v12 = vadd.f32 %v5023_v45, %v2364_v36  ;;  %v2404_v48 = vadd.f32 %v5026_v51, %v2365_v49  ;;  %v2405_v21 = vadd.f32 %v5029_v15, %v2366_v6  ;;  %v2406_v47 = vadd.f32 %v5034_v8, %v2367_v53 }
 0x51d   :  { %v2407_v54 = vadd.f32 %v5023_v45, %v2368_v10  ;;  %v2408_v3 = vadd.f32 %v5026_v51, %v2369_v19  ;;  %v2409_v0 = vadd.f32 %v5029_v15, %v2370_v28  ;;  %v2410_v35 = vadd.f32 %v5034_v8, %v2371_v62  ;;  %2415 = vst [vmem:[#allocation8] sm:$0xff] %v2399_v7 }
 0x51e   :  { %2416 = vst [vmem:[#allocation8 + $0x8] sm:$0xff] %v2400_v20  ;;  %2417 = vst [vmem:[#allocation8 + $0x10] sm:$0xff] %v2401_v17  ;;  %v2411_v32 = vadd.f32 %v5023_v45, %v2372_v30  ;;  %v2412_v50 = vadd.f32 %v5026_v51, %v2373_v40  ;;  %v2413_v5 = vadd.f32 %v5029_v15, %v2374_v57 }
 0x51f   :  { %2418 = vst [vmem:[#allocation8 + $0x18] sm:$0xff] %v2402_v58  ;;  %v2414_v60 = vadd.f32 %v5034_v8, %v2375_v22  ;;  %2419 = vst [vmem:[#allocation8 + $0x20] sm:$0xff] %v2403_v12 }
 0x520   :  { %2420 = vst [vmem:[#allocation8 + $0x28] sm:$0xff] %v2404_v48  ;;  %2421 = vst [vmem:[#allocation8 + $0x30] sm:$0xff] %v2405_v21 }
 0x521   :  { %2422 = vst [vmem:[#allocation8 + $0x38] sm:$0xff] %v2406_v47  ;;  %2423 = vst [vmem:[#allocation8 + $0x40] sm:$0xff] %v2407_v54 }
 0x522   :  { %2424 = vst [vmem:[#allocation8 + $0x48] sm:$0xff] %v2408_v3  ;;  %2425 = vst [vmem:[#allocation8 + $0x50] sm:$0xff] %v2409_v0 }
 0x523   :  { %2426 = vst [vmem:[#allocation8 + $0x58] sm:$0xff] %v2410_v35  ;;  %2427 = vst [vmem:[#allocation8 + $0x60] sm:$0xff] %v2411_v32 }
 0x524   :  { %2428 = vst [vmem:[#allocation8 + $0x68] sm:$0xff] %v2412_v50  ;;  %2429 = vst [vmem:[#allocation8 + $0x70] sm:$0xff] %v2413_v5 }
 0x525   :  { %2430 = vst [vmem:[#allocation8 + $0x78] sm:$0xff] %v2414_v60 }
 0x526   :  { %2991 = shalt.err (!%p2988_p0)
}
 0x527   :  { %s2992_s4 = scalar_lea.hbm %s5090_s3, 2048 }
 0x528   :  { %p2993_p1 = scmp.ne.s32.totalorder %s5090_s3, %s2992_s4  ;;  %p2996_p2 = scmp.lt.u32.totalorder %s2992_s4, %s5090_s3 }
 0x52a   :  { %p2998_p3 = pnand %p2996_p2, %p2993_p1 }
 0x52c   :  { %3001 = shalt.err (!%p2998_p3)
}
 0x52d   :  { %2442 = dma.vmem_to_hbm [thread:$0]  %s2437_s27, 2048, %s5090_s3, [#allocation4], %s3010_s24, %s3010_s24, %s3011_s25  }
 0x52e   :  { %3006 = dma.done.wait [#allocation4], 2048  }
 0x52f   :  { %3007 = vsyncadd [#allocation4], 4294965248 }
 0x530   :  { %2446 = vsyncpa [#allocation3], 1 }
 0x531   :  { %2447 = vsyncpa [#allocation6], 1 }
 0x532   :  { %2448 = vsyncpa [#allocation4], 1 }

</bundles_post_ra>
